<compile_context>
chip_gen: v6e
topology: v6e:2x2x1
jax: 0.10.0
libtpu: 0.0.40
codegen_flags: <defaults>
</compile_context>

<pallas_src>
import functools

import jax
import jax.numpy as jnp
from jax import lax
from jax.experimental import pallas as pl
from jax.experimental.pallas import tpu as pltpu

BN_EPS = 1e-5
LEAKY_SLOPE = 0.01


# ----------------------------------------------------------------------------
# In-kernel helpers
# ----------------------------------------------------------------------------
def _shift_time(x, s):
    """Return y with y[:, t] = x[:, t + s] (zero padded); s is a static int."""
    if s == 0:
        return x
    c, l = x.shape
    k = abs(s)
    if k >= l:                                     # tap lies entirely in zero padding
        return jnp.zeros_like(x)
    pad = jnp.zeros((c, k), dtype=x.dtype)
    if s < 0:                                      # look back in time
        return jnp.concatenate([pad, x[:, : l - k]], axis=1)
    return jnp.concatenate([x[:, k:], pad], axis=1)


def _conv_stacked(x, w, b, shifts):
    """Dilated 1-D conv of x:(C_in,L) with stacked-tap weight w:(C_out,k*C_in).

    Taps are stacked along the MXU K dimension so the conv is a single matmul
    (K = k*C_in).  Falls back to per-tap accumulation when C_in is not
    sublane-aligned (only the first block, C_in=4).
    """
    c_in, l = x.shape
    w = w.astype(jnp.float32)
    b = b.astype(jnp.float32)
    if len(shifts) == 1:
        x_stack = _shift_time(x, shifts[0])
    elif c_in % 8 == 0:
        x_stack = jnp.concatenate([_shift_time(x, s) for s in shifts], axis=0)
    else:
        acc = jnp.zeros((w.shape[0], l), jnp.float32)
        for j, s in enumerate(shifts):
            if abs(s) >= l:
                continue
            w_j = w[:, j * c_in:(j + 1) * c_in]
            acc = acc + jnp.dot(w_j, _shift_time(x, s),
                                preferred_element_type=jnp.float32)
        return acc + b
    return jnp.dot(w, x_stack, preferred_element_type=jnp.float32) + b


# ----------------------------------------------------------------------------
# Fully fused kernel: whole TCNEncoder forward for one batch element
# ----------------------------------------------------------------------------
def _fused_tcn_kernel(*refs, block_meta, n_emb, leaky_slope):
    o_ref = refs[-1]                               # (E, 1)
    it = iter(refs[:-1])
    x_ref = next(it)

    h = x_ref[...].astype(jnp.float32)             # (C_in, L)

    # --- TemporalBlocks -------------------------------------------------
    for dilation, has_sc in block_meta:
        w1 = next(it)[...]
        b1 = next(it)[...]
        w2 = next(it)[...]
        b2 = next(it)[...]
        if has_sc:
            wsc = next(it)[...]
            bsc = next(it)[...]
            res = _conv_stacked(h, wsc, bsc, (0,))       # 1x1 shortcut conv
        else:
            res = h
        shifts = (-2 * dilation, -dilation, 0)           # causal conv + Chomp1d
        y = jnp.maximum(_conv_stacked(h, w1, b1, shifts), 0.0)
        y = jnp.maximum(_conv_stacked(y, w2, b2, shifts), 0.0)
        h = jnp.maximum(y + res, 0.0)

    # --- to_emb: Conv(BN folded) + LeakyReLU + MaxPool(2,2) --------------
    for _ in range(n_emb):
        w = next(it)[...]
        b = next(it)[...]
        sel = next(it)[...]                               # (L, L//2) even-lane selector
        y = _conv_stacked(h, w, b, (-1, 0, 1))
        y = jnp.where(y >= 0.0, y, leaky_slope * y)
        m = jnp.maximum(y, _shift_time(y, 1))             # pairwise max with next lane
        h = jnp.dot(m, sel.astype(jnp.float32),
                    preferred_element_type=jnp.float32)   # keep even lanes -> (C, L//2)

    # --- Flatten + Linear -------------------------------------------------
    # out[e] = sum_{c,t} lin_w[e, c*T + t] * h[c, t]; wlin is pre-permuted to
    # (T, E, C) so this is T small (E,C)@(C,1) MXU dots (no in-VMEM flatten).
    wlin = next(it)[...]                           # (T, E, C)
    blin = next(it)[...]                           # (E, 1)
    acc = blin.astype(jnp.float32)
    t_dim = h.shape[1]
    for t in range(t_dim):
        acc = acc + jnp.dot(wlin[t].astype(jnp.float32), h[:, t:t + 1],
                            preferred_element_type=jnp.float32)
    o_ref[...] = acc.astype(o_ref.dtype)


# ----------------------------------------------------------------------------
# Host-side packing (done once, outside the per-call path)
# ----------------------------------------------------------------------------
def _stack_taps(w):
    """PyTorch Conv1d weight (C_out, C_in, k) -> tap-major stacked (C_out, k*C_in)."""
    c_out, c_in, k = w.shape
    return jnp.transpose(w, (0, 2, 1)).reshape(c_out, k * c_in)


def _even_select(l):
    """0/1 matrix (l, l//2) selecting even time positions (MaxPool stride-2 gather)."""
    rows = jnp.arange(l)[:, None]
    cols = jnp.arange(l // 2)[None, :]
    return (rows == 2 * cols).astype(jnp.float32)


def pack_params(params, dilations, seq_len):
    """Repack raw (PyTorch-layout) params into the fused kernel's input list."""
    packed = []
    block_meta = []
    for blk, d in zip(params["blocks"], dilations):
        has_sc = "w_sc" in blk
        packed.append(_stack_taps(blk["w1"]))
        packed.append(blk["b1"].reshape(-1, 1))
        packed.append(_stack_taps(blk["w2"]))
        packed.append(blk["b2"].reshape(-1, 1))
        if has_sc:
            packed.append(blk["w_sc"][:, :, 0])            # (C_out, C_in), k=1
            packed.append(blk["b_sc"].reshape(-1, 1))
        block_meta.append((int(d), bool(has_sc)))

    l = seq_len
    for lyr in params["to_emb"]:
        scale = lyr["gamma"] / jnp.sqrt(lyr["var"] + BN_EPS)   # eval-mode BN fold
        w_fold = lyr["w"] * scale[:, None, None]
        b_fold = (lyr["beta"] - lyr["mean"] * scale).reshape(-1, 1)
        packed.append(_stack_taps(w_fold))
        packed.append(b_fold)
        packed.append(_even_select(l))
        l //= 2

    e = params["lin_w"].shape[0]
    t = l
    c = params["lin_w"].shape[1] // t
    # (E, C*T) -> (T, E, C): per-time-slot weight matrices (PyTorch flatten order c*T+t)
    packed.append(jnp.transpose(params["lin_w"].reshape(e, c, t), (2, 0, 1)))
    packed.append(params["lin_b"].reshape(e, 1))

    return tuple(packed), tuple(block_meta), len(params["to_emb"])


def _const_spec(a):
    nd = a.ndim
    return pl.BlockSpec(a.shape, lambda *_: (0,) * nd)


# ----------------------------------------------------------------------------
# Fused forward: one pallas_call over the batch
# ----------------------------------------------------------------------------
@functools.partial(jax.jit, static_argnames=("block_meta", "n_emb"))
def tcn_encoder_forward(x, packed, *, block_meta, n_emb):
    """x: (B, seq_len, in_dim) -> (B, emb_dim)."""
    xt = jnp.transpose(x, (0, 2, 1))               # x.transpose(1, 2): (B, in_dim, L)
    batch, c_in, seq_len = xt.shape
    emb_dim = packed[-1].shape[0]

    kern = functools.partial(_fused_tcn_kernel, block_meta=block_meta,
                             n_emb=n_emb, leaky_slope=LEAKY_SLOPE)
    in_specs = [pl.BlockSpec((None, c_in, seq_len), lambda i: (i, 0, 0))]
    in_specs += [_const_spec(a) for a in packed]   # weights: constant index_map (resident)

    out = pl.pallas_call(
        kern,
        out_shape=jax.ShapeDtypeStruct((batch, emb_dim, 1), x.dtype),
        grid_spec=pltpu.PrefetchScalarGridSpec(
            num_scalar_prefetch=0,
            grid=(batch,),
            in_specs=in_specs,
            out_specs=pl.BlockSpec((None, emb_dim, 1), lambda i: (i, 0, 0)),
        ),
        compiler_params=pltpu.CompilerParams(
            dimension_semantics=("parallel",),
        ),
    )(xt, *packed)
    return out[:, :, 0]


# ----------------------------------------------------------------------------
# Parameters + pure-JAX reference
# ----------------------------------------------------------------------------
def init_params(key, *, seq_len, in_dim, d_model, emb_dim):
    keys = iter(jax.random.split(key, 64))

    def nrm(shape, scale):
        return scale * jax.random.normal(next(keys), shape, dtype=jnp.float32)

    blocks, dilations = [], []
    dilation, i = 1, 0
    while dilation <= seq_len:
        cin = in_dim if i == 0 else d_model
        blk = {
            "w1": nrm((d_model, cin, 3), 0.5 / (3 * cin) ** 0.5),
            "b1": nrm((d_model,), 0.05),
            "w2": nrm((d_model, d_model, 3), 0.5 / (3 * d_model) ** 0.5),
            "b2": nrm((d_model,), 0.05),
        }
        if cin != d_model:
            blk["w_sc"] = nrm((d_model, cin, 1), 1.0 / cin ** 0.5)
            blk["b_sc"] = nrm((d_model,), 0.05)
        blocks.append(blk)
        dilations.append(dilation)
        i += 1
        dilation = 2 ** i

    to_emb = []
    for _ in range(4):
        to_emb.append({
            "w": nrm((d_model, d_model, 3), 0.5 / (3 * d_model) ** 0.5),
            "gamma": 1.0 + nrm((d_model,), 0.1),
            "beta": nrm((d_model,), 0.1),
            "mean": nrm((d_model,), 0.1),
            "var": 0.5 + jax.random.uniform(next(keys), (d_model,), dtype=jnp.float32),
        })

    params = {
        "blocks": blocks,
        "to_emb": to_emb,
        "lin_w": nrm((emb_dim, d_model * 8), 1.0 / (d_model * 8) ** 0.5),
        "lin_b": nrm((emb_dim,), 0.05),
    }
    return params, tuple(dilations)


def _torch_conv1d_ref(x, w, b, *, padding, dilation):
    dn = lax.conv_dimension_numbers(x.shape, w.shape, ("NCH", "OIH", "NCH"))
    y = lax.conv_general_dilated(
        x, w, window_strides=(1,), padding=[(padding, padding)],
        rhs_dilation=(dilation,), dimension_numbers=dn,
        precision=lax.Precision.HIGHEST)
    if b is not None:
        y = y + b[None, :, None]
    return y


def _encoder_ref(x, params, dilations):
    h = jnp.transpose(x, (0, 2, 1))
    for blk, d in zip(params["blocks"], dilations):
        p = 2 * d
        y = _torch_conv1d_ref(h, blk["w1"], blk["b1"], padding=p, dilation=d)
        y = jax.nn.relu(y[:, :, :-p])                         # Chomp1d + ReLU
        y = _torch_conv1d_ref(y, blk["w2"], blk["b2"], padding=p, dilation=d)
        y = jax.nn.relu(y[:, :, :-p])
        res = (_torch_conv1d_ref(h, blk["w_sc"], blk["b_sc"], padding=0, dilation=1)
               if "w_sc" in blk else h)
        h = jax.nn.relu(y + res)
    for lyr in params["to_emb"]:
        y = _torch_conv1d_ref(h, lyr["w"], None, padding=1, dilation=1)
        scale = lyr["gamma"] / jnp.sqrt(lyr["var"] + BN_EPS)
        y = y * scale[None, :, None] + (lyr["beta"] - lyr["mean"] * scale)[None, :, None]
        y = jnp.where(y >= 0.0, y, LEAKY_SLOPE * y)
        b_, c_, l_ = y.shape
        h = y.reshape(b_, c_, l_ // 2, 2).max(axis=-1)
    flat = h.reshape(h.shape[0], -1)
    return flat @ params["lin_w"].T + params["lin_b"]


if __name__ == "__main__":
    # Shapes implied by the module: Flatten -> Linear(d_model * 8, emb_dim)
    # requires seq_len / 2^4 == 8, i.e. seq_len = 128.
    BATCH, SEQ_LEN, IN_DIM, D_MODEL, EMB_DIM = 2, 128, 4, 32, 16

    root = jax.random.PRNGKey(0)
    pkey, xkey = jax.random.split(root)
    params, dilations = init_params(pkey, seq_len=SEQ_LEN, in_dim=IN_DIM,
                                    d_model=D_MODEL, emb_dim=EMB_DIM)
    x = jax.random.normal(xkey, (BATCH, SEQ_LEN, IN_DIM), dtype=jnp.float32)

    packed, block_meta, n_emb = pack_params(params, dilations, SEQ_LEN)

    out = tcn_encoder_forward(x, packed, block_meta=block_meta, n_emb=n_emb)
    out = jax.block_until_ready(out)
    assert out.shape == (BATCH, EMB_DIM) and out.dtype == jnp.float32

    ref = _encoder_ref(x, params, dilations)
    max_err = float(jnp.max(jnp.abs(out - ref)))
    assert jnp.allclose(out, ref, atol=2e-2, rtol=2e-2), f"max abs err = {max_err}"

    print("KERNEL_OK")
</pallas_src>

<mosaic_0001>
module attributes {stable_mosaic.version = 11 : i64} {
  func.func @_fused_tcn_kernel(%arg0: i32, %arg1: memref<1x4x128xf32, #tpu.memory_space<vmem>>, %arg2: memref<32x12xf32, #tpu.memory_space<vmem>>, %arg3: memref<32x1xf32, #tpu.memory_space<vmem>>, %arg4: memref<32x96xf32, #tpu.memory_space<vmem>>, %arg5: memref<32x1xf32, #tpu.memory_space<vmem>>, %arg6: memref<32x4xf32, #tpu.memory_space<vmem>>, %arg7: memref<32x1xf32, #tpu.memory_space<vmem>>, %arg8: memref<32x96xf32, #tpu.memory_space<vmem>>, %arg9: memref<32x1xf32, #tpu.memory_space<vmem>>, %arg10: memref<32x96xf32, #tpu.memory_space<vmem>>, %arg11: memref<32x1xf32, #tpu.memory_space<vmem>>, %arg12: memref<32x96xf32, #tpu.memory_space<vmem>>, %arg13: memref<32x1xf32, #tpu.memory_space<vmem>>, %arg14: memref<32x96xf32, #tpu.memory_space<vmem>>, %arg15: memref<32x1xf32, #tpu.memory_space<vmem>>, %arg16: memref<32x96xf32, #tpu.memory_space<vmem>>, %arg17: memref<32x1xf32, #tpu.memory_space<vmem>>, %arg18: memref<32x96xf32, #tpu.memory_space<vmem>>, %arg19: memref<32x1xf32, #tpu.memory_space<vmem>>, %arg20: memref<32x96xf32, #tpu.memory_space<vmem>>, %arg21: memref<32x1xf32, #tpu.memory_space<vmem>>, %arg22: memref<32x96xf32, #tpu.memory_space<vmem>>, %arg23: memref<32x1xf32, #tpu.memory_space<vmem>>, %arg24: memref<32x96xf32, #tpu.memory_space<vmem>>, %arg25: memref<32x1xf32, #tpu.memory_space<vmem>>, %arg26: memref<32x96xf32, #tpu.memory_space<vmem>>, %arg27: memref<32x1xf32, #tpu.memory_space<vmem>>, %arg28: memref<32x96xf32, #tpu.memory_space<vmem>>, %arg29: memref<32x1xf32, #tpu.memory_space<vmem>>, %arg30: memref<32x96xf32, #tpu.memory_space<vmem>>, %arg31: memref<32x1xf32, #tpu.memory_space<vmem>>, %arg32: memref<32x96xf32, #tpu.memory_space<vmem>>, %arg33: memref<32x1xf32, #tpu.memory_space<vmem>>, %arg34: memref<32x96xf32, #tpu.memory_space<vmem>>, %arg35: memref<32x1xf32, #tpu.memory_space<vmem>>, %arg36: memref<32x96xf32, #tpu.memory_space<vmem>>, %arg37: memref<32x1xf32, #tpu.memory_space<vmem>>, %arg38: memref<128x64xf32, #tpu.memory_space<vmem>>, %arg39: memref<32x96xf32, #tpu.memory_space<vmem>>, %arg40: memref<32x1xf32, #tpu.memory_space<vmem>>, %arg41: memref<64x32xf32, #tpu.memory_space<vmem>>, %arg42: memref<32x96xf32, #tpu.memory_space<vmem>>, %arg43: memref<32x1xf32, #tpu.memory_space<vmem>>, %arg44: memref<32x16xf32, #tpu.memory_space<vmem>>, %arg45: memref<32x96xf32, #tpu.memory_space<vmem>>, %arg46: memref<32x1xf32, #tpu.memory_space<vmem>>, %arg47: memref<16x8xf32, #tpu.memory_space<vmem>>, %arg48: memref<8x16x32xf32, #tpu.memory_space<vmem>>, %arg49: memref<16x1xf32, #tpu.memory_space<vmem>>, %arg50: memref<1x16x1xf32, #tpu.memory_space<vmem>>) attributes {dimension_semantics = [#tpu.dimension_semantics<parallel>], iteration_bounds = array<i64: 2>, scalar_prefetch = 0 : i64, scratch_operands = 0 : i64, tpu.core_type = #tpu.core_type<tc>, window_params = [{transform_indices = @transform_0, window_bounds = array<i64: 1, 4, 128>}, {pipeline_mode = #tpu.pipeline_mode<synchronous>, transform_indices = @transform_1, window_bounds = array<i64: 32, 12>}, {pipeline_mode = #tpu.pipeline_mode<synchronous>, transform_indices = @transform_2, window_bounds = array<i64: 32, 1>}, {pipeline_mode = #tpu.pipeline_mode<synchronous>, transform_indices = @transform_3, window_bounds = array<i64: 32, 96>}, {pipeline_mode = #tpu.pipeline_mode<synchronous>, transform_indices = @transform_4, window_bounds = array<i64: 32, 1>}, {pipeline_mode = #tpu.pipeline_mode<synchronous>, transform_indices = @transform_5, window_bounds = array<i64: 32, 4>}, {pipeline_mode = #tpu.pipeline_mode<synchronous>, transform_indices = @transform_6, window_bounds = array<i64: 32, 1>}, {pipeline_mode = #tpu.pipeline_mode<synchronous>, transform_indices = @transform_7, window_bounds = array<i64: 32, 96>}, {pipeline_mode = #tpu.pipeline_mode<synchronous>, transform_indices = @transform_8, window_bounds = array<i64: 32, 1>}, {pipeline_mode = #tpu.pipeline_mode<synchronous>, transform_indices = @transform_9, window_bounds = array<i64: 32, 96>}, {pipeline_mode = #tpu.pipeline_mode<synchronous>, transform_indices = @transform_10, window_bounds = array<i64: 32, 1>}, {pipeline_mode = #tpu.pipeline_mode<synchronous>, transform_indices = @transform_11, window_bounds = array<i64: 32, 96>}, {pipeline_mode = #tpu.pipeline_mode<synchronous>, transform_indices = @transform_12, window_bounds = array<i64: 32, 1>}, {pipeline_mode = #tpu.pipeline_mode<synchronous>, transform_indices = @transform_13, window_bounds = array<i64: 32, 96>}, {pipeline_mode = #tpu.pipeline_mode<synchronous>, transform_indices = @transform_14, window_bounds = array<i64: 32, 1>}, {pipeline_mode = #tpu.pipeline_mode<synchronous>, transform_indices = @transform_15, window_bounds = array<i64: 32, 96>}, {pipeline_mode = #tpu.pipeline_mode<synchronous>, transform_indices = @transform_16, window_bounds = array<i64: 32, 1>}, {pipeline_mode = #tpu.pipeline_mode<synchronous>, transform_indices = @transform_17, window_bounds = array<i64: 32, 96>}, {pipeline_mode = #tpu.pipeline_mode<synchronous>, transform_indices = @transform_18, window_bounds = array<i64: 32, 1>}, {pipeline_mode = #tpu.pipeline_mode<synchronous>, transform_indices = @transform_19, window_bounds = array<i64: 32, 96>}, {pipeline_mode = #tpu.pipeline_mode<synchronous>, transform_indices = @transform_20, window_bounds = array<i64: 32, 1>}, {pipeline_mode = #tpu.pipeline_mode<synchronous>, transform_indices = @transform_21, window_bounds = array<i64: 32, 96>}, {pipeline_mode = #tpu.pipeline_mode<synchronous>, transform_indices = @transform_22, window_bounds = array<i64: 32, 1>}, {pipeline_mode = #tpu.pipeline_mode<synchronous>, transform_indices = @transform_23, window_bounds = array<i64: 32, 96>}, {pipeline_mode = #tpu.pipeline_mode<synchronous>, transform_indices = @transform_24, window_bounds = array<i64: 32, 1>}, {pipeline_mode = #tpu.pipeline_mode<synchronous>, transform_indices = @transform_25, window_bounds = array<i64: 32, 96>}, {pipeline_mode = #tpu.pipeline_mode<synchronous>, transform_indices = @transform_26, window_bounds = array<i64: 32, 1>}, {pipeline_mode = #tpu.pipeline_mode<synchronous>, transform_indices = @transform_27, window_bounds = array<i64: 32, 96>}, {pipeline_mode = #tpu.pipeline_mode<synchronous>, transform_indices = @transform_28, window_bounds = array<i64: 32, 1>}, {pipeline_mode = #tpu.pipeline_mode<synchronous>, transform_indices = @transform_29, window_bounds = array<i64: 32, 96>}, {pipeline_mode = #tpu.pipeline_mode<synchronous>, transform_indices = @transform_30, window_bounds = array<i64: 32, 1>}, {pipeline_mode = #tpu.pipeline_mode<synchronous>, transform_indices = @transform_31, window_bounds = array<i64: 32, 96>}, {pipeline_mode = #tpu.pipeline_mode<synchronous>, transform_indices = @transform_32, window_bounds = array<i64: 32, 1>}, {pipeline_mode = #tpu.pipeline_mode<synchronous>, transform_indices = @transform_33, window_bounds = array<i64: 32, 96>}, {pipeline_mode = #tpu.pipeline_mode<synchronous>, transform_indices = @transform_34, window_bounds = array<i64: 32, 1>}, {pipeline_mode = #tpu.pipeline_mode<synchronous>, transform_indices = @transform_35, window_bounds = array<i64: 32, 96>}, {pipeline_mode = #tpu.pipeline_mode<synchronous>, transform_indices = @transform_36, window_bounds = array<i64: 32, 1>}, {pipeline_mode = #tpu.pipeline_mode<synchronous>, transform_indices = @transform_37, window_bounds = array<i64: 128, 64>}, {pipeline_mode = #tpu.pipeline_mode<synchronous>, transform_indices = @transform_38, window_bounds = array<i64: 32, 96>}, {pipeline_mode = #tpu.pipeline_mode<synchronous>, transform_indices = @transform_39, window_bounds = array<i64: 32, 1>}, {pipeline_mode = #tpu.pipeline_mode<synchronous>, transform_indices = @transform_40, window_bounds = array<i64: 64, 32>}, {pipeline_mode = #tpu.pipeline_mode<synchronous>, transform_indices = @transform_41, window_bounds = array<i64: 32, 96>}, {pipeline_mode = #tpu.pipeline_mode<synchronous>, transform_indices = @transform_42, window_bounds = array<i64: 32, 1>}, {pipeline_mode = #tpu.pipeline_mode<synchronous>, transform_indices = @transform_43, window_bounds = array<i64: 32, 16>}, {pipeline_mode = #tpu.pipeline_mode<synchronous>, transform_indices = @transform_44, window_bounds = array<i64: 32, 96>}, {pipeline_mode = #tpu.pipeline_mode<synchronous>, transform_indices = @transform_45, window_bounds = array<i64: 32, 1>}, {pipeline_mode = #tpu.pipeline_mode<synchronous>, transform_indices = @transform_46, window_bounds = array<i64: 16, 8>}, {pipeline_mode = #tpu.pipeline_mode<synchronous>, transform_indices = @transform_47, window_bounds = array<i64: 8, 16, 32>}, {pipeline_mode = #tpu.pipeline_mode<synchronous>, transform_indices = @transform_48, window_bounds = array<i64: 16, 1>}, {transform_indices = @transform_49, window_bounds = array<i64: 1, 16, 1>}]} {
    %c0 = arith.constant 0 : index
    %c0_0 = arith.constant 0 : index
    %c0_1 = arith.constant 0 : index
    %0 = vector.load %arg1[%c0, %c0_0, %c0_1] : memref<1x4x128xf32, #tpu.memory_space<vmem>>, vector<1x4x128xf32>
    %1 = vector.shape_cast %0 : vector<1x4x128xf32> to vector<4x128xf32>
    %c0_2 = arith.constant 0 : index
    %c0_3 = arith.constant 0 : index
    %2 = vector.load %arg2[%c0_2, %c0_3] : memref<32x12xf32, #tpu.memory_space<vmem>>, vector<32x12xf32>
    %c0_4 = arith.constant 0 : index
    %c0_5 = arith.constant 0 : index
    %3 = vector.load %arg3[%c0_4, %c0_5] : memref<32x1xf32, #tpu.memory_space<vmem>>, vector<32x1xf32>
    %c0_6 = arith.constant 0 : index
    %c0_7 = arith.constant 0 : index
    %4 = vector.load %arg4[%c0_6, %c0_7] : memref<32x96xf32, #tpu.memory_space<vmem>>, vector<32x96xf32>
    %c0_8 = arith.constant 0 : index
    %c0_9 = arith.constant 0 : index
    %5 = vector.load %arg5[%c0_8, %c0_9] : memref<32x1xf32, #tpu.memory_space<vmem>>, vector<32x1xf32>
    %c0_10 = arith.constant 0 : index
    %c0_11 = arith.constant 0 : index
    %6 = vector.load %arg6[%c0_10, %c0_11] : memref<32x4xf32, #tpu.memory_space<vmem>>, vector<32x4xf32>
    %c0_12 = arith.constant 0 : index
    %c0_13 = arith.constant 0 : index
    %7 = vector.load %arg7[%c0_12, %c0_13] : memref<32x1xf32, #tpu.memory_space<vmem>>, vector<32x1xf32>
    %cst = arith.constant dense<0.000000e+00> : vector<32x128xf32>
    %8 = tpu.matmul %6, %1, %cst {dimension_numbers = #tpu.dot_dimension_numbers<[1], [0], [0], [1], [0, 0, 1, 1], [], []>} : vector<32x4xf32>, vector<4x128xf32>, vector<32x128xf32> -> vector<32x128xf32>
    %9 = vector.broadcast %7 : vector<32x1xf32> to vector<32x128xf32>
    %10 = arith.addf %8, %9 : vector<32x128xf32>
    %cst_14 = arith.constant 0.000000e+00 : f32
    %11 = vector.broadcast %cst_14 : f32 to vector<32x128xf32>
    %12 = vector.extract_strided_slice %2 {offsets = [0, 0], sizes = [32, 4], strides = [1, 1]} : vector<32x12xf32> to vector<32x4xf32>
    %cst_15 = arith.constant 0.000000e+00 : f32
    %13 = vector.broadcast %cst_15 : f32 to vector<4x2xf32>
    %14 = vector.extract_strided_slice %1 {offsets = [0, 0], sizes = [4, 126], strides = [1, 1]} : vector<4x128xf32> to vector<4x126xf32>
    %15 = tpu.concatenate %13, %14 in 1 : vector<4x2xf32>, vector<4x126xf32> -> vector<4x128xf32>
    %cst_16 = arith.constant dense<0.000000e+00> : vector<32x128xf32>
    %16 = tpu.matmul %12, %15, %cst_16 {dimension_numbers = #tpu.dot_dimension_numbers<[1], [0], [0], [1], [0, 0, 1, 1], [], []>} : vector<32x4xf32>, vector<4x128xf32>, vector<32x128xf32> -> vector<32x128xf32>
    %17 = arith.addf %11, %16 : vector<32x128xf32>
    %18 = vector.extract_strided_slice %2 {offsets = [0, 4], sizes = [32, 4], strides = [1, 1]} : vector<32x12xf32> to vector<32x4xf32>
    %cst_17 = arith.constant 0.000000e+00 : f32
    %19 = vector.broadcast %cst_17 : f32 to vector<4x1xf32>
    %20 = vector.extract_strided_slice %1 {offsets = [0, 0], sizes = [4, 127], strides = [1, 1]} : vector<4x128xf32> to vector<4x127xf32>
    %21 = tpu.concatenate %19, %20 in 1 : vector<4x1xf32>, vector<4x127xf32> -> vector<4x128xf32>
    %cst_18 = arith.constant dense<0.000000e+00> : vector<32x128xf32>
    %22 = tpu.matmul %18, %21, %cst_18 {dimension_numbers = #tpu.dot_dimension_numbers<[1], [0], [0], [1], [0, 0, 1, 1], [], []>} : vector<32x4xf32>, vector<4x128xf32>, vector<32x128xf32> -> vector<32x128xf32>
    %23 = arith.addf %17, %22 : vector<32x128xf32>
    %24 = vector.extract_strided_slice %2 {offsets = [0, 8], sizes = [32, 4], strides = [1, 1]} : vector<32x12xf32> to vector<32x4xf32>
    %cst_19 = arith.constant dense<0.000000e+00> : vector<32x128xf32>
    %25 = tpu.matmul %24, %1, %cst_19 {dimension_numbers = #tpu.dot_dimension_numbers<[1], [0], [0], [1], [0, 0, 1, 1], [], []>} : vector<32x4xf32>, vector<4x128xf32>, vector<32x128xf32> -> vector<32x128xf32>
    %26 = arith.addf %23, %25 : vector<32x128xf32>
    %27 = vector.broadcast %3 : vector<32x1xf32> to vector<32x128xf32>
    %28 = arith.addf %26, %27 : vector<32x128xf32>
    %cst_20 = arith.constant 0.000000e+00 : f32
    %29 = vector.broadcast %cst_20 : f32 to vector<32x128xf32>
    %30 = arith.maximumf %28, %29 : vector<32x128xf32>
    %cst_21 = arith.constant 0.000000e+00 : f32
    %31 = vector.broadcast %cst_21 : f32 to vector<32x2xf32>
    %32 = vector.extract_strided_slice %30 {offsets = [0, 0], sizes = [32, 126], strides = [1, 1]} : vector<32x128xf32> to vector<32x126xf32>
    %33 = tpu.concatenate %31, %32 in 1 : vector<32x2xf32>, vector<32x126xf32> -> vector<32x128xf32>
    %cst_22 = arith.constant 0.000000e+00 : f32
    %34 = vector.broadcast %cst_22 : f32 to vector<32x1xf32>
    %35 = vector.extract_strided_slice %30 {offsets = [0, 0], sizes = [32, 127], strides = [1, 1]} : vector<32x128xf32> to vector<32x127xf32>
    %36 = tpu.concatenate %34, %35 in 1 : vector<32x1xf32>, vector<32x127xf32> -> vector<32x128xf32>
    %37 = tpu.concatenate %33, %36, %30 in 0 : vector<32x128xf32>, vector<32x128xf32>, vector<32x128xf32> -> vector<96x128xf32>
    %cst_23 = arith.constant dense<0.000000e+00> : vector<32x128xf32>
    %38 = tpu.matmul %4, %37, %cst_23 {dimension_numbers = #tpu.dot_dimension_numbers<[1], [0], [0], [1], [0, 0, 1, 1], [], []>} : vector<32x96xf32>, vector<96x128xf32>, vector<32x128xf32> -> vector<32x128xf32>
    %39 = vector.broadcast %5 : vector<32x1xf32> to vector<32x128xf32>
    %40 = arith.addf %38, %39 : vector<32x128xf32>
    %cst_24 = arith.constant 0.000000e+00 : f32
    %41 = vector.broadcast %cst_24 : f32 to vector<32x128xf32>
    %42 = arith.maximumf %40, %41 : vector<32x128xf32>
    %43 = arith.addf %42, %10 : vector<32x128xf32>
    %cst_25 = arith.constant 0.000000e+00 : f32
    %44 = vector.broadcast %cst_25 : f32 to vector<32x128xf32>
    %45 = arith.maximumf %43, %44 : vector<32x128xf32>
    %c0_26 = arith.constant 0 : index
    %c0_27 = arith.constant 0 : index
    %46 = vector.load %arg8[%c0_26, %c0_27] : memref<32x96xf32, #tpu.memory_space<vmem>>, vector<32x96xf32>
    %c0_28 = arith.constant 0 : index
    %c0_29 = arith.constant 0 : index
    %47 = vector.load %arg9[%c0_28, %c0_29] : memref<32x1xf32, #tpu.memory_space<vmem>>, vector<32x1xf32>
    %c0_30 = arith.constant 0 : index
    %c0_31 = arith.constant 0 : index
    %48 = vector.load %arg10[%c0_30, %c0_31] : memref<32x96xf32, #tpu.memory_space<vmem>>, vector<32x96xf32>
    %c0_32 = arith.constant 0 : index
    %c0_33 = arith.constant 0 : index
    %49 = vector.load %arg11[%c0_32, %c0_33] : memref<32x1xf32, #tpu.memory_space<vmem>>, vector<32x1xf32>
    %cst_34 = arith.constant 0.000000e+00 : f32
    %50 = vector.broadcast %cst_34 : f32 to vector<32x4xf32>
    %51 = vector.extract_strided_slice %45 {offsets = [0, 0], sizes = [32, 124], strides = [1, 1]} : vector<32x128xf32> to vector<32x124xf32>
    %52 = tpu.concatenate %50, %51 in 1 : vector<32x4xf32>, vector<32x124xf32> -> vector<32x128xf32>
    %cst_35 = arith.constant 0.000000e+00 : f32
    %53 = vector.broadcast %cst_35 : f32 to vector<32x2xf32>
    %54 = vector.extract_strided_slice %45 {offsets = [0, 0], sizes = [32, 126], strides = [1, 1]} : vector<32x128xf32> to vector<32x126xf32>
    %55 = tpu.concatenate %53, %54 in 1 : vector<32x2xf32>, vector<32x126xf32> -> vector<32x128xf32>
    %56 = tpu.concatenate %52, %55, %45 in 0 : vector<32x128xf32>, vector<32x128xf32>, vector<32x128xf32> -> vector<96x128xf32>
    %cst_36 = arith.constant dense<0.000000e+00> : vector<32x128xf32>
    %57 = tpu.matmul %46, %56, %cst_36 {dimension_numbers = #tpu.dot_dimension_numbers<[1], [0], [0], [1], [0, 0, 1, 1], [], []>} : vector<32x96xf32>, vector<96x128xf32>, vector<32x128xf32> -> vector<32x128xf32>
    %58 = vector.broadcast %47 : vector<32x1xf32> to vector<32x128xf32>
    %59 = arith.addf %57, %58 : vector<32x128xf32>
    %cst_37 = arith.constant 0.000000e+00 : f32
    %60 = vector.broadcast %cst_37 : f32 to vector<32x128xf32>
    %61 = arith.maximumf %59, %60 : vector<32x128xf32>
    %cst_38 = arith.constant 0.000000e+00 : f32
    %62 = vector.broadcast %cst_38 : f32 to vector<32x4xf32>
    %63 = vector.extract_strided_slice %61 {offsets = [0, 0], sizes = [32, 124], strides = [1, 1]} : vector<32x128xf32> to vector<32x124xf32>
    %64 = tpu.concatenate %62, %63 in 1 : vector<32x4xf32>, vector<32x124xf32> -> vector<32x128xf32>
    %cst_39 = arith.constant 0.000000e+00 : f32
    %65 = vector.broadcast %cst_39 : f32 to vector<32x2xf32>
    %66 = vector.extract_strided_slice %61 {offsets = [0, 0], sizes = [32, 126], strides = [1, 1]} : vector<32x128xf32> to vector<32x126xf32>
    %67 = tpu.concatenate %65, %66 in 1 : vector<32x2xf32>, vector<32x126xf32> -> vector<32x128xf32>
    %68 = tpu.concatenate %64, %67, %61 in 0 : vector<32x128xf32>, vector<32x128xf32>, vector<32x128xf32> -> vector<96x128xf32>
    %cst_40 = arith.constant dense<0.000000e+00> : vector<32x128xf32>
    %69 = tpu.matmul %48, %68, %cst_40 {dimension_numbers = #tpu.dot_dimension_numbers<[1], [0], [0], [1], [0, 0, 1, 1], [], []>} : vector<32x96xf32>, vector<96x128xf32>, vector<32x128xf32> -> vector<32x128xf32>
    %70 = vector.broadcast %49 : vector<32x1xf32> to vector<32x128xf32>
    %71 = arith.addf %69, %70 : vector<32x128xf32>
    %cst_41 = arith.constant 0.000000e+00 : f32
    %72 = vector.broadcast %cst_41 : f32 to vector<32x128xf32>
    %73 = arith.maximumf %71, %72 : vector<32x128xf32>
    %74 = arith.addf %73, %45 : vector<32x128xf32>
    %cst_42 = arith.constant 0.000000e+00 : f32
    %75 = vector.broadcast %cst_42 : f32 to vector<32x128xf32>
    %76 = arith.maximumf %74, %75 : vector<32x128xf32>
    %c0_43 = arith.constant 0 : index
    %c0_44 = arith.constant 0 : index
    %77 = vector.load %arg12[%c0_43, %c0_44] : memref<32x96xf32, #tpu.memory_space<vmem>>, vector<32x96xf32>
    %c0_45 = arith.constant 0 : index
    %c0_46 = arith.constant 0 : index
    %78 = vector.load %arg13[%c0_45, %c0_46] : memref<32x1xf32, #tpu.memory_space<vmem>>, vector<32x1xf32>
    %c0_47 = arith.constant 0 : index
    %c0_48 = arith.constant 0 : index
    %79 = vector.load %arg14[%c0_47, %c0_48] : memref<32x96xf32, #tpu.memory_space<vmem>>, vector<32x96xf32>
    %c0_49 = arith.constant 0 : index
    %c0_50 = arith.constant 0 : index
    %80 = vector.load %arg15[%c0_49, %c0_50] : memref<32x1xf32, #tpu.memory_space<vmem>>, vector<32x1xf32>
    %cst_51 = arith.constant 0.000000e+00 : f32
    %81 = vector.broadcast %cst_51 : f32 to vector<32x8xf32>
    %82 = vector.extract_strided_slice %76 {offsets = [0, 0], sizes = [32, 120], strides = [1, 1]} : vector<32x128xf32> to vector<32x120xf32>
    %83 = tpu.concatenate %81, %82 in 1 : vector<32x8xf32>, vector<32x120xf32> -> vector<32x128xf32>
    %cst_52 = arith.constant 0.000000e+00 : f32
    %84 = vector.broadcast %cst_52 : f32 to vector<32x4xf32>
    %85 = vector.extract_strided_slice %76 {offsets = [0, 0], sizes = [32, 124], strides = [1, 1]} : vector<32x128xf32> to vector<32x124xf32>
    %86 = tpu.concatenate %84, %85 in 1 : vector<32x4xf32>, vector<32x124xf32> -> vector<32x128xf32>
    %87 = tpu.concatenate %83, %86, %76 in 0 : vector<32x128xf32>, vector<32x128xf32>, vector<32x128xf32> -> vector<96x128xf32>
    %cst_53 = arith.constant dense<0.000000e+00> : vector<32x128xf32>
    %88 = tpu.matmul %77, %87, %cst_53 {dimension_numbers = #tpu.dot_dimension_numbers<[1], [0], [0], [1], [0, 0, 1, 1], [], []>} : vector<32x96xf32>, vector<96x128xf32>, vector<32x128xf32> -> vector<32x128xf32>
    %89 = vector.broadcast %78 : vector<32x1xf32> to vector<32x128xf32>
    %90 = arith.addf %88, %89 : vector<32x128xf32>
    %cst_54 = arith.constant 0.000000e+00 : f32
    %91 = vector.broadcast %cst_54 : f32 to vector<32x128xf32>
    %92 = arith.maximumf %90, %91 : vector<32x128xf32>
    %cst_55 = arith.constant 0.000000e+00 : f32
    %93 = vector.broadcast %cst_55 : f32 to vector<32x8xf32>
    %94 = vector.extract_strided_slice %92 {offsets = [0, 0], sizes = [32, 120], strides = [1, 1]} : vector<32x128xf32> to vector<32x120xf32>
    %95 = tpu.concatenate %93, %94 in 1 : vector<32x8xf32>, vector<32x120xf32> -> vector<32x128xf32>
    %cst_56 = arith.constant 0.000000e+00 : f32
    %96 = vector.broadcast %cst_56 : f32 to vector<32x4xf32>
    %97 = vector.extract_strided_slice %92 {offsets = [0, 0], sizes = [32, 124], strides = [1, 1]} : vector<32x128xf32> to vector<32x124xf32>
    %98 = tpu.concatenate %96, %97 in 1 : vector<32x4xf32>, vector<32x124xf32> -> vector<32x128xf32>
    %99 = tpu.concatenate %95, %98, %92 in 0 : vector<32x128xf32>, vector<32x128xf32>, vector<32x128xf32> -> vector<96x128xf32>
    %cst_57 = arith.constant dense<0.000000e+00> : vector<32x128xf32>
    %100 = tpu.matmul %79, %99, %cst_57 {dimension_numbers = #tpu.dot_dimension_numbers<[1], [0], [0], [1], [0, 0, 1, 1], [], []>} : vector<32x96xf32>, vector<96x128xf32>, vector<32x128xf32> -> vector<32x128xf32>
    %101 = vector.broadcast %80 : vector<32x1xf32> to vector<32x128xf32>
    %102 = arith.addf %100, %101 : vector<32x128xf32>
    %cst_58 = arith.constant 0.000000e+00 : f32
    %103 = vector.broadcast %cst_58 : f32 to vector<32x128xf32>
    %104 = arith.maximumf %102, %103 : vector<32x128xf32>
    %105 = arith.addf %104, %76 : vector<32x128xf32>
    %cst_59 = arith.constant 0.000000e+00 : f32
    %106 = vector.broadcast %cst_59 : f32 to vector<32x128xf32>
    %107 = arith.maximumf %105, %106 : vector<32x128xf32>
    %c0_60 = arith.constant 0 : index
    %c0_61 = arith.constant 0 : index
    %108 = vector.load %arg16[%c0_60, %c0_61] : memref<32x96xf32, #tpu.memory_space<vmem>>, vector<32x96xf32>
    %c0_62 = arith.constant 0 : index
    %c0_63 = arith.constant 0 : index
    %109 = vector.load %arg17[%c0_62, %c0_63] : memref<32x1xf32, #tpu.memory_space<vmem>>, vector<32x1xf32>
    %c0_64 = arith.constant 0 : index
    %c0_65 = arith.constant 0 : index
    %110 = vector.load %arg18[%c0_64, %c0_65] : memref<32x96xf32, #tpu.memory_space<vmem>>, vector<32x96xf32>
    %c0_66 = arith.constant 0 : index
    %c0_67 = arith.constant 0 : index
    %111 = vector.load %arg19[%c0_66, %c0_67] : memref<32x1xf32, #tpu.memory_space<vmem>>, vector<32x1xf32>
    %cst_68 = arith.constant 0.000000e+00 : f32
    %112 = vector.broadcast %cst_68 : f32 to vector<32x16xf32>
    %113 = vector.extract_strided_slice %107 {offsets = [0, 0], sizes = [32, 112], strides = [1, 1]} : vector<32x128xf32> to vector<32x112xf32>
    %114 = tpu.concatenate %112, %113 in 1 : vector<32x16xf32>, vector<32x112xf32> -> vector<32x128xf32>
    %cst_69 = arith.constant 0.000000e+00 : f32
    %115 = vector.broadcast %cst_69 : f32 to vector<32x8xf32>
    %116 = vector.extract_strided_slice %107 {offsets = [0, 0], sizes = [32, 120], strides = [1, 1]} : vector<32x128xf32> to vector<32x120xf32>
    %117 = tpu.concatenate %115, %116 in 1 : vector<32x8xf32>, vector<32x120xf32> -> vector<32x128xf32>
    %118 = tpu.concatenate %114, %117, %107 in 0 : vector<32x128xf32>, vector<32x128xf32>, vector<32x128xf32> -> vector<96x128xf32>
    %cst_70 = arith.constant dense<0.000000e+00> : vector<32x128xf32>
    %119 = tpu.matmul %108, %118, %cst_70 {dimension_numbers = #tpu.dot_dimension_numbers<[1], [0], [0], [1], [0, 0, 1, 1], [], []>} : vector<32x96xf32>, vector<96x128xf32>, vector<32x128xf32> -> vector<32x128xf32>
    %120 = vector.broadcast %109 : vector<32x1xf32> to vector<32x128xf32>
    %121 = arith.addf %119, %120 : vector<32x128xf32>
    %cst_71 = arith.constant 0.000000e+00 : f32
    %122 = vector.broadcast %cst_71 : f32 to vector<32x128xf32>
    %123 = arith.maximumf %121, %122 : vector<32x128xf32>
    %cst_72 = arith.constant 0.000000e+00 : f32
    %124 = vector.broadcast %cst_72 : f32 to vector<32x16xf32>
    %125 = vector.extract_strided_slice %123 {offsets = [0, 0], sizes = [32, 112], strides = [1, 1]} : vector<32x128xf32> to vector<32x112xf32>
    %126 = tpu.concatenate %124, %125 in 1 : vector<32x16xf32>, vector<32x112xf32> -> vector<32x128xf32>
    %cst_73 = arith.constant 0.000000e+00 : f32
    %127 = vector.broadcast %cst_73 : f32 to vector<32x8xf32>
    %128 = vector.extract_strided_slice %123 {offsets = [0, 0], sizes = [32, 120], strides = [1, 1]} : vector<32x128xf32> to vector<32x120xf32>
    %129 = tpu.concatenate %127, %128 in 1 : vector<32x8xf32>, vector<32x120xf32> -> vector<32x128xf32>
    %130 = tpu.concatenate %126, %129, %123 in 0 : vector<32x128xf32>, vector<32x128xf32>, vector<32x128xf32> -> vector<96x128xf32>
    %cst_74 = arith.constant dense<0.000000e+00> : vector<32x128xf32>
    %131 = tpu.matmul %110, %130, %cst_74 {dimension_numbers = #tpu.dot_dimension_numbers<[1], [0], [0], [1], [0, 0, 1, 1], [], []>} : vector<32x96xf32>, vector<96x128xf32>, vector<32x128xf32> -> vector<32x128xf32>
    %132 = vector.broadcast %111 : vector<32x1xf32> to vector<32x128xf32>
    %133 = arith.addf %131, %132 : vector<32x128xf32>
    %cst_75 = arith.constant 0.000000e+00 : f32
    %134 = vector.broadcast %cst_75 : f32 to vector<32x128xf32>
    %135 = arith.maximumf %133, %134 : vector<32x128xf32>
    %136 = arith.addf %135, %107 : vector<32x128xf32>
    %cst_76 = arith.constant 0.000000e+00 : f32
    %137 = vector.broadcast %cst_76 : f32 to vector<32x128xf32>
    %138 = arith.maximumf %136, %137 : vector<32x128xf32>
    %c0_77 = arith.constant 0 : index
    %c0_78 = arith.constant 0 : index
    %139 = vector.load %arg20[%c0_77, %c0_78] : memref<32x96xf32, #tpu.memory_space<vmem>>, vector<32x96xf32>
    %c0_79 = arith.constant 0 : index
    %c0_80 = arith.constant 0 : index
    %140 = vector.load %arg21[%c0_79, %c0_80] : memref<32x1xf32, #tpu.memory_space<vmem>>, vector<32x1xf32>
    %c0_81 = arith.constant 0 : index
    %c0_82 = arith.constant 0 : index
    %141 = vector.load %arg22[%c0_81, %c0_82] : memref<32x96xf32, #tpu.memory_space<vmem>>, vector<32x96xf32>
    %c0_83 = arith.constant 0 : index
    %c0_84 = arith.constant 0 : index
    %142 = vector.load %arg23[%c0_83, %c0_84] : memref<32x1xf32, #tpu.memory_space<vmem>>, vector<32x1xf32>
    %cst_85 = arith.constant 0.000000e+00 : f32
    %143 = vector.broadcast %cst_85 : f32 to vector<32x32xf32>
    %144 = vector.extract_strided_slice %138 {offsets = [0, 0], sizes = [32, 96], strides = [1, 1]} : vector<32x128xf32> to vector<32x96xf32>
    %145 = tpu.concatenate %143, %144 in 1 : vector<32x32xf32>, vector<32x96xf32> -> vector<32x128xf32>
    %cst_86 = arith.constant 0.000000e+00 : f32
    %146 = vector.broadcast %cst_86 : f32 to vector<32x16xf32>
    %147 = vector.extract_strided_slice %138 {offsets = [0, 0], sizes = [32, 112], strides = [1, 1]} : vector<32x128xf32> to vector<32x112xf32>
    %148 = tpu.concatenate %146, %147 in 1 : vector<32x16xf32>, vector<32x112xf32> -> vector<32x128xf32>
    %149 = tpu.concatenate %145, %148, %138 in 0 : vector<32x128xf32>, vector<32x128xf32>, vector<32x128xf32> -> vector<96x128xf32>
    %cst_87 = arith.constant dense<0.000000e+00> : vector<32x128xf32>
    %150 = tpu.matmul %139, %149, %cst_87 {dimension_numbers = #tpu.dot_dimension_numbers<[1], [0], [0], [1], [0, 0, 1, 1], [], []>} : vector<32x96xf32>, vector<96x128xf32>, vector<32x128xf32> -> vector<32x128xf32>
    %151 = vector.broadcast %140 : vector<32x1xf32> to vector<32x128xf32>
    %152 = arith.addf %150, %151 : vector<32x128xf32>
    %cst_88 = arith.constant 0.000000e+00 : f32
    %153 = vector.broadcast %cst_88 : f32 to vector<32x128xf32>
    %154 = arith.maximumf %152, %153 : vector<32x128xf32>
    %cst_89 = arith.constant 0.000000e+00 : f32
    %155 = vector.broadcast %cst_89 : f32 to vector<32x32xf32>
    %156 = vector.extract_strided_slice %154 {offsets = [0, 0], sizes = [32, 96], strides = [1, 1]} : vector<32x128xf32> to vector<32x96xf32>
    %157 = tpu.concatenate %155, %156 in 1 : vector<32x32xf32>, vector<32x96xf32> -> vector<32x128xf32>
    %cst_90 = arith.constant 0.000000e+00 : f32
    %158 = vector.broadcast %cst_90 : f32 to vector<32x16xf32>
    %159 = vector.extract_strided_slice %154 {offsets = [0, 0], sizes = [32, 112], strides = [1, 1]} : vector<32x128xf32> to vector<32x112xf32>
    %160 = tpu.concatenate %158, %159 in 1 : vector<32x16xf32>, vector<32x112xf32> -> vector<32x128xf32>
    %161 = tpu.concatenate %157, %160, %154 in 0 : vector<32x128xf32>, vector<32x128xf32>, vector<32x128xf32> -> vector<96x128xf32>
    %cst_91 = arith.constant dense<0.000000e+00> : vector<32x128xf32>
    %162 = tpu.matmul %141, %161, %cst_91 {dimension_numbers = #tpu.dot_dimension_numbers<[1], [0], [0], [1], [0, 0, 1, 1], [], []>} : vector<32x96xf32>, vector<96x128xf32>, vector<32x128xf32> -> vector<32x128xf32>
    %163 = vector.broadcast %142 : vector<32x1xf32> to vector<32x128xf32>
    %164 = arith.addf %162, %163 : vector<32x128xf32>
    %cst_92 = arith.constant 0.000000e+00 : f32
    %165 = vector.broadcast %cst_92 : f32 to vector<32x128xf32>
    %166 = arith.maximumf %164, %165 : vector<32x128xf32>
    %167 = arith.addf %166, %138 : vector<32x128xf32>
    %cst_93 = arith.constant 0.000000e+00 : f32
    %168 = vector.broadcast %cst_93 : f32 to vector<32x128xf32>
    %169 = arith.maximumf %167, %168 : vector<32x128xf32>
    %c0_94 = arith.constant 0 : index
    %c0_95 = arith.constant 0 : index
    %170 = vector.load %arg24[%c0_94, %c0_95] : memref<32x96xf32, #tpu.memory_space<vmem>>, vector<32x96xf32>
    %c0_96 = arith.constant 0 : index
    %c0_97 = arith.constant 0 : index
    %171 = vector.load %arg25[%c0_96, %c0_97] : memref<32x1xf32, #tpu.memory_space<vmem>>, vector<32x1xf32>
    %c0_98 = arith.constant 0 : index
    %c0_99 = arith.constant 0 : index
    %172 = vector.load %arg26[%c0_98, %c0_99] : memref<32x96xf32, #tpu.memory_space<vmem>>, vector<32x96xf32>
    %c0_100 = arith.constant 0 : index
    %c0_101 = arith.constant 0 : index
    %173 = vector.load %arg27[%c0_100, %c0_101] : memref<32x1xf32, #tpu.memory_space<vmem>>, vector<32x1xf32>
    %cst_102 = arith.constant 0.000000e+00 : f32
    %174 = vector.broadcast %cst_102 : f32 to vector<32x64xf32>
    %175 = vector.extract_strided_slice %169 {offsets = [0, 0], sizes = [32, 64], strides = [1, 1]} : vector<32x128xf32> to vector<32x64xf32>
    %176 = tpu.concatenate %174, %175 in 1 : vector<32x64xf32>, vector<32x64xf32> -> vector<32x128xf32>
    %cst_103 = arith.constant 0.000000e+00 : f32
    %177 = vector.broadcast %cst_103 : f32 to vector<32x32xf32>
    %178 = vector.extract_strided_slice %169 {offsets = [0, 0], sizes = [32, 96], strides = [1, 1]} : vector<32x128xf32> to vector<32x96xf32>
    %179 = tpu.concatenate %177, %178 in 1 : vector<32x32xf32>, vector<32x96xf32> -> vector<32x128xf32>
    %180 = tpu.concatenate %176, %179, %169 in 0 : vector<32x128xf32>, vector<32x128xf32>, vector<32x128xf32> -> vector<96x128xf32>
    %cst_104 = arith.constant dense<0.000000e+00> : vector<32x128xf32>
    %181 = tpu.matmul %170, %180, %cst_104 {dimension_numbers = #tpu.dot_dimension_numbers<[1], [0], [0], [1], [0, 0, 1, 1], [], []>} : vector<32x96xf32>, vector<96x128xf32>, vector<32x128xf32> -> vector<32x128xf32>
    %182 = vector.broadcast %171 : vector<32x1xf32> to vector<32x128xf32>
    %183 = arith.addf %181, %182 : vector<32x128xf32>
    %cst_105 = arith.constant 0.000000e+00 : f32
    %184 = vector.broadcast %cst_105 : f32 to vector<32x128xf32>
    %185 = arith.maximumf %183, %184 : vector<32x128xf32>
    %cst_106 = arith.constant 0.000000e+00 : f32
    %186 = vector.broadcast %cst_106 : f32 to vector<32x64xf32>
    %187 = vector.extract_strided_slice %185 {offsets = [0, 0], sizes = [32, 64], strides = [1, 1]} : vector<32x128xf32> to vector<32x64xf32>
    %188 = tpu.concatenate %186, %187 in 1 : vector<32x64xf32>, vector<32x64xf32> -> vector<32x128xf32>
    %cst_107 = arith.constant 0.000000e+00 : f32
    %189 = vector.broadcast %cst_107 : f32 to vector<32x32xf32>
    %190 = vector.extract_strided_slice %185 {offsets = [0, 0], sizes = [32, 96], strides = [1, 1]} : vector<32x128xf32> to vector<32x96xf32>
    %191 = tpu.concatenate %189, %190 in 1 : vector<32x32xf32>, vector<32x96xf32> -> vector<32x128xf32>
    %192 = tpu.concatenate %188, %191, %185 in 0 : vector<32x128xf32>, vector<32x128xf32>, vector<32x128xf32> -> vector<96x128xf32>
    %cst_108 = arith.constant dense<0.000000e+00> : vector<32x128xf32>
    %193 = tpu.matmul %172, %192, %cst_108 {dimension_numbers = #tpu.dot_dimension_numbers<[1], [0], [0], [1], [0, 0, 1, 1], [], []>} : vector<32x96xf32>, vector<96x128xf32>, vector<32x128xf32> -> vector<32x128xf32>
    %194 = vector.broadcast %173 : vector<32x1xf32> to vector<32x128xf32>
    %195 = arith.addf %193, %194 : vector<32x128xf32>
    %cst_109 = arith.constant 0.000000e+00 : f32
    %196 = vector.broadcast %cst_109 : f32 to vector<32x128xf32>
    %197 = arith.maximumf %195, %196 : vector<32x128xf32>
    %198 = arith.addf %197, %169 : vector<32x128xf32>
    %cst_110 = arith.constant 0.000000e+00 : f32
    %199 = vector.broadcast %cst_110 : f32 to vector<32x128xf32>
    %200 = arith.maximumf %198, %199 : vector<32x128xf32>
    %c0_111 = arith.constant 0 : index
    %c0_112 = arith.constant 0 : index
    %201 = vector.load %arg28[%c0_111, %c0_112] : memref<32x96xf32, #tpu.memory_space<vmem>>, vector<32x96xf32>
    %c0_113 = arith.constant 0 : index
    %c0_114 = arith.constant 0 : index
    %202 = vector.load %arg29[%c0_113, %c0_114] : memref<32x1xf32, #tpu.memory_space<vmem>>, vector<32x1xf32>
    %c0_115 = arith.constant 0 : index
    %c0_116 = arith.constant 0 : index
    %203 = vector.load %arg30[%c0_115, %c0_116] : memref<32x96xf32, #tpu.memory_space<vmem>>, vector<32x96xf32>
    %c0_117 = arith.constant 0 : index
    %c0_118 = arith.constant 0 : index
    %204 = vector.load %arg31[%c0_117, %c0_118] : memref<32x1xf32, #tpu.memory_space<vmem>>, vector<32x1xf32>
    %cst_119 = arith.constant 0.000000e+00 : f32
    %205 = vector.broadcast %cst_119 : f32 to vector<32x128xf32>
    %cst_120 = arith.constant 0.000000e+00 : f32
    %206 = vector.broadcast %cst_120 : f32 to vector<32x64xf32>
    %207 = vector.extract_strided_slice %200 {offsets = [0, 0], sizes = [32, 64], strides = [1, 1]} : vector<32x128xf32> to vector<32x64xf32>
    %208 = tpu.concatenate %206, %207 in 1 : vector<32x64xf32>, vector<32x64xf32> -> vector<32x128xf32>
    %209 = tpu.concatenate %205, %208, %200 in 0 : vector<32x128xf32>, vector<32x128xf32>, vector<32x128xf32> -> vector<96x128xf32>
    %cst_121 = arith.constant dense<0.000000e+00> : vector<32x128xf32>
    %210 = tpu.matmul %201, %209, %cst_121 {dimension_numbers = #tpu.dot_dimension_numbers<[1], [0], [0], [1], [0, 0, 1, 1], [], []>} : vector<32x96xf32>, vector<96x128xf32>, vector<32x128xf32> -> vector<32x128xf32>
    %211 = vector.broadcast %202 : vector<32x1xf32> to vector<32x128xf32>
    %212 = arith.addf %210, %211 : vector<32x128xf32>
    %cst_122 = arith.constant 0.000000e+00 : f32
    %213 = vector.broadcast %cst_122 : f32 to vector<32x128xf32>
    %214 = arith.maximumf %212, %213 : vector<32x128xf32>
    %cst_123 = arith.constant 0.000000e+00 : f32
    %215 = vector.broadcast %cst_123 : f32 to vector<32x128xf32>
    %cst_124 = arith.constant 0.000000e+00 : f32
    %216 = vector.broadcast %cst_124 : f32 to vector<32x64xf32>
    %217 = vector.extract_strided_slice %214 {offsets = [0, 0], sizes = [32, 64], strides = [1, 1]} : vector<32x128xf32> to vector<32x64xf32>
    %218 = tpu.concatenate %216, %217 in 1 : vector<32x64xf32>, vector<32x64xf32> -> vector<32x128xf32>
    %219 = tpu.concatenate %215, %218, %214 in 0 : vector<32x128xf32>, vector<32x128xf32>, vector<32x128xf32> -> vector<96x128xf32>
    %cst_125 = arith.constant dense<0.000000e+00> : vector<32x128xf32>
    %220 = tpu.matmul %203, %219, %cst_125 {dimension_numbers = #tpu.dot_dimension_numbers<[1], [0], [0], [1], [0, 0, 1, 1], [], []>} : vector<32x96xf32>, vector<96x128xf32>, vector<32x128xf32> -> vector<32x128xf32>
    %221 = vector.broadcast %204 : vector<32x1xf32> to vector<32x128xf32>
    %222 = arith.addf %220, %221 : vector<32x128xf32>
    %cst_126 = arith.constant 0.000000e+00 : f32
    %223 = vector.broadcast %cst_126 : f32 to vector<32x128xf32>
    %224 = arith.maximumf %222, %223 : vector<32x128xf32>
    %225 = arith.addf %224, %200 : vector<32x128xf32>
    %cst_127 = arith.constant 0.000000e+00 : f32
    %226 = vector.broadcast %cst_127 : f32 to vector<32x128xf32>
    %227 = arith.maximumf %225, %226 : vector<32x128xf32>
    %c0_128 = arith.constant 0 : index
    %c0_129 = arith.constant 0 : index
    %228 = vector.load %arg32[%c0_128, %c0_129] : memref<32x96xf32, #tpu.memory_space<vmem>>, vector<32x96xf32>
    %c0_130 = arith.constant 0 : index
    %c0_131 = arith.constant 0 : index
    %229 = vector.load %arg33[%c0_130, %c0_131] : memref<32x1xf32, #tpu.memory_space<vmem>>, vector<32x1xf32>
    %c0_132 = arith.constant 0 : index
    %c0_133 = arith.constant 0 : index
    %230 = vector.load %arg34[%c0_132, %c0_133] : memref<32x96xf32, #tpu.memory_space<vmem>>, vector<32x96xf32>
    %c0_134 = arith.constant 0 : index
    %c0_135 = arith.constant 0 : index
    %231 = vector.load %arg35[%c0_134, %c0_135] : memref<32x1xf32, #tpu.memory_space<vmem>>, vector<32x1xf32>
    %cst_136 = arith.constant 0.000000e+00 : f32
    %232 = vector.broadcast %cst_136 : f32 to vector<32x128xf32>
    %cst_137 = arith.constant 0.000000e+00 : f32
    %233 = vector.broadcast %cst_137 : f32 to vector<32x128xf32>
    %234 = tpu.concatenate %232, %233, %227 in 0 : vector<32x128xf32>, vector<32x128xf32>, vector<32x128xf32> -> vector<96x128xf32>
    %cst_138 = arith.constant dense<0.000000e+00> : vector<32x128xf32>
    %235 = tpu.matmul %228, %234, %cst_138 {dimension_numbers = #tpu.dot_dimension_numbers<[1], [0], [0], [1], [0, 0, 1, 1], [], []>} : vector<32x96xf32>, vector<96x128xf32>, vector<32x128xf32> -> vector<32x128xf32>
    %236 = vector.broadcast %229 : vector<32x1xf32> to vector<32x128xf32>
    %237 = arith.addf %235, %236 : vector<32x128xf32>
    %cst_139 = arith.constant 0.000000e+00 : f32
    %238 = vector.broadcast %cst_139 : f32 to vector<32x128xf32>
    %239 = arith.maximumf %237, %238 : vector<32x128xf32>
    %cst_140 = arith.constant 0.000000e+00 : f32
    %240 = vector.broadcast %cst_140 : f32 to vector<32x128xf32>
    %cst_141 = arith.constant 0.000000e+00 : f32
    %241 = vector.broadcast %cst_141 : f32 to vector<32x128xf32>
    %242 = tpu.concatenate %240, %241, %239 in 0 : vector<32x128xf32>, vector<32x128xf32>, vector<32x128xf32> -> vector<96x128xf32>
    %cst_142 = arith.constant dense<0.000000e+00> : vector<32x128xf32>
    %243 = tpu.matmul %230, %242, %cst_142 {dimension_numbers = #tpu.dot_dimension_numbers<[1], [0], [0], [1], [0, 0, 1, 1], [], []>} : vector<32x96xf32>, vector<96x128xf32>, vector<32x128xf32> -> vector<32x128xf32>
    %244 = vector.broadcast %231 : vector<32x1xf32> to vector<32x128xf32>
    %245 = arith.addf %243, %244 : vector<32x128xf32>
    %cst_143 = arith.constant 0.000000e+00 : f32
    %246 = vector.broadcast %cst_143 : f32 to vector<32x128xf32>
    %247 = arith.maximumf %245, %246 : vector<32x128xf32>
    %248 = arith.addf %247, %227 : vector<32x128xf32>
    %cst_144 = arith.constant 0.000000e+00 : f32
    %249 = vector.broadcast %cst_144 : f32 to vector<32x128xf32>
    %250 = arith.maximumf %248, %249 : vector<32x128xf32>
    %c0_145 = arith.constant 0 : index
    %c0_146 = arith.constant 0 : index
    %251 = vector.load %arg36[%c0_145, %c0_146] : memref<32x96xf32, #tpu.memory_space<vmem>>, vector<32x96xf32>
    %c0_147 = arith.constant 0 : index
    %c0_148 = arith.constant 0 : index
    %252 = vector.load %arg37[%c0_147, %c0_148] : memref<32x1xf32, #tpu.memory_space<vmem>>, vector<32x1xf32>
    %c0_149 = arith.constant 0 : index
    %c0_150 = arith.constant 0 : index
    %253 = vector.load %arg38[%c0_149, %c0_150] : memref<128x64xf32, #tpu.memory_space<vmem>>, vector<128x64xf32>
    %cst_151 = arith.constant 0.000000e+00 : f32
    %254 = vector.broadcast %cst_151 : f32 to vector<32x1xf32>
    %255 = vector.extract_strided_slice %250 {offsets = [0, 0], sizes = [32, 127], strides = [1, 1]} : vector<32x128xf32> to vector<32x127xf32>
    %256 = tpu.concatenate %254, %255 in 1 : vector<32x1xf32>, vector<32x127xf32> -> vector<32x128xf32>
    %cst_152 = arith.constant 0.000000e+00 : f32
    %257 = vector.broadcast %cst_152 : f32 to vector<32x1xf32>
    %258 = vector.extract_strided_slice %250 {offsets = [0, 1], sizes = [32, 127], strides = [1, 1]} : vector<32x128xf32> to vector<32x127xf32>
    %259 = tpu.concatenate %258, %257 in 1 : vector<32x127xf32>, vector<32x1xf32> -> vector<32x128xf32>
    %260 = tpu.concatenate %256, %250, %259 in 0 : vector<32x128xf32>, vector<32x128xf32>, vector<32x128xf32> -> vector<96x128xf32>
    %cst_153 = arith.constant dense<0.000000e+00> : vector<32x128xf32>
    %261 = tpu.matmul %251, %260, %cst_153 {dimension_numbers = #tpu.dot_dimension_numbers<[1], [0], [0], [1], [0, 0, 1, 1], [], []>} : vector<32x96xf32>, vector<96x128xf32>, vector<32x128xf32> -> vector<32x128xf32>
    %262 = vector.broadcast %252 : vector<32x1xf32> to vector<32x128xf32>
    %263 = arith.addf %261, %262 : vector<32x128xf32>
    %cst_154 = arith.constant 0.000000e+00 : f32
    %264 = vector.broadcast %cst_154 : f32 to vector<32x128xf32>
    %265 = arith.cmpf oge, %263, %264 : vector<32x128xf32>
    %cst_155 = arith.constant 0.00999999977 : f32
    %266 = vector.broadcast %cst_155 : f32 to vector<32x128xf32>
    %267 = arith.mulf %266, %263 : vector<32x128xf32>
    %268 = arith.select %265, %263, %267 : vector<32x128xi1>, vector<32x128xf32>
    %cst_156 = arith.constant 0.000000e+00 : f32
    %269 = vector.broadcast %cst_156 : f32 to vector<32x1xf32>
    %270 = vector.extract_strided_slice %268 {offsets = [0, 1], sizes = [32, 127], strides = [1, 1]} : vector<32x128xf32> to vector<32x127xf32>
    %271 = tpu.concatenate %270, %269 in 1 : vector<32x127xf32>, vector<32x1xf32> -> vector<32x128xf32>
    %272 = arith.maximumf %268, %271 : vector<32x128xf32>
    %cst_157 = arith.constant dense<0.000000e+00> : vector<32x64xf32>
    %273 = tpu.matmul %272, %253, %cst_157 {dimension_numbers = #tpu.dot_dimension_numbers<[1], [0], [0], [1], [0, 0, 1, 1], [], []>} : vector<32x128xf32>, vector<128x64xf32>, vector<32x64xf32> -> vector<32x64xf32>
    %c0_158 = arith.constant 0 : index
    %c0_159 = arith.constant 0 : index
    %274 = vector.load %arg39[%c0_158, %c0_159] : memref<32x96xf32, #tpu.memory_space<vmem>>, vector<32x96xf32>
    %c0_160 = arith.constant 0 : index
    %c0_161 = arith.constant 0 : index
    %275 = vector.load %arg40[%c0_160, %c0_161] : memref<32x1xf32, #tpu.memory_space<vmem>>, vector<32x1xf32>
    %c0_162 = arith.constant 0 : index
    %c0_163 = arith.constant 0 : index
    %276 = vector.load %arg41[%c0_162, %c0_163] : memref<64x32xf32, #tpu.memory_space<vmem>>, vector<64x32xf32>
    %cst_164 = arith.constant 0.000000e+00 : f32
    %277 = vector.broadcast %cst_164 : f32 to vector<32x1xf32>
    %278 = vector.extract_strided_slice %273 {offsets = [0, 0], sizes = [32, 63], strides = [1, 1]} : vector<32x64xf32> to vector<32x63xf32>
    %279 = tpu.concatenate %277, %278 in 1 : vector<32x1xf32>, vector<32x63xf32> -> vector<32x64xf32>
    %cst_165 = arith.constant 0.000000e+00 : f32
    %280 = vector.broadcast %cst_165 : f32 to vector<32x1xf32>
    %281 = vector.extract_strided_slice %273 {offsets = [0, 1], sizes = [32, 63], strides = [1, 1]} : vector<32x64xf32> to vector<32x63xf32>
    %282 = tpu.concatenate %281, %280 in 1 : vector<32x63xf32>, vector<32x1xf32> -> vector<32x64xf32>
    %283 = tpu.concatenate %279, %273, %282 in 0 : vector<32x64xf32>, vector<32x64xf32>, vector<32x64xf32> -> vector<96x64xf32>
    %cst_166 = arith.constant dense<0.000000e+00> : vector<32x64xf32>
    %284 = tpu.matmul %274, %283, %cst_166 {dimension_numbers = #tpu.dot_dimension_numbers<[1], [0], [0], [1], [0, 0, 1, 1], [], []>} : vector<32x96xf32>, vector<96x64xf32>, vector<32x64xf32> -> vector<32x64xf32>
    %285 = vector.broadcast %275 : vector<32x1xf32> to vector<32x64xf32>
    %286 = arith.addf %284, %285 : vector<32x64xf32>
    %cst_167 = arith.constant 0.000000e+00 : f32
    %287 = vector.broadcast %cst_167 : f32 to vector<32x64xf32>
    %288 = arith.cmpf oge, %286, %287 : vector<32x64xf32>
    %cst_168 = arith.constant 0.00999999977 : f32
    %289 = vector.broadcast %cst_168 : f32 to vector<32x64xf32>
    %290 = arith.mulf %289, %286 : vector<32x64xf32>
    %291 = arith.select %288, %286, %290 : vector<32x64xi1>, vector<32x64xf32>
    %cst_169 = arith.constant 0.000000e+00 : f32
    %292 = vector.broadcast %cst_169 : f32 to vector<32x1xf32>
    %293 = vector.extract_strided_slice %291 {offsets = [0, 1], sizes = [32, 63], strides = [1, 1]} : vector<32x64xf32> to vector<32x63xf32>
    %294 = tpu.concatenate %293, %292 in 1 : vector<32x63xf32>, vector<32x1xf32> -> vector<32x64xf32>
    %295 = arith.maximumf %291, %294 : vector<32x64xf32>
    %cst_170 = arith.constant dense<0.000000e+00> : vector<32x32xf32>
    %296 = tpu.matmul %295, %276, %cst_170 {dimension_numbers = #tpu.dot_dimension_numbers<[1], [0], [0], [1], [0, 0, 1, 1], [], []>} : vector<32x64xf32>, vector<64x32xf32>, vector<32x32xf32> -> vector<32x32xf32>
    %c0_171 = arith.constant 0 : index
    %c0_172 = arith.constant 0 : index
    %297 = vector.load %arg42[%c0_171, %c0_172] : memref<32x96xf32, #tpu.memory_space<vmem>>, vector<32x96xf32>
    %c0_173 = arith.constant 0 : index
    %c0_174 = arith.constant 0 : index
    %298 = vector.load %arg43[%c0_173, %c0_174] : memref<32x1xf32, #tpu.memory_space<vmem>>, vector<32x1xf32>
    %c0_175 = arith.constant 0 : index
    %c0_176 = arith.constant 0 : index
    %299 = vector.load %arg44[%c0_175, %c0_176] : memref<32x16xf32, #tpu.memory_space<vmem>>, vector<32x16xf32>
    %cst_177 = arith.constant 0.000000e+00 : f32
    %300 = vector.broadcast %cst_177 : f32 to vector<32x1xf32>
    %301 = vector.extract_strided_slice %296 {offsets = [0, 0], sizes = [32, 31], strides = [1, 1]} : vector<32x32xf32> to vector<32x31xf32>
    %302 = tpu.concatenate %300, %301 in 1 : vector<32x1xf32>, vector<32x31xf32> -> vector<32x32xf32>
    %cst_178 = arith.constant 0.000000e+00 : f32
    %303 = vector.broadcast %cst_178 : f32 to vector<32x1xf32>
    %304 = vector.extract_strided_slice %296 {offsets = [0, 1], sizes = [32, 31], strides = [1, 1]} : vector<32x32xf32> to vector<32x31xf32>
    %305 = tpu.concatenate %304, %303 in 1 : vector<32x31xf32>, vector<32x1xf32> -> vector<32x32xf32>
    %306 = tpu.concatenate %302, %296, %305 in 0 : vector<32x32xf32>, vector<32x32xf32>, vector<32x32xf32> -> vector<96x32xf32>
    %cst_179 = arith.constant dense<0.000000e+00> : vector<32x32xf32>
    %307 = tpu.matmul %297, %306, %cst_179 {dimension_numbers = #tpu.dot_dimension_numbers<[1], [0], [0], [1], [0, 0, 1, 1], [], []>} : vector<32x96xf32>, vector<96x32xf32>, vector<32x32xf32> -> vector<32x32xf32>
    %308 = vector.broadcast %298 : vector<32x1xf32> to vector<32x32xf32>
    %309 = arith.addf %307, %308 : vector<32x32xf32>
    %cst_180 = arith.constant 0.000000e+00 : f32
    %310 = vector.broadcast %cst_180 : f32 to vector<32x32xf32>
    %311 = arith.cmpf oge, %309, %310 : vector<32x32xf32>
    %cst_181 = arith.constant 0.00999999977 : f32
    %312 = vector.broadcast %cst_181 : f32 to vector<32x32xf32>
    %313 = arith.mulf %312, %309 : vector<32x32xf32>
    %314 = arith.select %311, %309, %313 : vector<32x32xi1>, vector<32x32xf32>
    %cst_182 = arith.constant 0.000000e+00 : f32
    %315 = vector.broadcast %cst_182 : f32 to vector<32x1xf32>
    %316 = vector.extract_strided_slice %314 {offsets = [0, 1], sizes = [32, 31], strides = [1, 1]} : vector<32x32xf32> to vector<32x31xf32>
    %317 = tpu.concatenate %316, %315 in 1 : vector<32x31xf32>, vector<32x1xf32> -> vector<32x32xf32>
    %318 = arith.maximumf %314, %317 : vector<32x32xf32>
    %cst_183 = arith.constant dense<0.000000e+00> : vector<32x16xf32>
    %319 = tpu.matmul %318, %299, %cst_183 {dimension_numbers = #tpu.dot_dimension_numbers<[1], [0], [0], [1], [0, 0, 1, 1], [], []>} : vector<32x32xf32>, vector<32x16xf32>, vector<32x16xf32> -> vector<32x16xf32>
    %c0_184 = arith.constant 0 : index
    %c0_185 = arith.constant 0 : index
    %320 = vector.load %arg45[%c0_184, %c0_185] : memref<32x96xf32, #tpu.memory_space<vmem>>, vector<32x96xf32>
    %c0_186 = arith.constant 0 : index
    %c0_187 = arith.constant 0 : index
    %321 = vector.load %arg46[%c0_186, %c0_187] : memref<32x1xf32, #tpu.memory_space<vmem>>, vector<32x1xf32>
    %c0_188 = arith.constant 0 : index
    %c0_189 = arith.constant 0 : index
    %322 = vector.load %arg47[%c0_188, %c0_189] : memref<16x8xf32, #tpu.memory_space<vmem>>, vector<16x8xf32>
    %cst_190 = arith.constant 0.000000e+00 : f32
    %323 = vector.broadcast %cst_190 : f32 to vector<32x1xf32>
    %324 = vector.extract_strided_slice %319 {offsets = [0, 0], sizes = [32, 15], strides = [1, 1]} : vector<32x16xf32> to vector<32x15xf32>
    %325 = tpu.concatenate %323, %324 in 1 : vector<32x1xf32>, vector<32x15xf32> -> vector<32x16xf32>
    %cst_191 = arith.constant 0.000000e+00 : f32
    %326 = vector.broadcast %cst_191 : f32 to vector<32x1xf32>
    %327 = vector.extract_strided_slice %319 {offsets = [0, 1], sizes = [32, 15], strides = [1, 1]} : vector<32x16xf32> to vector<32x15xf32>
    %328 = tpu.concatenate %327, %326 in 1 : vector<32x15xf32>, vector<32x1xf32> -> vector<32x16xf32>
    %329 = tpu.concatenate %325, %319, %328 in 0 : vector<32x16xf32>, vector<32x16xf32>, vector<32x16xf32> -> vector<96x16xf32>
    %cst_192 = arith.constant dense<0.000000e+00> : vector<32x16xf32>
    %330 = tpu.matmul %320, %329, %cst_192 {dimension_numbers = #tpu.dot_dimension_numbers<[1], [0], [0], [1], [0, 0, 1, 1], [], []>} : vector<32x96xf32>, vector<96x16xf32>, vector<32x16xf32> -> vector<32x16xf32>
    %331 = vector.broadcast %321 : vector<32x1xf32> to vector<32x16xf32>
    %332 = arith.addf %330, %331 : vector<32x16xf32>
    %cst_193 = arith.constant 0.000000e+00 : f32
    %333 = vector.broadcast %cst_193 : f32 to vector<32x16xf32>
    %334 = arith.cmpf oge, %332, %333 : vector<32x16xf32>
    %cst_194 = arith.constant 0.00999999977 : f32
    %335 = vector.broadcast %cst_194 : f32 to vector<32x16xf32>
    %336 = arith.mulf %335, %332 : vector<32x16xf32>
    %337 = arith.select %334, %332, %336 : vector<32x16xi1>, vector<32x16xf32>
    %cst_195 = arith.constant 0.000000e+00 : f32
    %338 = vector.broadcast %cst_195 : f32 to vector<32x1xf32>
    %339 = vector.extract_strided_slice %337 {offsets = [0, 1], sizes = [32, 15], strides = [1, 1]} : vector<32x16xf32> to vector<32x15xf32>
    %340 = tpu.concatenate %339, %338 in 1 : vector<32x15xf32>, vector<32x1xf32> -> vector<32x16xf32>
    %341 = arith.maximumf %337, %340 : vector<32x16xf32>
    %cst_196 = arith.constant dense<0.000000e+00> : vector<32x8xf32>
    %342 = tpu.matmul %341, %322, %cst_196 {dimension_numbers = #tpu.dot_dimension_numbers<[1], [0], [0], [1], [0, 0, 1, 1], [], []>} : vector<32x16xf32>, vector<16x8xf32>, vector<32x8xf32> -> vector<32x8xf32>
    %c0_197 = arith.constant 0 : index
    %c0_198 = arith.constant 0 : index
    %c0_199 = arith.constant 0 : index
    %343 = vector.load %arg48[%c0_197, %c0_198, %c0_199] : memref<8x16x32xf32, #tpu.memory_space<vmem>>, vector<8x16x32xf32>
    %c0_200 = arith.constant 0 : index
    %c0_201 = arith.constant 0 : index
    %344 = vector.load %arg49[%c0_200, %c0_201] : memref<16x1xf32, #tpu.memory_space<vmem>>, vector<16x1xf32>
    %345 = vector.extract_strided_slice %343 {offsets = [0, 0, 0], sizes = [1, 16, 32], strides = [1, 1, 1]} : vector<8x16x32xf32> to vector<1x16x32xf32>
    %346 = vector.shape_cast %345 : vector<1x16x32xf32> to vector<16x32xf32>
    %347 = vector.extract_strided_slice %342 {offsets = [0, 0], sizes = [32, 1], strides = [1, 1]} : vector<32x8xf32> to vector<32x1xf32>
    %cst_202 = arith.constant dense<0.000000e+00> : vector<16x1xf32>
    %348 = tpu.matmul %346, %347, %cst_202 {dimension_numbers = #tpu.dot_dimension_numbers<[1], [0], [0], [1], [0, 0, 1, 1], [], []>} : vector<16x32xf32>, vector<32x1xf32>, vector<16x1xf32> -> vector<16x1xf32>
    %349 = arith.addf %344, %348 : vector<16x1xf32>
    %350 = vector.extract_strided_slice %343 {offsets = [1, 0, 0], sizes = [1, 16, 32], strides = [1, 1, 1]} : vector<8x16x32xf32> to vector<1x16x32xf32>
    %351 = vector.shape_cast %350 : vector<1x16x32xf32> to vector<16x32xf32>
    %352 = vector.extract_strided_slice %342 {offsets = [0, 1], sizes = [32, 1], strides = [1, 1]} : vector<32x8xf32> to vector<32x1xf32>
    %cst_203 = arith.constant dense<0.000000e+00> : vector<16x1xf32>
    %353 = tpu.matmul %351, %352, %cst_203 {dimension_numbers = #tpu.dot_dimension_numbers<[1], [0], [0], [1], [0, 0, 1, 1], [], []>} : vector<16x32xf32>, vector<32x1xf32>, vector<16x1xf32> -> vector<16x1xf32>
    %354 = arith.addf %349, %353 : vector<16x1xf32>
    %355 = vector.extract_strided_slice %343 {offsets = [2, 0, 0], sizes = [1, 16, 32], strides = [1, 1, 1]} : vector<8x16x32xf32> to vector<1x16x32xf32>
    %356 = vector.shape_cast %355 : vector<1x16x32xf32> to vector<16x32xf32>
    %357 = vector.extract_strided_slice %342 {offsets = [0, 2], sizes = [32, 1], strides = [1, 1]} : vector<32x8xf32> to vector<32x1xf32>
    %cst_204 = arith.constant dense<0.000000e+00> : vector<16x1xf32>
    %358 = tpu.matmul %356, %357, %cst_204 {dimension_numbers = #tpu.dot_dimension_numbers<[1], [0], [0], [1], [0, 0, 1, 1], [], []>} : vector<16x32xf32>, vector<32x1xf32>, vector<16x1xf32> -> vector<16x1xf32>
    %359 = arith.addf %354, %358 : vector<16x1xf32>
    %360 = vector.extract_strided_slice %343 {offsets = [3, 0, 0], sizes = [1, 16, 32], strides = [1, 1, 1]} : vector<8x16x32xf32> to vector<1x16x32xf32>
    %361 = vector.shape_cast %360 : vector<1x16x32xf32> to vector<16x32xf32>
    %362 = vector.extract_strided_slice %342 {offsets = [0, 3], sizes = [32, 1], strides = [1, 1]} : vector<32x8xf32> to vector<32x1xf32>
    %cst_205 = arith.constant dense<0.000000e+00> : vector<16x1xf32>
    %363 = tpu.matmul %361, %362, %cst_205 {dimension_numbers = #tpu.dot_dimension_numbers<[1], [0], [0], [1], [0, 0, 1, 1], [], []>} : vector<16x32xf32>, vector<32x1xf32>, vector<16x1xf32> -> vector<16x1xf32>
    %364 = arith.addf %359, %363 : vector<16x1xf32>
    %365 = vector.extract_strided_slice %343 {offsets = [4, 0, 0], sizes = [1, 16, 32], strides = [1, 1, 1]} : vector<8x16x32xf32> to vector<1x16x32xf32>
    %366 = vector.shape_cast %365 : vector<1x16x32xf32> to vector<16x32xf32>
    %367 = vector.extract_strided_slice %342 {offsets = [0, 4], sizes = [32, 1], strides = [1, 1]} : vector<32x8xf32> to vector<32x1xf32>
    %cst_206 = arith.constant dense<0.000000e+00> : vector<16x1xf32>
    %368 = tpu.matmul %366, %367, %cst_206 {dimension_numbers = #tpu.dot_dimension_numbers<[1], [0], [0], [1], [0, 0, 1, 1], [], []>} : vector<16x32xf32>, vector<32x1xf32>, vector<16x1xf32> -> vector<16x1xf32>
    %369 = arith.addf %364, %368 : vector<16x1xf32>
    %370 = vector.extract_strided_slice %343 {offsets = [5, 0, 0], sizes = [1, 16, 32], strides = [1, 1, 1]} : vector<8x16x32xf32> to vector<1x16x32xf32>
    %371 = vector.shape_cast %370 : vector<1x16x32xf32> to vector<16x32xf32>
    %372 = vector.extract_strided_slice %342 {offsets = [0, 5], sizes = [32, 1], strides = [1, 1]} : vector<32x8xf32> to vector<32x1xf32>
    %cst_207 = arith.constant dense<0.000000e+00> : vector<16x1xf32>
    %373 = tpu.matmul %371, %372, %cst_207 {dimension_numbers = #tpu.dot_dimension_numbers<[1], [0], [0], [1], [0, 0, 1, 1], [], []>} : vector<16x32xf32>, vector<32x1xf32>, vector<16x1xf32> -> vector<16x1xf32>
    %374 = arith.addf %369, %373 : vector<16x1xf32>
    %375 = vector.extract_strided_slice %343 {offsets = [6, 0, 0], sizes = [1, 16, 32], strides = [1, 1, 1]} : vector<8x16x32xf32> to vector<1x16x32xf32>
    %376 = vector.shape_cast %375 : vector<1x16x32xf32> to vector<16x32xf32>
    %377 = vector.extract_strided_slice %342 {offsets = [0, 6], sizes = [32, 1], strides = [1, 1]} : vector<32x8xf32> to vector<32x1xf32>
    %cst_208 = arith.constant dense<0.000000e+00> : vector<16x1xf32>
    %378 = tpu.matmul %376, %377, %cst_208 {dimension_numbers = #tpu.dot_dimension_numbers<[1], [0], [0], [1], [0, 0, 1, 1], [], []>} : vector<16x32xf32>, vector<32x1xf32>, vector<16x1xf32> -> vector<16x1xf32>
    %379 = arith.addf %374, %378 : vector<16x1xf32>
    %380 = vector.extract_strided_slice %343 {offsets = [7, 0, 0], sizes = [1, 16, 32], strides = [1, 1, 1]} : vector<8x16x32xf32> to vector<1x16x32xf32>
    %381 = vector.shape_cast %380 : vector<1x16x32xf32> to vector<16x32xf32>
    %382 = vector.extract_strided_slice %342 {offsets = [0, 7], sizes = [32, 1], strides = [1, 1]} : vector<32x8xf32> to vector<32x1xf32>
    %cst_209 = arith.constant dense<0.000000e+00> : vector<16x1xf32>
    %383 = tpu.matmul %381, %382, %cst_209 {dimension_numbers = #tpu.dot_dimension_numbers<[1], [0], [0], [1], [0, 0, 1, 1], [], []>} : vector<16x32xf32>, vector<32x1xf32>, vector<16x1xf32> -> vector<16x1xf32>
    %384 = arith.addf %379, %383 : vector<16x1xf32>
    %c0_210 = arith.constant 0 : index
    %c0_211 = arith.constant 0 : index
    %c0_212 = arith.constant 0 : index
    %385 = vector.load %arg50[%c0_210, %c0_211, %c0_212] : memref<1x16x1xf32, #tpu.memory_space<vmem>>, vector<1x16x1xf32>
    %386 = vector.shape_cast %385 : vector<1x16x1xf32> to vector<16x1xf32>
    %387 = vector.shape_cast %384 : vector<16x1xf32> to vector<1x16x1xf32>
    tpu.vector_store %arg50[%c0_210, %c0_211, %c0_212], %387 {strides = array<i32>} : memref<1x16x1xf32, #tpu.memory_space<vmem>>, vector<1x16x1xf32>,
    return
  }
  func.func @transform_0(%arg0: i32) -> (i32, i32, i32) {
    %c0_i32 = arith.constant 0 : i32
    %c0_i32_0 = arith.constant 0 : i32
    %c0_i32_1 = arith.constant 0 : i32
    return %arg0, %c0_i32, %c0_i32_0 : i32, i32, i32
  }
  func.func @transform_1(%arg0: i32) -> (i32, i32) {
    %c0_i32 = arith.constant 0 : i32
    %c0_i32_0 = arith.constant 0 : i32
    %c0_i32_1 = arith.constant 0 : i32
    return %c0_i32, %c0_i32_0 : i32, i32
  }
  func.func @transform_2(%arg0: i32) -> (i32, i32) {
    %c0_i32 = arith.constant 0 : i32
    %c0_i32_0 = arith.constant 0 : i32
    %c0_i32_1 = arith.constant 0 : i32
    return %c0_i32, %c0_i32_0 : i32, i32
  }
  func.func @transform_3(%arg0: i32) -> (i32, i32) {
    %c0_i32 = arith.constant 0 : i32
    %c0_i32_0 = arith.constant 0 : i32
    %c0_i32_1 = arith.constant 0 : i32
    return %c0_i32, %c0_i32_0 : i32, i32
  }
  func.func @transform_4(%arg0: i32) -> (i32, i32) {
    %c0_i32 = arith.constant 0 : i32
    %c0_i32_0 = arith.constant 0 : i32
    %c0_i32_1 = arith.constant 0 : i32
    return %c0_i32, %c0_i32_0 : i32, i32
  }
  func.func @transform_5(%arg0: i32) -> (i32, i32) {
    %c0_i32 = arith.constant 0 : i32
    %c0_i32_0 = arith.constant 0 : i32
    %c0_i32_1 = arith.constant 0 : i32
    return %c0_i32, %c0_i32_0 : i32, i32
  }
  func.func @transform_6(%arg0: i32) -> (i32, i32) {
    %c0_i32 = arith.constant 0 : i32
    %c0_i32_0 = arith.constant 0 : i32
    %c0_i32_1 = arith.constant 0 : i32
    return %c0_i32, %c0_i32_0 : i32, i32
  }
  func.func @transform_7(%arg0: i32) -> (i32, i32) {
    %c0_i32 = arith.constant 0 : i32
    %c0_i32_0 = arith.constant 0 : i32
    %c0_i32_1 = arith.constant 0 : i32
    return %c0_i32, %c0_i32_0 : i32, i32
  }
  func.func @transform_8(%arg0: i32) -> (i32, i32) {
    %c0_i32 = arith.constant 0 : i32
    %c0_i32_0 = arith.constant 0 : i32
    %c0_i32_1 = arith.constant 0 : i32
    return %c0_i32, %c0_i32_0 : i32, i32
  }
  func.func @transform_9(%arg0: i32) -> (i32, i32) {
    %c0_i32 = arith.constant 0 : i32
    %c0_i32_0 = arith.constant 0 : i32
    %c0_i32_1 = arith.constant 0 : i32
    return %c0_i32, %c0_i32_0 : i32, i32
  }
  func.func @transform_10(%arg0: i32) -> (i32, i32) {
    %c0_i32 = arith.constant 0 : i32
    %c0_i32_0 = arith.constant 0 : i32
    %c0_i32_1 = arith.constant 0 : i32
    return %c0_i32, %c0_i32_0 : i32, i32
  }
  func.func @transform_11(%arg0: i32) -> (i32, i32) {
    %c0_i32 = arith.constant 0 : i32
    %c0_i32_0 = arith.constant 0 : i32
    %c0_i32_1 = arith.constant 0 : i32
    return %c0_i32, %c0_i32_0 : i32, i32
  }
  func.func @transform_12(%arg0: i32) -> (i32, i32) {
    %c0_i32 = arith.constant 0 : i32
    %c0_i32_0 = arith.constant 0 : i32
    %c0_i32_1 = arith.constant 0 : i32
    return %c0_i32, %c0_i32_0 : i32, i32
  }
  func.func @transform_13(%arg0: i32) -> (i32, i32) {
    %c0_i32 = arith.constant 0 : i32
    %c0_i32_0 = arith.constant 0 : i32
    %c0_i32_1 = arith.constant 0 : i32
    return %c0_i32, %c0_i32_0 : i32, i32
  }
  func.func @transform_14(%arg0: i32) -> (i32, i32) {
    %c0_i32 = arith.constant 0 : i32
    %c0_i32_0 = arith.constant 0 : i32
    %c0_i32_1 = arith.constant 0 : i32
    return %c0_i32, %c0_i32_0 : i32, i32
  }
  func.func @transform_15(%arg0: i32) -> (i32, i32) {
    %c0_i32 = arith.constant 0 : i32
    %c0_i32_0 = arith.constant 0 : i32
    %c0_i32_1 = arith.constant 0 : i32
    return %c0_i32, %c0_i32_0 : i32, i32
  }
  func.func @transform_16(%arg0: i32) -> (i32, i32) {
    %c0_i32 = arith.constant 0 : i32
    %c0_i32_0 = arith.constant 0 : i32
    %c0_i32_1 = arith.constant 0 : i32
    return %c0_i32, %c0_i32_0 : i32, i32
  }
  func.func @transform_17(%arg0: i32) -> (i32, i32) {
    %c0_i32 = arith.constant 0 : i32
    %c0_i32_0 = arith.constant 0 : i32
    %c0_i32_1 = arith.constant 0 : i32
    return %c0_i32, %c0_i32_0 : i32, i32
  }
  func.func @transform_18(%arg0: i32) -> (i32, i32) {
    %c0_i32 = arith.constant 0 : i32
    %c0_i32_0 = arith.constant 0 : i32
    %c0_i32_1 = arith.constant 0 : i32
    return %c0_i32, %c0_i32_0 : i32, i32
  }
  func.func @transform_19(%arg0: i32) -> (i32, i32) {
    %c0_i32 = arith.constant 0 : i32
    %c0_i32_0 = arith.constant 0 : i32
    %c0_i32_1 = arith.constant 0 : i32
    return %c0_i32, %c0_i32_0 : i32, i32
  }
  func.func @transform_20(%arg0: i32) -> (i32, i32) {
    %c0_i32 = arith.constant 0 : i32
    %c0_i32_0 = arith.constant 0 : i32
    %c0_i32_1 = arith.constant 0 : i32
    return %c0_i32, %c0_i32_0 : i32, i32
  }
  func.func @transform_21(%arg0: i32) -> (i32, i32) {
    %c0_i32 = arith.constant 0 : i32
    %c0_i32_0 = arith.constant 0 : i32
    %c0_i32_1 = arith.constant 0 : i32
    return %c0_i32, %c0_i32_0 : i32, i32
  }
  func.func @transform_22(%arg0: i32) -> (i32, i32) {
    %c0_i32 = arith.constant 0 : i32
    %c0_i32_0 = arith.constant 0 : i32
    %c0_i32_1 = arith.constant 0 : i32
    return %c0_i32, %c0_i32_0 : i32, i32
  }
  func.func @transform_23(%arg0: i32) -> (i32, i32) {
    %c0_i32 = arith.constant 0 : i32
    %c0_i32_0 = arith.constant 0 : i32
    %c0_i32_1 = arith.constant 0 : i32
    return %c0_i32, %c0_i32_0 : i32, i32
  }
  func.func @transform_24(%arg0: i32) -> (i32, i32) {
    %c0_i32 = arith.constant 0 : i32
    %c0_i32_0 = arith.constant 0 : i32
    %c0_i32_1 = arith.constant 0 : i32
    return %c0_i32, %c0_i32_0 : i32, i32
  }
  func.func @transform_25(%arg0: i32) -> (i32, i32) {
    %c0_i32 = arith.constant 0 : i32
    %c0_i32_0 = arith.constant 0 : i32
    %c0_i32_1 = arith.constant 0 : i32
    return %c0_i32, %c0_i32_0 : i32, i32
  }
  func.func @transform_26(%arg0: i32) -> (i32, i32) {
    %c0_i32 = arith.constant 0 : i32
    %c0_i32_0 = arith.constant 0 : i32
    %c0_i32_1 = arith.constant 0 : i32
    return %c0_i32, %c0_i32_0 : i32, i32
  }
  func.func @transform_27(%arg0: i32) -> (i32, i32) {
    %c0_i32 = arith.constant 0 : i32
    %c0_i32_0 = arith.constant 0 : i32
    %c0_i32_1 = arith.constant 0 : i32
    return %c0_i32, %c0_i32_0 : i32, i32
  }
  func.func @transform_28(%arg0: i32) -> (i32, i32) {
    %c0_i32 = arith.constant 0 : i32
    %c0_i32_0 = arith.constant 0 : i32
    %c0_i32_1 = arith.constant 0 : i32
    return %c0_i32, %c0_i32_0 : i32, i32
  }
  func.func @transform_29(%arg0: i32) -> (i32, i32) {
    %c0_i32 = arith.constant 0 : i32
    %c0_i32_0 = arith.constant 0 : i32
    %c0_i32_1 = arith.constant 0 : i32
    return %c0_i32, %c0_i32_0 : i32, i32
  }
  func.func @transform_30(%arg0: i32) -> (i32, i32) {
    %c0_i32 = arith.constant 0 : i32
    %c0_i32_0 = arith.constant 0 : i32
    %c0_i32_1 = arith.constant 0 : i32
    return %c0_i32, %c0_i32_0 : i32, i32
  }
  func.func @transform_31(%arg0: i32) -> (i32, i32) {
    %c0_i32 = arith.constant 0 : i32
    %c0_i32_0 = arith.constant 0 : i32
    %c0_i32_1 = arith.constant 0 : i32
    return %c0_i32, %c0_i32_0 : i32, i32
  }
  func.func @transform_32(%arg0: i32) -> (i32, i32) {
    %c0_i32 = arith.constant 0 : i32
    %c0_i32_0 = arith.constant 0 : i32
    %c0_i32_1 = arith.constant 0 : i32
    return %c0_i32, %c0_i32_0 : i32, i32
  }
  func.func @transform_33(%arg0: i32) -> (i32, i32) {
    %c0_i32 = arith.constant 0 : i32
    %c0_i32_0 = arith.constant 0 : i32
    %c0_i32_1 = arith.constant 0 : i32
    return %c0_i32, %c0_i32_0 : i32, i32
  }
  func.func @transform_34(%arg0: i32) -> (i32, i32) {
    %c0_i32 = arith.constant 0 : i32
    %c0_i32_0 = arith.constant 0 : i32
    %c0_i32_1 = arith.constant 0 : i32
    return %c0_i32, %c0_i32_0 : i32, i32
  }
  func.func @transform_35(%arg0: i32) -> (i32, i32) {
    %c0_i32 = arith.constant 0 : i32
    %c0_i32_0 = arith.constant 0 : i32
    %c0_i32_1 = arith.constant 0 : i32
    return %c0_i32, %c0_i32_0 : i32, i32
  }
  func.func @transform_36(%arg0: i32) -> (i32, i32) {
    %c0_i32 = arith.constant 0 : i32
    %c0_i32_0 = arith.constant 0 : i32
    %c0_i32_1 = arith.constant 0 : i32
    return %c0_i32, %c0_i32_0 : i32, i32
  }
  func.func @transform_37(%arg0: i32) -> (i32, i32) {
    %c0_i32 = arith.constant 0 : i32
    %c0_i32_0 = arith.constant 0 : i32
    %c0_i32_1 = arith.constant 0 : i32
    return %c0_i32, %c0_i32_0 : i32, i32
  }
  func.func @transform_38(%arg0: i32) -> (i32, i32) {
    %c0_i32 = arith.constant 0 : i32
    %c0_i32_0 = arith.constant 0 : i32
    %c0_i32_1 = arith.constant 0 : i32
    return %c0_i32, %c0_i32_0 : i32, i32
  }
  func.func @transform_39(%arg0: i32) -> (i32, i32) {
    %c0_i32 = arith.constant 0 : i32
    %c0_i32_0 = arith.constant 0 : i32
    %c0_i32_1 = arith.constant 0 : i32
    return %c0_i32, %c0_i32_0 : i32, i32
  }
  func.func @transform_40(%arg0: i32) -> (i32, i32) {
    %c0_i32 = arith.constant 0 : i32
    %c0_i32_0 = arith.constant 0 : i32
    %c0_i32_1 = arith.constant 0 : i32
    return %c0_i32, %c0_i32_0 : i32, i32
  }
  func.func @transform_41(%arg0: i32) -> (i32, i32) {
    %c0_i32 = arith.constant 0 : i32
    %c0_i32_0 = arith.constant 0 : i32
    %c0_i32_1 = arith.constant 0 : i32
    return %c0_i32, %c0_i32_0 : i32, i32
  }
  func.func @transform_42(%arg0: i32) -> (i32, i32) {
    %c0_i32 = arith.constant 0 : i32
    %c0_i32_0 = arith.constant 0 : i32
    %c0_i32_1 = arith.constant 0 : i32
    return %c0_i32, %c0_i32_0 : i32, i32
  }
  func.func @transform_43(%arg0: i32) -> (i32, i32) {
    %c0_i32 = arith.constant 0 : i32
    %c0_i32_0 = arith.constant 0 : i32
    %c0_i32_1 = arith.constant 0 : i32
    return %c0_i32, %c0_i32_0 : i32, i32
  }
  func.func @transform_44(%arg0: i32) -> (i32, i32) {
    %c0_i32 = arith.constant 0 : i32
    %c0_i32_0 = arith.constant 0 : i32
    %c0_i32_1 = arith.constant 0 : i32
    return %c0_i32, %c0_i32_0 : i32, i32
  }
  func.func @transform_45(%arg0: i32) -> (i32, i32) {
    %c0_i32 = arith.constant 0 : i32
    %c0_i32_0 = arith.constant 0 : i32
    %c0_i32_1 = arith.constant 0 : i32
    return %c0_i32, %c0_i32_0 : i32, i32
  }
  func.func @transform_46(%arg0: i32) -> (i32, i32) {
    %c0_i32 = arith.constant 0 : i32
    %c0_i32_0 = arith.constant 0 : i32
    %c0_i32_1 = arith.constant 0 : i32
    return %c0_i32, %c0_i32_0 : i32, i32
  }
  func.func @transform_47(%arg0: i32) -> (i32, i32, i32) {
    %c0_i32 = arith.constant 0 : i32
    %c0_i32_0 = arith.constant 0 : i32
    %c0_i32_1 = arith.constant 0 : i32
    %c0_i32_2 = arith.constant 0 : i32
    return %c0_i32, %c0_i32_0, %c0_i32_1 : i32, i32, i32
  }
  func.func @transform_48(%arg0: i32) -> (i32, i32) {
    %c0_i32 = arith.constant 0 : i32
    %c0_i32_0 = arith.constant 0 : i32
    %c0_i32_1 = arith.constant 0 : i32
    return %c0_i32, %c0_i32_0 : i32, i32
  }
  func.func @transform_49(%arg0: i32) -> (i32, i32, i32) {
    %c0_i32 = arith.constant 0 : i32
    %c0_i32_0 = arith.constant 0 : i32
    %c0_i32_1 = arith.constant 0 : i32
    return %arg0, %c0_i32, %c0_i32_0 : i32, i32, i32
  }
}

</mosaic_0001>

<bundles_post_ra>
// kernel: tcn_encoder_forward.1
= control target key start
LH: loop header
LB: loop body
LE: loop exit
PB: predicated region body
PF: predicated region fallthrough
CT: control target
= control target key end

     0   :  { %s8123_s6 = smov 1   ;;  %s8124_s10 = smov 2   ;;  %s9753_s0 = inlined_call_operand.smem [shape: u32[50], index: -1, kind: input, shape index: {}] }
   0x1   :  { %s8197_s5 = sld [smem:[%s9753_s0]]   ;;  %s8125_s14 = smov 3  }
   0x2   :  { %s8202_s9 = sld [smem:[%s9753_s0 + %s8123_s6]]   ;;  %s8126_s18 = smov 4  }
   0x3   :  { %s8207_s13 = sld [smem:[%s9753_s0 + %s8124_s10]]   ;;  %s8127_s22 = smov 5  }
   0x4   :  { %s8212_s17 = sld [smem:[%s9753_s0 + %s8125_s14]]   ;;  %s8128_s26 = smov 6  }
   0x5   :  { %s8217_s21 = sld [smem:[%s9753_s0 + %s8126_s18]]   ;;  %s8129_s30 = smov 7  }
   0x6   :  { %s8222_s25 = sld [smem:[%s9753_s0 + %s8127_s22]]   ;;  %s8130_s4 = smov 8  }
   0x7   :  { %9821 = sst [smem:[#allocation2_spill]] %s8197_s5  ;;  %s8131_s10 = smov 9  }
   0x8   :  { %s8227_s29 = sld [smem:[%s9753_s0 + %s8128_s26]]   ;;  %s8132_s15 = smov 10  }
   0x9   :  { %s8232_s3 = sld [smem:[%s9753_s0 + %s8129_s30]]   ;;  %s8133_s20 = smov 11  }
   0xa   :  { %s8237_s8 = sld [smem:[%s9753_s0 + %s8130_s4]]   ;;  %s8134_s26 = smov 12  }
   0xb   :  { %s8242_s14 = sld [smem:[%s9753_s0 + %s8131_s10]]   ;;  %s8135_s1 = smov 13  }
   0xc   :  { %s8247_s19 = sld [smem:[%s9753_s0 + %s8132_s15]]   ;;  %s8136_s7 = smov 14  }
   0xd   :  { %s8252_s24 = sld [smem:[%s9753_s0 + %s8133_s20]]   ;;  %s8137_s15 = smov 15  }
   0xe   :  { %s8257_s30 = sld [smem:[%s9753_s0 + %s8134_s26]]   ;;  %s8138_s22 = smov 16  }
   0xf   :  { %9822 = sst [smem:[#allocation3_spill]] %s8232_s3  ;;  %s8139_s28 = smov 17  }
  0x10   :  { %9823 = sst [smem:[#allocation4_spill]] %s8237_s8 }
  0x11   :  { %s8262_s6 = sld [smem:[%s9753_s0 + %s8135_s1]]  }
  0x12   :  { %s8267_s12 = sld [smem:[%s9753_s0 + %s8136_s7]]   ;;  %s8140_s7 = smov 18  }
  0x13   :  { %s8272_s20 = sld [smem:[%s9753_s0 + %s8137_s15]]   ;;  %s8141_s15 = smov 19  }
  0x14   :  { %s8277_s27 = sld [smem:[%s9753_s0 + %s8138_s22]]   ;;  %s8142_s22 = smov 20  }
  0x15   :  { %s8282_s4 = sld [smem:[%s9753_s0 + %s8139_s28]]   ;;  %s8143_s28 = smov 21  }
  0x17   :  { %9824 = sst [smem:[#allocation5_spill]] %s8262_s6 }
  0x18   :  { %9825 = sst [smem:[#allocation6_spill]] %s8267_s12 }
  0x19   :  { %9826 = sst [smem:[#allocation7_spill]] %s8272_s20 }
  0x1a   :  { %9827 = sst [smem:[#allocation8_spill]] %s8277_s27 }
  0x1b   :  { %9828 = sst [smem:[#allocation9_spill]] %s8282_s4 }
  0x1c   :  { %s8287_s12 = sld [smem:[%s9753_s0 + %s8140_s7]]   ;;  %s8144_s7 = smov 22  }
  0x1d   :  { %s8292_s20 = sld [smem:[%s9753_s0 + %s8141_s15]]   ;;  %s8145_s15 = smov 23  }
  0x1e   :  { %s8297_s27 = sld [smem:[%s9753_s0 + %s8142_s22]]   ;;  %s8146_s22 = smov 24  }
  0x1f   :  { %s8302_s4 = sld [smem:[%s9753_s0 + %s8143_s28]]   ;;  %s8147_s28 = smov 25  }
  0x22   :  { %9829 = sst [smem:[#allocation10_spill]] %s8287_s12 }
  0x23   :  { %9830 = sst [smem:[#allocation11_spill]] %s8292_s20 }
  0x24   :  { %9831 = sst [smem:[#allocation12_spill]] %s8297_s27 }
  0x25   :  { %9832 = sst [smem:[#allocation13_spill]] %s8302_s4 }
  0x26   :  { %s8307_s12 = sld [smem:[%s9753_s0 + %s8144_s7]]   ;;  %s8148_s7 = smov 26  }
  0x27   :  { %s8312_s20 = sld [smem:[%s9753_s0 + %s8145_s15]]   ;;  %s8149_s15 = smov 27  }
  0x28   :  { %s8317_s27 = sld [smem:[%s9753_s0 + %s8146_s22]]   ;;  %s8150_s22 = smov 28  }
  0x29   :  { %s8322_s4 = sld [smem:[%s9753_s0 + %s8147_s28]]   ;;  %s8151_s28 = smov 29  }
  0x2c   :  { %9833 = sst [smem:[#allocation14_spill]] %s8307_s12 }
  0x2d   :  { %9834 = sst [smem:[#allocation15_spill]] %s8312_s20 }
  0x2e   :  { %9835 = sst [smem:[#allocation16_spill]] %s8317_s27 }
  0x2f   :  { %9836 = sst [smem:[#allocation17_spill]] %s8322_s4 }
  0x30   :  { %s8327_s12 = sld [smem:[%s9753_s0 + %s8148_s7]]   ;;  %s8152_s7 = smov 30  }
  0x31   :  { %s8332_s20 = sld [smem:[%s9753_s0 + %s8149_s15]]   ;;  %s8153_s15 = smov 31  }
  0x32   :  { %s8337_s27 = sld [smem:[%s9753_s0 + %s8150_s22]]   ;;  %s8154_s22 = smov 32  }
  0x33   :  { %s8342_s4 = sld [smem:[%s9753_s0 + %s8151_s28]]   ;;  %s8155_s28 = smov 33  }
  0x36   :  { %9837 = sst [smem:[#allocation18_spill]] %s8327_s12 }
  0x37   :  { %9838 = sst [smem:[#allocation19_spill]] %s8332_s20 }
  0x38   :  { %9839 = sst [smem:[#allocation20_spill]] %s8337_s27 }
  0x39   :  { %9840 = sst [smem:[#allocation21_spill]] %s8342_s4 }
  0x3a   :  { %s8347_s12 = sld [smem:[%s9753_s0 + %s8152_s7]]   ;;  %s8156_s7 = smov 34  }
  0x3b   :  { %s8352_s20 = sld [smem:[%s9753_s0 + %s8153_s15]]   ;;  %s8157_s15 = smov 35  }
  0x3c   :  { %s8357_s27 = sld [smem:[%s9753_s0 + %s8154_s22]]   ;;  %s8158_s22 = smov 36  }
  0x3d   :  { %s8362_s4 = sld [smem:[%s9753_s0 + %s8155_s28]]   ;;  %s8159_s28 = smov 37  }
  0x40   :  { %9841 = sst [smem:[#allocation22_spill]] %s8347_s12 }
  0x41   :  { %9842 = sst [smem:[#allocation23_spill]] %s8352_s20 }
  0x42   :  { %9843 = sst [smem:[#allocation24_spill]] %s8357_s27 }
  0x43   :  { %9844 = sst [smem:[#allocation25_spill]] %s8362_s4 }
  0x44   :  { %s8367_s12 = sld [smem:[%s9753_s0 + %s8156_s7]]   ;;  %s8160_s7 = smov 38  }
  0x45   :  { %s8372_s20 = sld [smem:[%s9753_s0 + %s8157_s15]]   ;;  %s8161_s15 = smov 39  }
  0x46   :  { %s8377_s27 = sld [smem:[%s9753_s0 + %s8158_s22]]   ;;  %s8162_s22 = smov 40  }
  0x47   :  { %s8382_s4 = sld [smem:[%s9753_s0 + %s8159_s28]]   ;;  %s8163_s28 = smov 41  }
  0x4a   :  { %9845 = sst [smem:[#allocation26_spill]] %s8367_s12 }
  0x4b   :  { %9846 = sst [smem:[#allocation27_spill]] %s8372_s20 }
  0x4c   :  { %9847 = sst [smem:[#allocation28_spill]] %s8377_s27 }
  0x4d   :  { %9848 = sst [smem:[#allocation29_spill]] %s8382_s4 }
  0x4e   :  { %s8387_s12 = sld [smem:[%s9753_s0 + %s8160_s7]]   ;;  %s8164_s7 = smov 42  }
  0x4f   :  { %s8392_s20 = sld [smem:[%s9753_s0 + %s8161_s15]]   ;;  %s8165_s15 = smov 43  }
  0x50   :  { %s8397_s27 = sld [smem:[%s9753_s0 + %s8162_s22]]   ;;  %s8166_s22 = smov 44  }
  0x51   :  { %s8402_s4 = sld [smem:[%s9753_s0 + %s8163_s28]]   ;;  %s8167_s28 = smov 45  }
  0x54   :  { %9849 = sst [smem:[#allocation30_spill]] %s8387_s12 }
  0x55   :  { %9850 = sst [smem:[#allocation31_spill]] %s8392_s20 }
  0x56   :  { %9851 = sst [smem:[#allocation32_spill]] %s8397_s27 }
  0x57   :  { %9852 = sst [smem:[#allocation33_spill]] %s8402_s4 }
  0x58   :  { %s8407_s12 = sld [smem:[%s9753_s0 + %s8164_s7]]   ;;  %s8168_s7 = smov 46  }
  0x59   :  { %s8412_s20 = sld [smem:[%s9753_s0 + %s8165_s15]]   ;;  %s8169_s15 = smov 47  }
  0x5a   :  { %s8417_s27 = sld [smem:[%s9753_s0 + %s8166_s22]]   ;;  %s8170_s22 = smov 48  }
  0x5b   :  { %s8422_s4 = sld [smem:[%s9753_s0 + %s8167_s28]]   ;;  %s8171_s28 = smov 49  }
  0x5e   :  { %9853 = sst [smem:[#allocation34_spill]] %s8407_s12 }
  0x5f   :  { %9854 = sst [smem:[#allocation35_spill]] %s8412_s20 }
  0x60   :  { %9855 = sst [smem:[#allocation36_spill]] %s8417_s27 }
  0x61   :  { %9856 = sst [smem:[#allocation37_spill]] %s8422_s4 }
  0x62   :  { %s8427_s12 = sld [smem:[%s9753_s0 + %s8168_s7]]   ;;  %s8444_s7 = smov 0  }
  0x63   :  { %s8432_s20 = sld [smem:[%s9753_s0 + %s8169_s15]]  }
  0x64   :  { %s8437_s27 = sld [smem:[%s9753_s0 + %s8170_s22]]  }
  0x65   :  { %s8442_s4 = sld [smem:[%s9753_s0 + %s8171_s28]]  }
  0x66 LB: > { %s9857_s8 = sld [smem:[#allocation4_spill]]  ;;  %s6460_s10 = sadd.s32 4294967295, %s8121_s7   ;;  %s8121_s7 = sphi %s8444_s7, %s109_s7  }
  0x67   : > { %s9858_s6 = sld [smem:[#allocation5_spill]]  ;;  %p6464_p0 = scmp.ge.s32.totalorder %s8121_s7, 1 }
  0x68   : > { %s9859_s3 = sld [smem:[#allocation3_spill]]  ;;  %p1336_p1 = scmp.lt.s32.totalorder %s8121_s7, 3 }
  0x6a   : > { %p1337_p2 = pnand %p6464_p0, %p1336_p1 }
  0x6b   : > { %s9860_s5 = sld [smem:[#allocation2_spill]] (!%p1337_p2)  ;;  %p1451_p3 = scmp.lt.s32.totalorder (!%p1337_p2), %s6460_s10, 1 }
  0x6c   : > { %1340 = sbr.rel (%p1337_p2) target bundleno = 8239 (0x202f), region = 216  ;;  %s9786_s0 = smov (!%p1337_p2), 124  }
  0x6d   : > { %s9788_s16 = smov (!%p1337_p2), 1   ;;  %s8174_s18 = smov (!%p1337_p2), 2  }
  0x6e   : > { %s8176_s22 = smov (!%p1337_p2), 120   ;;  %s8177_s23 = smov (!%p1337_p2), 4  }
  0x6f   : > { %s8178_s26 = smov (!%p1337_p2), 8   ;;  %s9869_s28 = sld [smem:[#allocation6_spill]] (!%p1337_p2) }
  0x70   : > { %s9870_s1 = sld [smem:[#allocation7_spill]] (!%p1337_p2) }
  0x71   : > { %v1462_v0 = vld [vmem:[%s8202_s9 + $0x8] sm:$0xff]  ;;  %v1479_v1 = vld [vmem:[%s8222_s25 + $0x10] sm:$0xff]  ;;  %vm1505_vm0 = vcmask 31744   ;;  %s9912_s10 = smov (!%p1451_p3, %s6460_s10), 1  ;;  %v1477_v2 = vld [vmem:[%s8222_s25] sm:$0xff]  ;;  %vm1518_vm1 = vcmask 1043456  }
  0x72   : > { %1623 = vrot.lane.b32.xlu1 %v1462_v0, %s9786_s0  ;;  %7258 = vmatprep.mubr.msk.f32.mxu1 %vm1505_vm0, %v1479_v1  ;;  %s6465_s11 = sshll.u32 %s9912_s10, 2  ;;  %v1480_v4 = vld [vmem:[%s8222_s25 + $0x18] sm:$0xff]  ;;  %v1478_v5 = vld [vmem:[%s8222_s25 + $0x8] sm:$0xff]  ;;  %v1461_v6 = vld [vmem:[%s8202_s9] sm:$0xff]  ;;  %v8175_v9 = vmov 0   ;;  %vm1615_vm2 = vcmask 7168  }
  0x73   : > { %7255 = vmatprep.mubr.msk.f32.mxu0 %vm1505_vm0, %v1477_v2  ;;  %s1454_s15 = scalar_lea.vmem %s9860_s5, %s6465_s11  ;;  %v1464_v7 = vld [vmem:[%s8202_s9 + $0x18] sm:$0xff]  ;;  %v1463_v8 = vld [vmem:[%s8202_s9 + $0x10] sm:$0xff]  ;;  %8104 = vset.pattern.permute.xlu1 %v8175_v9  ;;  %v1466_v12 = vld [vmem:[%s8207_s13 + $0x8] sm:$0xff]  ;;  %vm1610_vm3 = vcmask 15360   ;;  %vm2010_vm4 = vcmask 785408   ;;  %vm2490_vm8 = vcmask 64512  }
  0x74   : > { %v1460_v3 = vld [vmem:[%s1454_s15] sm:$0xf]  ;;  %8103 = vset.pattern.permute.xlu0 %v8175_v9  ;;  %v1467_v10 = vld [vmem:[%s8207_s13 + $0x10] sm:$0xff]  ;;  %v1468_v11 = vld [vmem:[%s8207_s13 + $0x18] sm:$0xff]  ;;  %s9871_s2 = sld [smem:[#allocation8_spill]]  ;;  %s8179_s11 = smov 16  }
  0x75   : > { %1612 = vrot.lane.b32.xlu0 %v1460_v3, %s9788_s16  ;;  %8027 = vmatprep.subr.msk.mxu1 %vm1518_vm1, %v1460_v3  ;;  %v1465_v13 = vld [vmem:[%s8207_s13] sm:$0xff]  ;;  %v1476_v63 = vld [vmem:[%s8217_s21 + $0x18] sm:$0xff]  ;;  %v1475_v1 = vld [vmem:[%s8217_s21 + $0x10] sm:$0xff]  ;;  %vm2829_vm10 = vcmask 130048   ;;  %s9874_s15 = sld [smem:[#allocation9_spill]]  ;;  %vm3168_vm12 = vcmask 261120  }
  0x76   : > { %1607 = vrot.lane.b32.xlu1 %v1460_v3, %s8174_s18  ;;  %7253 = vmatprep.subr.msk.mxu0 %vm1518_vm1, %v1460_v3  ;;  %v1469_v60 = vld [vmem:[%s8212_s17] sm:$0xff]  ;;  %v1483_v2 = vld [vmem:[%s8227_s29 + $0x10] sm:$0xff]  ;;  %vm8529_vm5 = vmneg %vm1615_vm2  ;;  %vm3507_vm14 = vcmask 523264   ;;  %s9894_s5 = sld [smem:[#allocation26_spill]] }
  0x77   : > { %8028 = vmatpush3.msk.msra.mxu1 %vm1518_vm1, %v1460_v3  ;;  %7254 = vmatpush3.msk.msra.mxu0 %vm1518_vm1, %v1460_v3  ;;  %vm8544_vm6 = vmneg %vm1610_vm3 }
  0x78   : > { %7259 = vmatmul.mubr.msk.f32.vlgmr.msra.gmra.mxu1 %vm1505_vm0, %v1480_v4  ;;  %7256 = vmatmul.mubr.msk.f32.vlgmr.msra.gmra.mxu0 %vm1505_vm0, %v1478_v5  ;;  %v1482_v4 = vld [vmem:[%s8227_s29 + $0x8] sm:$0xff]  ;;  %v1473_v5 = vld [vmem:[%s8217_s21] sm:$0xff]  ;;  %vm8629_vm7 = vmneg %vm1505_vm0 }
  0x79   : > { %1621 = vrot.lane.b32.xlu0 %v1461_v6, %s9786_s0  ;;  %7271 = vmatprep.mubr.msk.f32.mxu0 %vm1505_vm0, %v1461_v6  ;;  %vm8767_vm9 = vmneg %vm2490_vm8  ;;  %vm4733_vm8 = vcmask 515072  }
  0x7a   : > { %1627 = vrot.lane.b32.xlu1 %v1464_v7, %s9786_s0  ;;  %vm8904_vm11 = vmneg %vm2829_vm10 }
  0x7b   : > { %vm9041_vm13 = vmneg %vm3168_vm12 }
  0x7c   : > { %vm9178_vm15 = vmneg %vm3507_vm14 }
  0x7d   : > { %1625 = vrot.lane.b32.xlu0 %v1463_v8, %s9786_s0  ;;  %s9880_s0 = sld [smem:[#allocation13_spill]] }
  0x7e   : > { %1823 = vrot.lane.b32.xlu1 %v1462_v0, %s8176_s22 }
  0x81   : > { %1821 = vrot.lane.b32.xlu0 %v1461_v6, %s8176_s22  ;;  %v1481_v6 = vld [vmem:[%s8227_s29] sm:$0xff] }
  0x82   : > { %1827 = vrot.lane.b32.xlu1 %v1464_v7, %s8176_s22 }
  0x85   : > { %1825 = vrot.lane.b32.xlu0 %v1463_v8, %s8176_s22  ;;  %s9876_s22 = sld [smem:[#allocation11_spill]] }
  0x86   : > { %1938 = vperm.xlu1 %8104, %v1467_v10  }
  0x89   : > { %1943 = vperm.xlu0 %8103, %v1468_v11  }
  0x8a   : > { %1933 = vperm.xlu1 %8104, %v1466_v12  }
  0x8d   : > { %1928 = vperm.xlu0 %8103, %v1465_v13  }
  0xe4   : > { %v1624_v14 = vpop.permute.xlu1 %1623 }
  0xe7   : > { %v1613_v15 = vpop.permute.xlu0 %1612 }
  0xe8   : > { %v1608_v16 = vpop.permute.xlu1 %1607  ;;  %v1616_v17 = vsel %vm1615_vm2, 0.0, %v1613_v15 }
  0xe9   : > { %v1611_v18 = vsel %vm1610_vm3, 0.0, %v1608_v16  ;;  %7261 = vmatprep.subr.msk.mxu1 %vm1518_vm1, %v1616_v17 }
  0xea   : > { %7269 = vmatprep.subr.msk.mxu0 %vm1518_vm1, %v1611_v18  ;;  %7262 = vmatpush3.msk.msra.mxu1 %vm1518_vm1, %v1616_v17  ;;  %v1470_v17 = vld [vmem:[%s8212_s17 + $0x8] sm:$0xff] }
  0xeb   : > { %7270 = vmatpush3.msk.msra.mxu0 %vm1518_vm1, %v1611_v18  ;;  %v1622_v19 = vpop.permute.xlu0 %1621  ;;  %7277 = vmatprep.subr.msk.mxu1 %vm1518_vm1, %v1460_v3  ;;  %v1471_v18 = vld [vmem:[%s8212_s17 + $0x10] sm:$0xff] }
  0xec   : > { %7272 = vmatmul.mubr.msk.f32.vlgmr.msra.gmra.mxu0 %vm1505_vm0, %v1462_v0  ;;  %v1628_v20 = vpop.permute.xlu1 %1627  ;;  %7263 = vmatprep.mubr.msk.f32.mxu1 %vm1505_vm0, %v1622_v19  ;;  %v1484_v0 = vld [vmem:[%s8227_s29 + $0x18] sm:$0xff] }
  0xed   : > { %7274 = vmatprep.mubr.msk.f32.mxu0 %vm1505_vm0, %v1463_v8  ;;  %7264 = vmatmul.mubr.msk.f32.vlgmr.msra.gmra.mxu1 %vm1505_vm0, %v1624_v14  ;;  %v1472_v19 = vld [vmem:[%s8212_s17 + $0x18] sm:$0xff] }
  0xee   : > { %7278 = vmatpush3.msk.msra.mxu1 %vm1518_vm1, %v1460_v3  ;;  %v1474_v3 = vld [vmem:[%s8217_s21 + $0x8] sm:$0xff] }
  0xef   : > { %v1626_v21 = vpop.permute.xlu0 %1625 }
  0xf0   : > { %7275 = vmatmul.mubr.msk.f32.gmra.mxu0 %vm1505_vm0, %v1464_v7  ;;  %7266 = vmatprep.mubr.msk.f32.mxu1 %vm1505_vm0, %v1626_v21  ;;  %v1824_v22 = vpop.permute.xlu1 %1823 }
  0xf1   : > { %7267 = vmatmul.mubr.msk.f32.gmra.mxu1 %vm1505_vm0, %v1628_v20  ;;  %7309 = vmatprep.mubr.msk.f32.mxu0 %vm2010_vm4, %v1469_v60 }
  0xf3   : > { %v1822_v23 = vpop.permute.xlu0 %1821 }
  0xf4   : > { %7279 = vmatprep.mubr.msk.f32.mxu1 %vm1505_vm0, %v1822_v23  ;;  %v1828_v24 = vpop.permute.xlu1 %1827 }
  0xf5   : > { %7280 = vmatmul.mubr.msk.f32.vlgmr.msra.gmra.mxu1 %vm1505_vm0, %v1824_v22 }
  0xf7   : > { %v1826_v25 = vpop.permute.xlu0 %1825 }
  0xf8   : > { %7282 = vmatprep.mubr.msk.f32.mxu1 %vm1505_vm0, %v1826_v25 }
  0xf9   : > { %7283 = vmatmul.mubr.msk.f32.gmra.mxu1 %vm1505_vm0, %v1828_v24  ;;  %vm4442_vm0 = vcmask 1039360  }
 0x101   : > { %v1939_v37 = vpop.permute.xlu1 %1938 }
 0x104   : > { %v1944_v39 = vpop.permute.xlu0 %1943 }
 0x105   : > { %v1934_v49 = vpop.permute.xlu1 %1933 }
 0x108   : > { %v1929_v54 = vpop.permute.xlu0 %1928 }
 0x138   : > { %v8502_v26 = vpop.f32.mrf.mxu0  ;;  %v8504_v27 = vpop.f32.mrf.mxu1 }
 0x13a   : > { %v8506_v28 = vpop.f32.mrf.mxu0  ;;  %v8508_v29 = vpop.f32.mrf.mxu1 }
 0x1ac   : > { %v7273_v30 = vpop.f32.mrf.mxu0 }
 0x1ad   : > { %v7265_v31 = vpop.f32.mrf.mxu1 }
 0x1ae   : > { %v1802_v33 = vpop.f32.mrf.mxu0  ;;  %v1808_v42 = vadd.f32 %v7273_v30, %v7265_v31 }
 0x1af   : > { %v1706_v32 = vpop.f32.mrf.mxu1 }
 0x1b0   : > { %v7276_v35 = vpop.f32.mrf.mxu0  ;;  %v1803_v45 = vadd.f32 %v1802_v33, %v1706_v32 }
 0x1b1   : > { %v7268_v34 = vpop.f32.mrf.mxu1 }
 0x1b2   : > { %v1812_v40 = vpop.f32.mrf.mxu0  ;;  %v1818_v43 = vadd.f32 %v7276_v35, %v7268_v34 }
 0x1b3   : > { %v1716_v36 = vpop.f32.mrf.mxu1 }
 0x1b4   : > { %v1813_v46 = vadd.f32 %v1812_v40, %v1716_v36 }
 0x1b5   : > { %v7281_v38 = vpop.f32.mrf.mxu1 }
 0x1b6   : > { %v1923_v47 = vadd.f32 %v7281_v38, %v1808_v42 }
 0x1b7   : > { %v1903_v41 = vpop.f32.mrf.mxu1 }
 0x1b8   : > { %v1922_v51 = vadd.f32 %v1903_v41, %v1803_v45  ;;  %v1947_v55 = vadd.f32 %v1934_v49, %v1923_v47 }
 0x1b9   : > { %v7284_v44 = vpop.f32.mrf.mxu1 }
 0x1ba   : > { %v1925_v48 = vadd.f32 %v7284_v44, %v1818_v43  ;;  %v1946_v58 = vadd.f32 %v1929_v54, %v1922_v51  ;;  %v1951_v61 = vmax.f32 %v1947_v55, 0.0  ;;  %v2126_v54 = vld [vmem:[%s9857_s8 + $0x10] sm:$0xff]  ;;  %v2125_v55 = vld [vmem:[%s9857_s8 + $0x8] sm:$0xff] }
 0x1bb   : > { %v1913_v50 = vpop.f32.mrf.mxu1 }
 0x1bc   : > { %v1949_v52 = vadd.f32 %v1944_v39, %v1925_v48  ;;  %v1924_v53 = vadd.f32 %v1913_v50, %v1813_v46  ;;  %v1950_v62 = vmax.f32 %v1946_v58, 0.0 }
 0x1be   : > { %v1953_v56 = vmax.f32 %v1949_v52, 0.0  ;;  %v1948_v57 = vadd.f32 %v1939_v37, %v1924_v53  ;;  %v2127_v53 = vld [vmem:[%s9857_s8 + $0x18] sm:$0xff] }
 0x1c0   : > { %v1952_v59 = vmax.f32 %v1948_v57, 0.0  ;;  %1980 = vrot.lane.b32.xlu1 %v1953_v56, %s9788_s16  ;;  %7285 = vmatprep.subr.mxu0 %v1953_v56 }
 0x1c1   : > { %7286 = vmatpush3.msra.mxu0 %v1953_v56 }
 0x1c2   : > { %1978 = vrot.lane.b32.xlu0 %v1952_v59, %s9788_s16  ;;  %7287 = vmatprep.subr.mxu0 %v1952_v59 }
 0x1c3   : > { %7288 = vmatpush3.msra.mxu0 %v1952_v59 }
 0x1c4   : > { %1976 = vrot.lane.b32.xlu1 %v1951_v61, %s9788_s16  ;;  %7289 = vmatprep.subr.mxu0 %v1951_v61 }
 0x1c5   : > { %7290 = vmatpush3.msra.mxu0 %v1951_v61 }
 0x1c6   : > { %1974 = vrot.lane.b32.xlu0 %v1950_v62, %s9788_s16  ;;  %7291 = vmatprep.subr.mxu0 %v1950_v62  ;;  %s9881_s16 = sld [smem:[#allocation14_spill]] }
 0x1c7   : > { %7292 = vmatpush3.msra.mxu0 %v1950_v62 }
 0x1c8   : > { %1964 = vrot.lane.b32.xlu1 %v1953_v56, %s8174_s18  ;;  %v2124_v56 = vld [vmem:[%s9857_s8] sm:$0xff]  ;;  %s8188_s8 = smov 121  }
 0x1ca   : > { %1962 = vrot.lane.b32.xlu0 %v1952_v59, %s8174_s18 }
 0x1cc   : > { %1960 = vrot.lane.b32.xlu1 %v1951_v61, %s8174_s18 }
 0x1ce   : > { %1958 = vrot.lane.b32.xlu0 %v1950_v62, %s8174_s18 }
 0x1d0   : > { %2007 = vperm.xlu1 %8104, %v1476_v63  }
 0x1d2   : > { %1502 = vperm.xlu0 %8103, %v1484_v0  }
 0x1d4   : > { %2002 = vperm.xlu1 %8104, %v1475_v1  }
 0x1d6   : > { %1497 = vperm.xlu0 %8103, %v1483_v2   ;;  %v2121_v2 = vld [vmem:[%s9859_s3 + $0x8] sm:$0xff] }
 0x1d8   : > { %1997 = vperm.xlu1 %8104, %v1474_v3   ;;  %v2122_v3 = vld [vmem:[%s9859_s3 + $0x10] sm:$0xff] }
 0x1da   : > { %1492 = vperm.xlu0 %8103, %v1482_v4   ;;  %v2123_v4 = vld [vmem:[%s9859_s3 + $0x18] sm:$0xff] }
 0x1dc   : > { %1992 = vperm.xlu1 %8104, %v1473_v5  }
 0x1de   : > { %1487 = vperm.xlu0 %8103, %v1481_v6  }
 0x232   : > { %v1981_v8 = vpop.permute.xlu1 %1980 }
 0x233   : > { %7293 = vmatprep.subr.msk.mxu0 %vm8529_vm5, %v1981_v8 }
 0x234   : > { %v1979_v9 = vpop.permute.xlu0 %1978  ;;  %7294 = vmatpush3.msk.msra.mxu0 %vm8529_vm5, %v1981_v8 }
 0x235   : > { %7295 = vmatprep.subr.msk.mxu0 %vm8529_vm5, %v1979_v9 }
 0x236   : > { %v1977_v10 = vpop.permute.xlu1 %1976  ;;  %7296 = vmatpush3.msk.msra.mxu0 %vm8529_vm5, %v1979_v9 }
 0x237   : > { %7297 = vmatprep.subr.msk.mxu0 %vm8529_vm5, %v1977_v10 }
 0x238   : > { %v1975_v12 = vpop.permute.xlu0 %1974  ;;  %7298 = vmatpush3.msk.msra.mxu0 %vm8529_vm5, %v1977_v10 }
 0x239   : > { %7299 = vmatprep.subr.msk.mxu0 %vm8529_vm5, %v1975_v12 }
 0x23a   : > { %v1965_v13 = vpop.permute.xlu1 %1964  ;;  %7300 = vmatpush3.msk.msra.mxu0 %vm8529_vm5, %v1975_v12 }
 0x23b   : > { %7301 = vmatprep.subr.msk.mxu0 %vm8544_vm6, %v1965_v13 }
 0x23c   : > { %v1963_v14 = vpop.permute.xlu0 %1962  ;;  %7302 = vmatpush3.msk.msra.mxu0 %vm8544_vm6, %v1965_v13 }
 0x23d   : > { %7303 = vmatprep.subr.msk.mxu0 %vm8544_vm6, %v1963_v14 }
 0x23e   : > { %v1961_v15 = vpop.permute.xlu1 %1960  ;;  %7304 = vmatpush3.msk.msra.mxu0 %vm8544_vm6, %v1963_v14 }
 0x23f   : > { %7305 = vmatprep.subr.msk.mxu0 %vm8544_vm6, %v1961_v15 }
 0x240   : > { %v1959_v16 = vpop.permute.xlu0 %1958  ;;  %7306 = vmatpush3.msk.msra.mxu0 %vm8544_vm6, %v1961_v15 }
 0x241   : > { %7307 = vmatprep.subr.msk.mxu0 %vm8544_vm6, %v1959_v16 }
 0x242   : > { %7308 = vmatpush3.msk.msra.mxu0 %vm8544_vm6, %v1959_v16 }
 0x243   : > { %7310 = vmatmul.mubr.msk.f32.vlgmr.msra.gmra.mxu0 %vm2010_vm4, %v1470_v17 }
 0x244   : > { %7312 = vmatprep.mubr.msk.f32.mxu0 %vm2010_vm4, %v1471_v18 }
 0x247   : > { %7313 = vmatmul.mubr.msk.f32.gmra.mxu0 %vm2010_vm4, %v1472_v19 }
 0x24b   : > { %v2008_v20 = vpop.permute.xlu1 %2007 }
 0x24d   : > { %v1503_v21 = vpop.permute.xlu0 %1502 }
 0x24e   : > { %v1604_v38 = vadd.f32 %v8504_v27, %v1503_v21  ;;  %v2128_v21 = vld [vmem:[%s8242_s14] sm:$0xff] }
 0x24f   : > { %v2003_v22 = vpop.permute.xlu1 %2002  ;;  %7369 = vmatprep.mubr.msk.f32.mxu0 %vm2010_vm4, %v2128_v21 }
 0x251   : > { %v1498_v23 = vpop.permute.xlu0 %1497 }
 0x252   : > { %v1599_v42 = vadd.f32 %v8508_v29, %v1498_v23 }
 0x253   : > { %v1998_v24 = vpop.permute.xlu1 %1997 }
 0x255   : > { %v1493_v30 = vpop.permute.xlu0 %1492 }
 0x256   : > { %v1594_v44 = vadd.f32 %v8502_v26, %v1493_v30  ;;  %v2120_v26 = vld [vmem:[%s9859_s3] sm:$0xff]  ;;  %v2133_v30 = vld [vmem:[%s8247_s19 + $0x8] sm:$0xff]  ;;  %s9893_s3 = sld [smem:[#allocation24_spill]] }
 0x257   : > { %v1993_v33 = vpop.permute.xlu1 %1992  ;;  %7339 = vmatprep.mubr.msk.f32.mxu1 %vm2010_vm4, %v2120_v26 }
 0x259   : > { %v1488_v43 = vpop.permute.xlu0 %1487 }
 0x25a   : > { %v1589_v48 = vadd.f32 %v8506_v28, %v1488_v43 }
 0x303   : > { %v7311_v25 = vpop.f32.mrf.mxu0 }
 0x304   : > { %v2095_v32 = vadd.f32 %v7311_v25, %v1998_v24  ;;  %v2135_v24 = vld [vmem:[%s8247_s19 + $0x18] sm:$0xff]  ;;  %v2134_v25 = vld [vmem:[%s8247_s19 + $0x10] sm:$0xff] }
 0x305   : > { %v2089_v31 = vpop.f32.mrf.mxu0 }
 0x306   : > { %v2090_v35 = vadd.f32 %v2089_v31, %v1993_v33  ;;  %v2109_v39 = vmax.f32 %v2095_v32, 0.0  ;;  %v2132_v31 = vld [vmem:[%s8247_s19] sm:$0xff] }
 0x307   : > { %v7314_v34 = vpop.f32.mrf.mxu0 }
 0x308   : > { %v2105_v36 = vadd.f32 %v7314_v34, %v2008_v20  ;;  %v2108_v45 = vmax.f32 %v2090_v35, 0.0  ;;  %v2113_v49 = vadd.f32 %v2109_v39, %v1594_v44  ;;  %v2129_v39 = vld [vmem:[%s8242_s14 + $0x8] sm:$0xff] }
 0x309   : > { %v2099_v37 = vpop.f32.mrf.mxu0 }
 0x30a   : > { %v2111_v40 = vmax.f32 %v2105_v36, 0.0  ;;  %v2100_v41 = vadd.f32 %v2099_v37, %v2003_v22  ;;  %v2112_v52 = vadd.f32 %v2108_v45, %v1589_v48  ;;  %v8589_v29 = vmax.f32 %v2113_v49, 0.0 }
 0x30c   : > { %v2115_v46 = vadd.f32 %v2111_v40, %v1604_v38  ;;  %v2110_v47 = vmax.f32 %v2100_v41, 0.0  ;;  %v8596_v28 = vmax.f32 %v2112_v52, 0.0  ;;  %v2130_v40 = vld [vmem:[%s8242_s14 + $0x10] sm:$0xff]  ;;  %v2131_v41 = vld [vmem:[%s8242_s14 + $0x18] sm:$0xff] }
 0x30e   : > { %v8580_v50 = vmax.f32 %v2115_v46, 0.0  ;;  %v2114_v51 = vadd.f32 %v2110_v47, %v1599_v42 }
 0x310   : > { %v8582_v27 = vmax.f32 %v2114_v51, 0.0  ;;  %2162 = vrot.lane.b32.xlu1 %v8580_v50, %s8174_s18  ;;  %7315 = vmatprep.subr.mxu1 %v8580_v50 }
 0x311   : > { %7316 = vmatpush3.msra.mxu1 %v8580_v50 }
 0x312   : > { %2160 = vrot.lane.b32.xlu0 %v8582_v27, %s8174_s18  ;;  %7317 = vmatprep.subr.mxu1 %v8582_v27 }
 0x313   : > { %7318 = vmatpush3.msra.mxu1 %v8582_v27 }
 0x314   : > { %2158 = vrot.lane.b32.xlu1 %v8589_v29, %s8174_s18  ;;  %7319 = vmatprep.subr.mxu1 %v8589_v29 }
 0x315   : > { %7320 = vmatpush3.msra.mxu1 %v8589_v29 }
 0x316   : > { %2156 = vrot.lane.b32.xlu0 %v8596_v28, %s8174_s18  ;;  %7321 = vmatprep.subr.mxu1 %v8596_v28 }
 0x317   : > { %7322 = vmatpush3.msra.mxu1 %v8596_v28 }
 0x318   : > { %2146 = vrot.lane.b32.xlu1 %v8580_v50, %s8177_s23 }
 0x31a   : > { %2144 = vrot.lane.b32.xlu0 %v8582_v27, %s8177_s23 }
 0x31c   : > { %2142 = vrot.lane.b32.xlu1 %v8589_v29, %s8177_s23 }
 0x31e   : > { %2140 = vrot.lane.b32.xlu0 %v8596_v28, %s8177_s23 }
 0x320   : > { %2189 = vperm.xlu1 %8104, %v2127_v53  }
 0x322   : > { %2184 = vperm.xlu0 %8103, %v2126_v54  }
 0x324   : > { %2179 = vperm.xlu1 %8104, %v2125_v55  }
 0x326   : > { %2174 = vperm.xlu0 %8103, %v2124_v56  }
 0x382   : > { %v2163_v57 = vpop.permute.xlu1 %2162 }
 0x383   : > { %7323 = vmatprep.subr.msk.mxu1 %vm8544_vm6, %v2163_v57 }
 0x384   : > { %v2161_v58 = vpop.permute.xlu0 %2160  ;;  %7324 = vmatpush3.msk.msra.mxu1 %vm8544_vm6, %v2163_v57 }
 0x385   : > { %7325 = vmatprep.subr.msk.mxu1 %vm8544_vm6, %v2161_v58 }
 0x386   : > { %v2159_v59 = vpop.permute.xlu1 %2158  ;;  %7326 = vmatpush3.msk.msra.mxu1 %vm8544_vm6, %v2161_v58 }
 0x387   : > { %7327 = vmatprep.subr.msk.mxu1 %vm8544_vm6, %v2159_v59 }
 0x388   : > { %v2157_v61 = vpop.permute.xlu0 %2156  ;;  %7328 = vmatpush3.msk.msra.mxu1 %vm8544_vm6, %v2159_v59 }
 0x389   : > { %7329 = vmatprep.subr.msk.mxu1 %vm8544_vm6, %v2157_v61 }
 0x38a   : > { %v2147_v62 = vpop.permute.xlu1 %2146  ;;  %7330 = vmatpush3.msk.msra.mxu1 %vm8544_vm6, %v2157_v61 }
 0x38b   : > { %7331 = vmatprep.subr.msk.mxu1 %vm8629_vm7, %v2147_v62 }
 0x38c   : > { %v2145_v63 = vpop.permute.xlu0 %2144  ;;  %7332 = vmatpush3.msk.msra.mxu1 %vm8629_vm7, %v2147_v62 }
 0x38d   : > { %7333 = vmatprep.subr.msk.mxu1 %vm8629_vm7, %v2145_v63 }
 0x38e   : > { %v2143_v0 = vpop.permute.xlu1 %2142  ;;  %7334 = vmatpush3.msk.msra.mxu1 %vm8629_vm7, %v2145_v63 }
 0x38f   : > { %7335 = vmatprep.subr.msk.mxu1 %vm8629_vm7, %v2143_v0 }
 0x390   : > { %v2141_v1 = vpop.permute.xlu0 %2140  ;;  %7336 = vmatpush3.msk.msra.mxu1 %vm8629_vm7, %v2143_v0 }
 0x391   : > { %7337 = vmatprep.subr.msk.mxu1 %vm8629_vm7, %v2141_v1 }
 0x392   : > { %7338 = vmatpush3.msk.msra.mxu1 %vm8629_vm7, %v2141_v1  ;;  %v2458_v1 = vld [vmem:[%s8252_s24] sm:$0xff] }
 0x393   : > { %7340 = vmatmul.mubr.msk.f32.vlgmr.msra.gmra.mxu1 %vm2010_vm4, %v2121_v2  ;;  %v2463_v2 = vld [vmem:[%s8257_s30 + $0x8] sm:$0xff] }
 0x394   : > { %7342 = vmatprep.mubr.msk.f32.mxu1 %vm2010_vm4, %v2122_v3  ;;  %v2462_v3 = vld [vmem:[%s8257_s30] sm:$0xff] }
 0x397   : > { %7343 = vmatmul.mubr.msk.f32.gmra.mxu1 %vm2010_vm4, %v2123_v4 }
 0x398   : > { %7399 = vmatprep.mubr.msk.f32.mxu1 %vm2010_vm4, %v2458_v1 }
 0x39b   : > { %v2190_v5 = vpop.permute.xlu1 %2189 }
 0x39d   : > { %v2185_v8 = vpop.permute.xlu0 %2184 }
 0x39f   : > { %v2180_v13 = vpop.permute.xlu1 %2179 }
 0x3a1   : > { %v2175_v18 = vpop.permute.xlu0 %2174 }
 0x453   : > { %v7341_v6 = vpop.f32.mrf.mxu1 }
 0x454   : > { %v2276_v15 = vadd.f32 %v7341_v6, %v2180_v13 }
 0x455   : > { %v2270_v9 = vpop.f32.mrf.mxu1 }
 0x456   : > { %v2271_v19 = vadd.f32 %v2270_v9, %v2175_v18  ;;  %v2290_v22 = vmax.f32 %v2276_v15, 0.0  ;;  %v2459_v15 = vld [vmem:[%s8252_s24 + $0x8] sm:$0xff] }
 0x457   : > { %v7344_v10 = vpop.f32.mrf.mxu1 }
 0x458   : > { %v2286_v12 = vadd.f32 %v7344_v10, %v2190_v5  ;;  %v2289_v23 = vmax.f32 %v2271_v19, 0.0 }
 0x459   : > { %v2280_v14 = vpop.f32.mrf.mxu1 }
 0x45a   : > { %v2292_v16 = vmax.f32 %v2286_v12, 0.0  ;;  %v2281_v17 = vadd.f32 %v2280_v14, %v2185_v8 }
 0x45c   : > { %v2291_v20 = vmax.f32 %v2281_v17, 0.0  ;;  %2319 = vrot.lane.b32.xlu1 %v2292_v16, %s8174_s18  ;;  %7345 = vmatprep.subr.mxu0 %v2292_v16  ;;  %v2461_v17 = vld [vmem:[%s8252_s24 + $0x18] sm:$0xff] }
 0x45d   : > { %7346 = vmatpush3.msra.mxu0 %v2292_v16 }
 0x45e   : > { %2317 = vrot.lane.b32.xlu0 %v2291_v20, %s8174_s18  ;;  %7347 = vmatprep.subr.mxu0 %v2291_v20 }
 0x45f   : > { %7348 = vmatpush3.msra.mxu0 %v2291_v20 }
 0x460   : > { %2315 = vrot.lane.b32.xlu1 %v2290_v22, %s8174_s18  ;;  %7349 = vmatprep.subr.mxu0 %v2290_v22 }
 0x461   : > { %7350 = vmatpush3.msra.mxu0 %v2290_v22 }
 0x462   : > { %2313 = vrot.lane.b32.xlu0 %v2289_v23, %s8174_s18  ;;  %7351 = vmatprep.subr.mxu0 %v2289_v23  ;;  %s9875_s18 = sld [smem:[#allocation10_spill]] }
 0x463   : > { %7352 = vmatpush3.msra.mxu0 %v2289_v23 }
 0x464   : > { %2303 = vrot.lane.b32.xlu1 %v2292_v16, %s8177_s23  ;;  %v2460_v16 = vld [vmem:[%s8252_s24 + $0x10] sm:$0xff] }
 0x466   : > { %2301 = vrot.lane.b32.xlu0 %v2291_v20, %s8177_s23 }
 0x468   : > { %2299 = vrot.lane.b32.xlu1 %v2290_v22, %s8177_s23 }
 0x46a   : > { %2297 = vrot.lane.b32.xlu0 %v2289_v23, %s8177_s23 }
 0x46c   : > { %2346 = vperm.xlu1 %8104, %v2135_v24  }
 0x46e   : > { %2341 = vperm.xlu0 %8103, %v2134_v25  }
 0x470   : > { %2336 = vperm.xlu1 %8104, %v2133_v30  }
 0x472   : > { %2331 = vperm.xlu0 %8103, %v2132_v31  }
 0x4ce   : > { %v2320_v32 = vpop.permute.xlu1 %2319 }
 0x4cf   : > { %7353 = vmatprep.subr.msk.mxu0 %vm8544_vm6, %v2320_v32 }
 0x4d0   : > { %v2318_v33 = vpop.permute.xlu0 %2317  ;;  %7354 = vmatpush3.msk.msra.mxu0 %vm8544_vm6, %v2320_v32 }
 0x4d1   : > { %7355 = vmatprep.subr.msk.mxu0 %vm8544_vm6, %v2318_v33 }
 0x4d2   : > { %v2316_v34 = vpop.permute.xlu1 %2315  ;;  %7356 = vmatpush3.msk.msra.mxu0 %vm8544_vm6, %v2318_v33 }
 0x4d3   : > { %7357 = vmatprep.subr.msk.mxu0 %vm8544_vm6, %v2316_v34 }
 0x4d4   : > { %v2314_v35 = vpop.permute.xlu0 %2313  ;;  %7358 = vmatpush3.msk.msra.mxu0 %vm8544_vm6, %v2316_v34 }
 0x4d5   : > { %7359 = vmatprep.subr.msk.mxu0 %vm8544_vm6, %v2314_v35 }
 0x4d6   : > { %v2304_v36 = vpop.permute.xlu1 %2303  ;;  %7360 = vmatpush3.msk.msra.mxu0 %vm8544_vm6, %v2314_v35 }
 0x4d7   : > { %7361 = vmatprep.subr.msk.mxu0 %vm8629_vm7, %v2304_v36 }
 0x4d8   : > { %v2302_v37 = vpop.permute.xlu0 %2301  ;;  %7362 = vmatpush3.msk.msra.mxu0 %vm8629_vm7, %v2304_v36  ;;  %v2466_v36 = vld [vmem:[%s9858_s6] sm:$0xff] }
 0x4d9   : > { %7363 = vmatprep.subr.msk.mxu0 %vm8629_vm7, %v2302_v37 }
 0x4da   : > { %v2300_v38 = vpop.permute.xlu1 %2299  ;;  %7364 = vmatpush3.msk.msra.mxu0 %vm8629_vm7, %v2302_v37 }
 0x4db   : > { %7365 = vmatprep.subr.msk.mxu0 %vm8629_vm7, %v2300_v38 }
 0x4dc   : > { %v2298_v11 = vpop.permute.xlu0 %2297  ;;  %7366 = vmatpush3.msk.msra.mxu0 %vm8629_vm7, %v2300_v38 }
 0x4dd   : > { %7367 = vmatprep.subr.msk.mxu0 %vm8629_vm7, %v2298_v11 }
 0x4de   : > { %7368 = vmatpush3.msk.msra.mxu0 %vm8629_vm7, %v2298_v11  ;;  %v2473_v11 = vld [vmem:[%s9869_s28 + $0x18] sm:$0xff] }
 0x4df   : > { %7370 = vmatmul.mubr.msk.f32.vlgmr.msra.gmra.mxu0 %vm2010_vm4, %v2129_v39  ;;  %v2472_v39 = vld [vmem:[%s9869_s28 + $0x10] sm:$0xff] }
 0x4e0   : > { %7372 = vmatprep.mubr.msk.f32.mxu0 %vm2010_vm4, %v2130_v40  ;;  %v2471_v40 = vld [vmem:[%s9869_s28 + $0x8] sm:$0xff] }
 0x4e3   : > { %7373 = vmatmul.mubr.msk.f32.gmra.mxu0 %vm2010_vm4, %v2131_v41  ;;  %v2470_v41 = vld [vmem:[%s9869_s28] sm:$0xff] }
 0x4e4   : > { %7429 = vmatprep.mubr.msk.f32.mxu0 %vm2010_vm4, %v2466_v36 }
 0x4e7   : > { %v2347_v42 = vpop.permute.xlu1 %2346 }
 0x4e9   : > { %v2342_v43 = vpop.permute.xlu0 %2341 }
 0x4eb   : > { %v2337_v45 = vpop.permute.xlu1 %2336 }
 0x4ed   : > { %v2332_v48 = vpop.permute.xlu0 %2331 }
 0x59f   : > { %v7371_v44 = vpop.f32.mrf.mxu0 }
 0x5a0   : > { %v2433_v47 = vadd.f32 %v7371_v44, %v2337_v45 }
 0x5a1   : > { %v2427_v46 = vpop.f32.mrf.mxu0 }
 0x5a2   : > { %v2428_v51 = vadd.f32 %v2427_v46, %v2332_v48  ;;  %v2447_v53 = vmax.f32 %v2433_v47, 0.0 }
 0x5a3   : > { %v7374_v49 = vpop.f32.mrf.mxu0 }
 0x5a4   : > { %v2443_v52 = vadd.f32 %v7374_v49, %v2347_v42  ;;  %v2446_v56 = vmax.f32 %v2428_v51, 0.0  ;;  %v2451_v59 = vadd.f32 %v2447_v53, %v8589_v29  ;;  %v2465_v29 = vld [vmem:[%s8257_s30 + $0x18] sm:$0xff]  ;;  %v2467_v49 = vld [vmem:[%s9858_s6 + $0x8] sm:$0xff]  ;;  %v2468_v51 = vld [vmem:[%s9858_s6 + $0x10] sm:$0xff] }
 0x5a5   : > { %v2437_v26 = vpop.f32.mrf.mxu0 }
 0x5a6   : > { %v2449_v54 = vmax.f32 %v2443_v52, 0.0  ;;  %v2438_v55 = vadd.f32 %v2437_v26, %v2342_v43  ;;  %v2450_v63 = vadd.f32 %v2446_v56, %v8596_v28  ;;  %v2464_v28 = vld [vmem:[%s8257_s30 + $0x10] sm:$0xff]  ;;  %v2469_v52 = vld [vmem:[%s9858_s6 + $0x18] sm:$0xff]  ;;  %s8187_s6 = smov 122  }
 0x5a8   : > { %v2453_v57 = vadd.f32 %v2449_v54, %v8580_v50  ;;  %v2448_v58 = vmax.f32 %v2438_v55, 0.0  ;;  %v8726_v50 = vmax.f32 %v2451_v59, 0.0 }
 0x5aa   : > { %v8715_v61 = vmax.f32 %v2453_v57, 0.0  ;;  %v2452_v62 = vadd.f32 %v2448_v58, %v8582_v27  ;;  %v8733_v27 = vmax.f32 %v2450_v63, 0.0 }
 0x5ac   : > { %v8719_v0 = vmax.f32 %v2452_v62, 0.0  ;;  %2501 = vrot.lane.b32.xlu1 %v8715_v61, %s8177_s23  ;;  %7375 = vmatprep.subr.mxu1 %v8715_v61 }
 0x5ad   : > { %7376 = vmatpush3.msra.mxu1 %v8715_v61 }
 0x5ae   : > { %2499 = vrot.lane.b32.xlu0 %v8719_v0, %s8177_s23  ;;  %7377 = vmatprep.subr.mxu1 %v8719_v0 }
 0x5af   : > { %7378 = vmatpush3.msra.mxu1 %v8719_v0 }
 0x5b0   : > { %2497 = vrot.lane.b32.xlu1 %v8726_v50, %s8177_s23  ;;  %7379 = vmatprep.subr.mxu1 %v8726_v50 }
 0x5b1   : > { %7380 = vmatpush3.msra.mxu1 %v8726_v50 }
 0x5b2   : > { %2495 = vrot.lane.b32.xlu0 %v8733_v27, %s8177_s23  ;;  %7381 = vmatprep.subr.mxu1 %v8733_v27 }
 0x5b3   : > { %7382 = vmatpush3.msra.mxu1 %v8733_v27 }
 0x5b4   : > { %2484 = vrot.lane.b32.xlu1 %v8715_v61, %s8178_s26 }
 0x5b6   : > { %2482 = vrot.lane.b32.xlu0 %v8719_v0, %s8178_s26 }
 0x5b8   : > { %2480 = vrot.lane.b32.xlu1 %v8726_v50, %s8178_s26 }
 0x5ba   : > { %2478 = vrot.lane.b32.xlu0 %v8733_v27, %s8178_s26 }
 0x5bc   : > { %2528 = vperm.xlu1 %8104, %v2465_v29  }
 0x5be   : > { %2523 = vperm.xlu0 %8103, %v2464_v28  }
 0x5c0   : > { %2518 = vperm.xlu1 %8104, %v2463_v2  }
 0x5c2   : > { %2513 = vperm.xlu0 %8103, %v2462_v3  }
 0x61e   : > { %v2502_v4 = vpop.permute.xlu1 %2501 }
 0x61f   : > { %7383 = vmatprep.subr.msk.mxu1 %vm8629_vm7, %v2502_v4 }
 0x620   : > { %v2500_v5 = vpop.permute.xlu0 %2499  ;;  %7384 = vmatpush3.msk.msra.mxu1 %vm8629_vm7, %v2502_v4 }
 0x621   : > { %7385 = vmatprep.subr.msk.mxu1 %vm8629_vm7, %v2500_v5 }
 0x622   : > { %v2498_v6 = vpop.permute.xlu1 %2497  ;;  %7386 = vmatpush3.msk.msra.mxu1 %vm8629_vm7, %v2500_v5 }
 0x623   : > { %7387 = vmatprep.subr.msk.mxu1 %vm8629_vm7, %v2498_v6 }
 0x624   : > { %v2496_v8 = vpop.permute.xlu0 %2495  ;;  %7388 = vmatpush3.msk.msra.mxu1 %vm8629_vm7, %v2498_v6 }
 0x625   : > { %7389 = vmatprep.subr.msk.mxu1 %vm8629_vm7, %v2496_v8 }
 0x626   : > { %v2485_v10 = vpop.permute.xlu1 %2484  ;;  %7390 = vmatpush3.msk.msra.mxu1 %vm8629_vm7, %v2496_v8 }
 0x627   : > { %7391 = vmatprep.subr.msk.mxu1 %vm8767_vm9, %v2485_v10 }
 0x628   : > { %v2483_v12 = vpop.permute.xlu0 %2482  ;;  %7392 = vmatpush3.msk.msra.mxu1 %vm8767_vm9, %v2485_v10 }
 0x629   : > { %7393 = vmatprep.subr.msk.mxu1 %vm8767_vm9, %v2483_v12 }
 0x62a   : > { %v2481_v13 = vpop.permute.xlu1 %2480  ;;  %7394 = vmatpush3.msk.msra.mxu1 %vm8767_vm9, %v2483_v12 }
 0x62b   : > { %7395 = vmatprep.subr.msk.mxu1 %vm8767_vm9, %v2481_v13 }
 0x62c   : > { %v2479_v14 = vpop.permute.xlu0 %2478  ;;  %7396 = vmatpush3.msk.msra.mxu1 %vm8767_vm9, %v2481_v13 }
 0x62d   : > { %7397 = vmatprep.subr.msk.mxu1 %vm8767_vm9, %v2479_v14 }
 0x62e   : > { %7398 = vmatpush3.msk.msra.mxu1 %vm8767_vm9, %v2479_v14  ;;  %v2797_v14 = vld [vmem:[%s9870_s1] sm:$0xff] }
 0x62f   : > { %7400 = vmatmul.mubr.msk.f32.vlgmr.msra.gmra.mxu1 %vm2010_vm4, %v2459_v15  ;;  %v2802_v15 = vld [vmem:[%s9871_s2 + $0x8] sm:$0xff] }
 0x630   : > { %7402 = vmatprep.mubr.msk.f32.mxu1 %vm2010_vm4, %v2460_v16  ;;  %v2801_v16 = vld [vmem:[%s9871_s2] sm:$0xff] }
 0x633   : > { %7403 = vmatmul.mubr.msk.f32.gmra.mxu1 %vm2010_vm4, %v2461_v17 }
 0x634   : > { %7459 = vmatprep.mubr.msk.f32.mxu1 %vm2010_vm4, %v2797_v14 }
 0x637   : > { %v2529_v18 = vpop.permute.xlu1 %2528 }
 0x639   : > { %v2524_v20 = vpop.permute.xlu0 %2523 }
 0x63b   : > { %v2519_v24 = vpop.permute.xlu1 %2518 }
 0x63d   : > { %v2514_v33 = vpop.permute.xlu0 %2513 }
 0x6ef   : > { %v7401_v19 = vpop.f32.mrf.mxu1 }
 0x6f0   : > { %v2615_v30 = vadd.f32 %v7401_v19, %v2519_v24 }
 0x6f1   : > { %v2609_v21 = vpop.f32.mrf.mxu1 }
 0x6f2   : > { %v2610_v34 = vadd.f32 %v2609_v21, %v2514_v33  ;;  %v2629_v37 = vmax.f32 %v2615_v30, 0.0  ;;  %v2798_v30 = vld [vmem:[%s9870_s1 + $0x8] sm:$0xff] }
 0x6f3   : > { %v7404_v22 = vpop.f32.mrf.mxu1 }
 0x6f4   : > { %v2625_v23 = vadd.f32 %v7404_v22, %v2529_v18  ;;  %v2628_v38 = vmax.f32 %v2610_v34, 0.0 }
 0x6f5   : > { %v2619_v25 = vpop.f32.mrf.mxu1 }
 0x6f6   : > { %v2631_v31 = vmax.f32 %v2625_v23, 0.0  ;;  %v2620_v32 = vadd.f32 %v2619_v25, %v2524_v20 }
 0x6f8   : > { %v2630_v35 = vmax.f32 %v2620_v32, 0.0  ;;  %2658 = vrot.lane.b32.xlu1 %v2631_v31, %s8177_s23  ;;  %7405 = vmatprep.subr.mxu0 %v2631_v31  ;;  %v2800_v32 = vld [vmem:[%s9870_s1 + $0x18] sm:$0xff] }
 0x6f9   : > { %7406 = vmatpush3.msra.mxu0 %v2631_v31 }
 0x6fa   : > { %2656 = vrot.lane.b32.xlu0 %v2630_v35, %s8177_s23  ;;  %7407 = vmatprep.subr.mxu0 %v2630_v35 }
 0x6fb   : > { %7408 = vmatpush3.msra.mxu0 %v2630_v35 }
 0x6fc   : > { %2654 = vrot.lane.b32.xlu1 %v2629_v37, %s8177_s23  ;;  %7409 = vmatprep.subr.mxu0 %v2629_v37 }
 0x6fd   : > { %7410 = vmatpush3.msra.mxu0 %v2629_v37 }
 0x6fe   : > { %2652 = vrot.lane.b32.xlu0 %v2628_v38, %s8177_s23  ;;  %7411 = vmatprep.subr.mxu0 %v2628_v38  ;;  %s9877_s23 = sld [smem:[#allocation12_spill]] }
 0x6ff   : > { %7412 = vmatpush3.msra.mxu0 %v2628_v38 }
 0x700   : > { %2642 = vrot.lane.b32.xlu1 %v2631_v31, %s8178_s26  ;;  %v2799_v31 = vld [vmem:[%s9870_s1 + $0x10] sm:$0xff]  ;;  %s9792_s1 = smov 64  }
 0x702   : > { %2640 = vrot.lane.b32.xlu0 %v2630_v35, %s8178_s26 }
 0x704   : > { %2638 = vrot.lane.b32.xlu1 %v2629_v37, %s8178_s26 }
 0x706   : > { %2636 = vrot.lane.b32.xlu0 %v2628_v38, %s8178_s26 }
 0x708   : > { %2685 = vperm.xlu1 %8104, %v2473_v11  }
 0x70a   : > { %2680 = vperm.xlu0 %8103, %v2472_v39  }
 0x70c   : > { %2675 = vperm.xlu1 %8104, %v2471_v40  }
 0x70e   : > { %2670 = vperm.xlu0 %8103, %v2470_v41  }
 0x76a   : > { %v2659_v42 = vpop.permute.xlu1 %2658 }
 0x76b   : > { %7413 = vmatprep.subr.msk.mxu0 %vm8629_vm7, %v2659_v42 }
 0x76c   : > { %v2657_v43 = vpop.permute.xlu0 %2656  ;;  %7414 = vmatpush3.msk.msra.mxu0 %vm8629_vm7, %v2659_v42 }
 0x76d   : > { %7415 = vmatprep.subr.msk.mxu0 %vm8629_vm7, %v2657_v43 }
 0x76e   : > { %v2655_v44 = vpop.permute.xlu1 %2654  ;;  %7416 = vmatpush3.msk.msra.mxu0 %vm8629_vm7, %v2657_v43 }
 0x76f   : > { %7417 = vmatprep.subr.msk.mxu0 %vm8629_vm7, %v2655_v44 }
 0x770   : > { %v2653_v45 = vpop.permute.xlu0 %2652  ;;  %7418 = vmatpush3.msk.msra.mxu0 %vm8629_vm7, %v2655_v44 }
 0x771   : > { %7419 = vmatprep.subr.msk.mxu0 %vm8629_vm7, %v2653_v45 }
 0x772   : > { %v2643_v46 = vpop.permute.xlu1 %2642  ;;  %7420 = vmatpush3.msk.msra.mxu0 %vm8629_vm7, %v2653_v45 }
 0x773   : > { %7421 = vmatprep.subr.msk.mxu0 %vm8767_vm9, %v2643_v46 }
 0x774   : > { %v2641_v47 = vpop.permute.xlu0 %2640  ;;  %7422 = vmatpush3.msk.msra.mxu0 %vm8767_vm9, %v2643_v46  ;;  %v2805_v46 = vld [vmem:[%s9874_s15] sm:$0xff] }
 0x775   : > { %7423 = vmatprep.subr.msk.mxu0 %vm8767_vm9, %v2641_v47 }
 0x776   : > { %v2639_v48 = vpop.permute.xlu1 %2638  ;;  %7424 = vmatpush3.msk.msra.mxu0 %vm8767_vm9, %v2641_v47 }
 0x777   : > { %7425 = vmatprep.subr.msk.mxu0 %vm8767_vm9, %v2639_v48 }
 0x778   : > { %v2637_v60 = vpop.permute.xlu0 %2636  ;;  %7426 = vmatpush3.msk.msra.mxu0 %vm8767_vm9, %v2639_v48 }
 0x779   : > { %7427 = vmatprep.subr.msk.mxu0 %vm8767_vm9, %v2637_v60 }
 0x77a   : > { %7428 = vmatpush3.msk.msra.mxu0 %vm8767_vm9, %v2637_v60  ;;  %v2812_v60 = vld [vmem:[%s9875_s18 + $0x18] sm:$0xff] }
 0x77b   : > { %7430 = vmatmul.mubr.msk.f32.vlgmr.msra.gmra.mxu0 %vm2010_vm4, %v2467_v49  ;;  %v2811_v49 = vld [vmem:[%s9875_s18 + $0x10] sm:$0xff] }
 0x77c   : > { %7432 = vmatprep.mubr.msk.f32.mxu0 %vm2010_vm4, %v2468_v51  ;;  %v2810_v51 = vld [vmem:[%s9875_s18 + $0x8] sm:$0xff] }
 0x77f   : > { %7433 = vmatmul.mubr.msk.f32.gmra.mxu0 %vm2010_vm4, %v2469_v52  ;;  %v2809_v52 = vld [vmem:[%s9875_s18] sm:$0xff] }
 0x780   : > { %7489 = vmatprep.mubr.msk.f32.mxu0 %vm2010_vm4, %v2805_v46 }
 0x783   : > { %v2686_v26 = vpop.permute.xlu1 %2685 }
 0x785   : > { %v2681_v53 = vpop.permute.xlu0 %2680 }
 0x787   : > { %v2676_v55 = vpop.permute.xlu1 %2675 }
 0x789   : > { %v2671_v58 = vpop.permute.xlu0 %2670 }
 0x83b   : > { %v7431_v54 = vpop.f32.mrf.mxu0 }
 0x83c   : > { %v2772_v57 = vadd.f32 %v7431_v54, %v2676_v55 }
 0x83d   : > { %v2766_v56 = vpop.f32.mrf.mxu0 }
 0x83e   : > { %v2767_v62 = vadd.f32 %v2766_v56, %v2671_v58  ;;  %v2786_v29 = vmax.f32 %v2772_v57, 0.0 }
 0x83f   : > { %v7434_v59 = vpop.f32.mrf.mxu0 }
 0x840   : > { %v2782_v63 = vadd.f32 %v7434_v59, %v2686_v26  ;;  %v2785_v3 = vmax.f32 %v2767_v62, 0.0  ;;  %v2790_v6 = vadd.f32 %v2786_v29, %v8726_v50  ;;  %v2804_v50 = vld [vmem:[%s9871_s2 + $0x18] sm:$0xff]  ;;  %v2806_v59 = vld [vmem:[%s9874_s15 + $0x8] sm:$0xff]  ;;  %v2807_v62 = vld [vmem:[%s9874_s15 + $0x10] sm:$0xff] }
 0x841   : > { %v2776_v1 = vpop.f32.mrf.mxu0 }
 0x842   : > { %v2788_v28 = vmax.f32 %v2782_v63, 0.0  ;;  %v2777_v2 = vadd.f32 %v2776_v1, %v2681_v53  ;;  %v2789_v12 = vadd.f32 %v2785_v3, %v8733_v27  ;;  %v2803_v27 = vld [vmem:[%s9871_s2 + $0x10] sm:$0xff]  ;;  %v2808_v63 = vld [vmem:[%s9874_s15 + $0x18] sm:$0xff]  ;;  %s9888_s2 = smov 64  }
 0x844   : > { %v2792_v4 = vadd.f32 %v2788_v28, %v8715_v61  ;;  %v2787_v5 = vmax.f32 %v2777_v2, 0.0  ;;  %v8862_v61 = vmax.f32 %v2790_v6, 0.0 }
 0x846   : > { %v8851_v8 = vmax.f32 %v2792_v4, 0.0  ;;  %v2791_v10 = vadd.f32 %v2787_v5, %v8719_v0  ;;  %v8869_v0 = vmax.f32 %v2789_v12, 0.0 }
 0x848   : > { %v8855_v13 = vmax.f32 %v2791_v10, 0.0  ;;  %2840 = vrot.lane.b32.xlu1 %v8851_v8, %s8178_s26  ;;  %7435 = vmatprep.subr.mxu1 %v8851_v8 }
 0x849   : > { %7436 = vmatpush3.msra.mxu1 %v8851_v8 }
 0x84a   : > { %2838 = vrot.lane.b32.xlu0 %v8855_v13, %s8178_s26  ;;  %7437 = vmatprep.subr.mxu1 %v8855_v13 }
 0x84b   : > { %7438 = vmatpush3.msra.mxu1 %v8855_v13 }
 0x84c   : > { %2836 = vrot.lane.b32.xlu1 %v8862_v61, %s8178_s26  ;;  %7439 = vmatprep.subr.mxu1 %v8862_v61 }
 0x84d   : > { %7440 = vmatpush3.msra.mxu1 %v8862_v61 }
 0x84e   : > { %2834 = vrot.lane.b32.xlu0 %v8869_v0, %s8178_s26  ;;  %7441 = vmatprep.subr.mxu1 %v8869_v0 }
 0x84f   : > { %7442 = vmatpush3.msra.mxu1 %v8869_v0 }
 0x850   : > { %2823 = vrot.lane.b32.xlu1 %v8851_v8, %s8179_s11 }
 0x852   : > { %2821 = vrot.lane.b32.xlu0 %v8855_v13, %s8179_s11 }
 0x854   : > { %2819 = vrot.lane.b32.xlu1 %v8862_v61, %s8179_s11 }
 0x856   : > { %2817 = vrot.lane.b32.xlu0 %v8869_v0, %s8179_s11 }
 0x858   : > { %2867 = vperm.xlu1 %8104, %v2804_v50  }
 0x85a   : > { %2862 = vperm.xlu0 %8103, %v2803_v27  }
 0x85c   : > { %2857 = vperm.xlu1 %8104, %v2802_v15  }
 0x85e   : > { %2852 = vperm.xlu0 %8103, %v2801_v16  }
 0x8ba   : > { %v2841_v17 = vpop.permute.xlu1 %2840 }
 0x8bb   : > { %7443 = vmatprep.subr.msk.mxu1 %vm8767_vm9, %v2841_v17 }
 0x8bc   : > { %v2839_v18 = vpop.permute.xlu0 %2838  ;;  %7444 = vmatpush3.msk.msra.mxu1 %vm8767_vm9, %v2841_v17 }
 0x8bd   : > { %7445 = vmatprep.subr.msk.mxu1 %vm8767_vm9, %v2839_v18 }
 0x8be   : > { %v2837_v19 = vpop.permute.xlu1 %2836  ;;  %7446 = vmatpush3.msk.msra.mxu1 %vm8767_vm9, %v2839_v18 }
 0x8bf   : > { %7447 = vmatprep.subr.msk.mxu1 %vm8767_vm9, %v2837_v19 }
 0x8c0   : > { %v2835_v20 = vpop.permute.xlu0 %2834  ;;  %7448 = vmatpush3.msk.msra.mxu1 %vm8767_vm9, %v2837_v19 }
 0x8c1   : > { %7449 = vmatprep.subr.msk.mxu1 %vm8767_vm9, %v2835_v20 }
 0x8c2   : > { %v2824_v22 = vpop.permute.xlu1 %2823  ;;  %7450 = vmatpush3.msk.msra.mxu1 %vm8767_vm9, %v2835_v20 }
 0x8c3   : > { %7451 = vmatprep.subr.msk.mxu1 %vm8904_vm11, %v2824_v22 }
 0x8c4   : > { %v2822_v23 = vpop.permute.xlu0 %2821  ;;  %7452 = vmatpush3.msk.msra.mxu1 %vm8904_vm11, %v2824_v22 }
 0x8c5   : > { %7453 = vmatprep.subr.msk.mxu1 %vm8904_vm11, %v2822_v23 }
 0x8c6   : > { %v2820_v24 = vpop.permute.xlu1 %2819  ;;  %7454 = vmatpush3.msk.msra.mxu1 %vm8904_vm11, %v2822_v23 }
 0x8c7   : > { %7455 = vmatprep.subr.msk.mxu1 %vm8904_vm11, %v2820_v24 }
 0x8c8   : > { %v2818_v25 = vpop.permute.xlu0 %2817  ;;  %7456 = vmatpush3.msk.msra.mxu1 %vm8904_vm11, %v2820_v24 }
 0x8c9   : > { %7457 = vmatprep.subr.msk.mxu1 %vm8904_vm11, %v2818_v25 }
 0x8ca   : > { %7458 = vmatpush3.msk.msra.mxu1 %vm8904_vm11, %v2818_v25  ;;  %v3136_v25 = vld [vmem:[%s9876_s22] sm:$0xff] }
 0x8cb   : > { %7460 = vmatmul.mubr.msk.f32.vlgmr.msra.gmra.mxu1 %vm2010_vm4, %v2798_v30  ;;  %v3141_v30 = vld [vmem:[%s9877_s23 + $0x8] sm:$0xff] }
 0x8cc   : > { %7462 = vmatprep.mubr.msk.f32.mxu1 %vm2010_vm4, %v2799_v31  ;;  %v3140_v31 = vld [vmem:[%s9877_s23] sm:$0xff] }
 0x8cf   : > { %7463 = vmatmul.mubr.msk.f32.gmra.mxu1 %vm2010_vm4, %v2800_v32 }
 0x8d0   : > { %7519 = vmatprep.mubr.msk.f32.mxu1 %vm2010_vm4, %v3136_v25 }
 0x8d3   : > { %v2868_v33 = vpop.permute.xlu1 %2867 }
 0x8d5   : > { %v2863_v35 = vpop.permute.xlu0 %2862 }
 0x8d7   : > { %v2858_v11 = vpop.permute.xlu1 %2857 }
 0x8d9   : > { %v2853_v43 = vpop.permute.xlu0 %2852 }
 0x98b   : > { %v7461_v34 = vpop.f32.mrf.mxu1 }
 0x98c   : > { %v2954_v40 = vadd.f32 %v7461_v34, %v2858_v11 }
 0x98d   : > { %v2948_v36 = vpop.f32.mrf.mxu1 }
 0x98e   : > { %v2949_v44 = vadd.f32 %v2948_v36, %v2853_v43  ;;  %v2968_v47 = vmax.f32 %v2954_v40, 0.0  ;;  %v3137_v40 = vld [vmem:[%s9876_s22 + $0x8] sm:$0xff] }
 0x98f   : > { %v7464_v37 = vpop.f32.mrf.mxu1 }
 0x990   : > { %v2964_v38 = vadd.f32 %v7464_v37, %v2868_v33  ;;  %v2967_v48 = vmax.f32 %v2949_v44, 0.0 }
 0x991   : > { %v2958_v39 = vpop.f32.mrf.mxu1 }
 0x992   : > { %v2970_v41 = vmax.f32 %v2964_v38, 0.0  ;;  %v2959_v42 = vadd.f32 %v2958_v39, %v2863_v35 }
 0x994   : > { %v2969_v45 = vmax.f32 %v2959_v42, 0.0  ;;  %2997 = vrot.lane.b32.xlu1 %v2970_v41, %s8178_s26  ;;  %7465 = vmatprep.subr.mxu0 %v2970_v41  ;;  %v3139_v42 = vld [vmem:[%s9876_s22 + $0x18] sm:$0xff] }
 0x995   : > { %7466 = vmatpush3.msra.mxu0 %v2970_v41 }
 0x996   : > { %2995 = vrot.lane.b32.xlu0 %v2969_v45, %s8178_s26  ;;  %7467 = vmatprep.subr.mxu0 %v2969_v45 }
 0x997   : > { %7468 = vmatpush3.msra.mxu0 %v2969_v45 }
 0x998   : > { %2993 = vrot.lane.b32.xlu1 %v2968_v47, %s8178_s26  ;;  %7469 = vmatprep.subr.mxu0 %v2968_v47 }
 0x999   : > { %7470 = vmatpush3.msra.mxu0 %v2968_v47 }
 0x99a   : > { %2991 = vrot.lane.b32.xlu0 %v2967_v48, %s8178_s26  ;;  %7471 = vmatprep.subr.mxu0 %v2967_v48  ;;  %s8180_s26 = smov 32  }
 0x99b   : > { %7472 = vmatpush3.msra.mxu0 %v2967_v48 }
 0x99c   : > { %2981 = vrot.lane.b32.xlu1 %v2970_v41, %s8179_s11  ;;  %v3138_v41 = vld [vmem:[%s9876_s22 + $0x10] sm:$0xff] }
 0x99e   : > { %2979 = vrot.lane.b32.xlu0 %v2969_v45, %s8179_s11 }
 0x9a0   : > { %2977 = vrot.lane.b32.xlu1 %v2968_v47, %s8179_s11 }
 0x9a2   : > { %2975 = vrot.lane.b32.xlu0 %v2967_v48, %s8179_s11 }
 0x9a4   : > { %3024 = vperm.xlu1 %8104, %v2812_v60  }
 0x9a6   : > { %3019 = vperm.xlu0 %8103, %v2811_v49  }
 0x9a8   : > { %3014 = vperm.xlu1 %8104, %v2810_v51  }
 0x9aa   : > { %3009 = vperm.xlu0 %8103, %v2809_v52  }
 0xa06   : > { %v2998_v26 = vpop.permute.xlu1 %2997 }
 0xa07   : > { %7473 = vmatprep.subr.msk.mxu0 %vm8767_vm9, %v2998_v26 }
 0xa08   : > { %v2996_v53 = vpop.permute.xlu0 %2995  ;;  %7474 = vmatpush3.msk.msra.mxu0 %vm8767_vm9, %v2998_v26 }
 0xa09   : > { %7475 = vmatprep.subr.msk.mxu0 %vm8767_vm9, %v2996_v53 }
 0xa0a   : > { %v2994_v54 = vpop.permute.xlu1 %2993  ;;  %7476 = vmatpush3.msk.msra.mxu0 %vm8767_vm9, %v2996_v53 }
 0xa0b   : > { %7477 = vmatprep.subr.msk.mxu0 %vm8767_vm9, %v2994_v54 }
 0xa0c   : > { %v2992_v55 = vpop.permute.xlu0 %2991  ;;  %7478 = vmatpush3.msk.msra.mxu0 %vm8767_vm9, %v2994_v54 }
 0xa0d   : > { %7479 = vmatprep.subr.msk.mxu0 %vm8767_vm9, %v2992_v55 }
 0xa0e   : > { %v2982_v56 = vpop.permute.xlu1 %2981  ;;  %7480 = vmatpush3.msk.msra.mxu0 %vm8767_vm9, %v2992_v55 }
 0xa0f   : > { %7481 = vmatprep.subr.msk.mxu0 %vm8904_vm11, %v2982_v56 }
 0xa10   : > { %v2980_v57 = vpop.permute.xlu0 %2979  ;;  %7482 = vmatpush3.msk.msra.mxu0 %vm8904_vm11, %v2982_v56  ;;  %v3144_v56 = vld [vmem:[%s9880_s0] sm:$0xff] }
 0xa11   : > { %7483 = vmatprep.subr.msk.mxu0 %vm8904_vm11, %v2980_v57 }
 0xa12   : > { %v2978_v58 = vpop.permute.xlu1 %2977  ;;  %7484 = vmatpush3.msk.msra.mxu0 %vm8904_vm11, %v2980_v57 }
 0xa13   : > { %7485 = vmatprep.subr.msk.mxu0 %vm8904_vm11, %v2978_v58 }
 0xa14   : > { %v2976_v9 = vpop.permute.xlu0 %2975  ;;  %7486 = vmatpush3.msk.msra.mxu0 %vm8904_vm11, %v2978_v58 }
 0xa15   : > { %7487 = vmatprep.subr.msk.mxu0 %vm8904_vm11, %v2976_v9 }
 0xa16   : > { %7488 = vmatpush3.msk.msra.mxu0 %vm8904_vm11, %v2976_v9  ;;  %v3151_v9 = vld [vmem:[%s9881_s16 + $0x18] sm:$0xff] }
 0xa17   : > { %7490 = vmatmul.mubr.msk.f32.vlgmr.msra.gmra.mxu0 %vm2010_vm4, %v2806_v59  ;;  %v3150_v59 = vld [vmem:[%s9881_s16 + $0x10] sm:$0xff] }
 0xa18   : > { %7492 = vmatprep.mubr.msk.f32.mxu0 %vm2010_vm4, %v2807_v62  ;;  %v3149_v62 = vld [vmem:[%s9881_s16 + $0x8] sm:$0xff] }
 0xa1b   : > { %7493 = vmatmul.mubr.msk.f32.gmra.mxu0 %vm2010_vm4, %v2808_v63  ;;  %v3148_v63 = vld [vmem:[%s9881_s16] sm:$0xff] }
 0xa1c   : > { %7549 = vmatprep.mubr.msk.f32.mxu0 %vm2010_vm4, %v3144_v56 }
 0xa1f   : > { %v3025_v1 = vpop.permute.xlu1 %3024 }
 0xa21   : > { %v3020_v29 = vpop.permute.xlu0 %3019 }
 0xa23   : > { %v3015_v2 = vpop.permute.xlu1 %3014 }
 0xa25   : > { %v3010_v5 = vpop.permute.xlu0 %3009 }
 0xad7   : > { %v7491_v28 = vpop.f32.mrf.mxu0 }
 0xad8   : > { %v3111_v4 = vadd.f32 %v7491_v28, %v3015_v2 }
 0xad9   : > { %v3105_v3 = vpop.f32.mrf.mxu0 }
 0xada   : > { %v3106_v10 = vadd.f32 %v3105_v3, %v3010_v5  ;;  %v3125_v50 = vmax.f32 %v3111_v4, 0.0 }
 0xadb   : > { %v7494_v6 = vpop.f32.mrf.mxu0 }
 0xadc   : > { %v3121_v12 = vadd.f32 %v7494_v6, %v3025_v1  ;;  %v3124_v16 = vmax.f32 %v3106_v10, 0.0  ;;  %v3129_v19 = vadd.f32 %v3125_v50, %v8862_v61  ;;  %v3143_v61 = vld [vmem:[%s9877_s23 + $0x18] sm:$0xff]  ;;  %v3145_v6 = vld [vmem:[%s9880_s0 + $0x8] sm:$0xff]  ;;  %v3146_v10 = vld [vmem:[%s9880_s0 + $0x10] sm:$0xff] }
 0xadd   : > { %v3115_v14 = vpop.f32.mrf.mxu0 }
 0xade   : > { %v3127_v27 = vmax.f32 %v3121_v12, 0.0  ;;  %v3116_v15 = vadd.f32 %v3115_v14, %v3020_v29  ;;  %v3128_v23 = vadd.f32 %v3124_v16, %v8869_v0  ;;  %v3142_v0 = vld [vmem:[%s9877_s23 + $0x10] sm:$0xff]  ;;  %v3147_v12 = vld [vmem:[%s9880_s0 + $0x18] sm:$0xff]  ;;  %s9883_s0 = sld [smem:[#allocation16_spill]] }
 0xae0   : > { %v3131_v17 = vadd.f32 %v3127_v27, %v8851_v8  ;;  %v3126_v18 = vmax.f32 %v3116_v15, 0.0  ;;  %v8999_v8 = vmax.f32 %v3129_v19, 0.0 }
 0xae2   : > { %v8988_v20 = vmax.f32 %v3131_v17, 0.0  ;;  %v3130_v22 = vadd.f32 %v3126_v18, %v8855_v13  ;;  %v9006_v13 = vmax.f32 %v3128_v23, 0.0 }
 0xae4   : > { %v8992_v24 = vmax.f32 %v3130_v22, 0.0  ;;  %3179 = vrot.lane.b32.xlu1 %v8988_v20, %s8179_s11  ;;  %7495 = vmatprep.subr.mxu1 %v8988_v20 }
 0xae5   : > { %7496 = vmatpush3.msra.mxu1 %v8988_v20 }
 0xae6   : > { %3177 = vrot.lane.b32.xlu0 %v8992_v24, %s8179_s11  ;;  %7497 = vmatprep.subr.mxu1 %v8992_v24 }
 0xae7   : > { %7498 = vmatpush3.msra.mxu1 %v8992_v24 }
 0xae8   : > { %3175 = vrot.lane.b32.xlu1 %v8999_v8, %s8179_s11  ;;  %7499 = vmatprep.subr.mxu1 %v8999_v8 }
 0xae9   : > { %7500 = vmatpush3.msra.mxu1 %v8999_v8 }
 0xaea   : > { %3173 = vrot.lane.b32.xlu0 %v9006_v13, %s8179_s11  ;;  %7501 = vmatprep.subr.mxu1 %v9006_v13 }
 0xaeb   : > { %7502 = vmatpush3.msra.mxu1 %v9006_v13 }
 0xaec   : > { %3162 = vrot.lane.b32.xlu1 %v8988_v20, %s8180_s26 }
 0xaee   : > { %3160 = vrot.lane.b32.xlu0 %v8992_v24, %s8180_s26 }
 0xaf0   : > { %3158 = vrot.lane.b32.xlu1 %v8999_v8, %s8180_s26 }
 0xaf2   : > { %3156 = vrot.lane.b32.xlu0 %v9006_v13, %s8180_s26 }
 0xaf4   : > { %3206 = vperm.xlu1 %8104, %v3143_v61  }
 0xaf6   : > { %3201 = vperm.xlu0 %8103, %v3142_v0  }
 0xaf8   : > { %3196 = vperm.xlu1 %8104, %v3141_v30  }
 0xafa   : > { %3191 = vperm.xlu0 %8103, %v3140_v31  }
 0xb56   : > { %v3180_v32 = vpop.permute.xlu1 %3179 }
 0xb57   : > { %7503 = vmatprep.subr.msk.mxu1 %vm8904_vm11, %v3180_v32 }
 0xb58   : > { %v3178_v33 = vpop.permute.xlu0 %3177  ;;  %7504 = vmatpush3.msk.msra.mxu1 %vm8904_vm11, %v3180_v32 }
 0xb59   : > { %7505 = vmatprep.subr.msk.mxu1 %vm8904_vm11, %v3178_v33 }
 0xb5a   : > { %v3176_v34 = vpop.permute.xlu1 %3175  ;;  %7506 = vmatpush3.msk.msra.mxu1 %vm8904_vm11, %v3178_v33 }
 0xb5b   : > { %7507 = vmatprep.subr.msk.mxu1 %vm8904_vm11, %v3176_v34 }
 0xb5c   : > { %v3174_v35 = vpop.permute.xlu0 %3173  ;;  %7508 = vmatpush3.msk.msra.mxu1 %vm8904_vm11, %v3176_v34 }
 0xb5d   : > { %7509 = vmatprep.subr.msk.mxu1 %vm8904_vm11, %v3174_v35 }
 0xb5e   : > { %v3163_v37 = vpop.permute.xlu1 %3162  ;;  %7510 = vmatpush3.msk.msra.mxu1 %vm8904_vm11, %v3174_v35 }
 0xb5f   : > { %7511 = vmatprep.subr.msk.mxu1 %vm9041_vm13, %v3163_v37 }
 0xb60   : > { %v3161_v38 = vpop.permute.xlu0 %3160  ;;  %7512 = vmatpush3.msk.msra.mxu1 %vm9041_vm13, %v3163_v37 }
 0xb61   : > { %7513 = vmatprep.subr.msk.mxu1 %vm9041_vm13, %v3161_v38 }
 0xb62   : > { %v3159_v11 = vpop.permute.xlu1 %3158  ;;  %7514 = vmatpush3.msk.msra.mxu1 %vm9041_vm13, %v3161_v38 }
 0xb63   : > { %7515 = vmatprep.subr.msk.mxu1 %vm9041_vm13, %v3159_v11 }
 0xb64   : > { %v3157_v39 = vpop.permute.xlu0 %3156  ;;  %7516 = vmatpush3.msk.msra.mxu1 %vm9041_vm13, %v3159_v11 }
 0xb65   : > { %7517 = vmatprep.subr.msk.mxu1 %vm9041_vm13, %v3157_v39 }
 0xb66   : > { %7518 = vmatpush3.msk.msra.mxu1 %vm9041_vm13, %v3157_v39 }
 0xb67   : > { %7520 = vmatmul.mubr.msk.f32.vlgmr.msra.gmra.mxu1 %vm2010_vm4, %v3137_v40  ;;  %v3480_v40 = vld [vmem:[%s9883_s0 + $0x8] sm:$0xff] }
 0xb68   : > { %7522 = vmatprep.mubr.msk.f32.mxu1 %vm2010_vm4, %v3138_v41  ;;  %v3479_v41 = vld [vmem:[%s9883_s0] sm:$0xff] }
 0xb6b   : > { %7523 = vmatmul.mubr.msk.f32.gmra.mxu1 %vm2010_vm4, %v3139_v42 }
 0xb6f   : > { %v3207_v43 = vpop.permute.xlu1 %3206 }
 0xb71   : > { %v3202_v45 = vpop.permute.xlu0 %3201 }
 0xb73   : > { %v3197_v60 = vpop.permute.xlu1 %3196 }
 0xb75   : > { %v3192_v53 = vpop.permute.xlu0 %3191 }
 0xc27   : > { %v7521_v44 = vpop.f32.mrf.mxu1 }
 0xc28   : > { %v3293_v51 = vadd.f32 %v7521_v44, %v3197_v60 }
 0xc29   : > { %v3287_v46 = vpop.f32.mrf.mxu1 }
 0xc2a   : > { %v3288_v54 = vadd.f32 %v3287_v46, %v3192_v53  ;;  %v3307_v57 = vmax.f32 %v3293_v51, 0.0 }
 0xc2b   : > { %v7524_v47 = vpop.f32.mrf.mxu1 }
 0xc2c   : > { %v3303_v48 = vadd.f32 %v7524_v47, %v3207_v43  ;;  %v3306_v58 = vmax.f32 %v3288_v54, 0.0 }
 0xc2d   : > { %v3297_v49 = vpop.f32.mrf.mxu1 }
 0xc2e   : > { %v3309_v52 = vmax.f32 %v3303_v48, 0.0  ;;  %v3298_v26 = vadd.f32 %v3297_v49, %v3202_v45 }
 0xc30   : > { %v3308_v55 = vmax.f32 %v3298_v26, 0.0  ;;  %3336 = vrot.lane.b32.xlu1 %v3309_v52, %s8179_s11  ;;  %7525 = vmatprep.subr.mxu0 %v3309_v52 }
 0xc31   : > { %7526 = vmatpush3.msra.mxu0 %v3309_v52 }
 0xc32   : > { %3334 = vrot.lane.b32.xlu0 %v3308_v55, %s8179_s11  ;;  %7527 = vmatprep.subr.mxu0 %v3308_v55 }
 0xc33   : > { %7528 = vmatpush3.msra.mxu0 %v3308_v55 }
 0xc34   : > { %3332 = vrot.lane.b32.xlu1 %v3307_v57, %s8179_s11  ;;  %7529 = vmatprep.subr.mxu0 %v3307_v57 }
 0xc35   : > { %7530 = vmatpush3.msra.mxu0 %v3307_v57 }
 0xc36   : > { %3330 = vrot.lane.b32.xlu0 %v3306_v58, %s8179_s11  ;;  %7531 = vmatprep.subr.mxu0 %v3306_v58  ;;  %s9882_s11 = sld [smem:[#allocation15_spill]] }
 0xc37   : > { %7532 = vmatpush3.msra.mxu0 %v3306_v58 }
 0xc38   : > { %3320 = vrot.lane.b32.xlu1 %v3309_v52, %s8180_s26 }
 0xc3a   : > { %3318 = vrot.lane.b32.xlu0 %v3308_v55, %s8180_s26 }
 0xc3c   : > { %3316 = vrot.lane.b32.xlu1 %v3307_v57, %s8180_s26  ;;  %v3475_v39 = vld [vmem:[%s9882_s11] sm:$0xff]  ;;  %v3476_v51 = vld [vmem:[%s9882_s11 + $0x8] sm:$0xff]  ;;  %v3477_v52 = vld [vmem:[%s9882_s11 + $0x10] sm:$0xff] }
 0xc3d   : > { %7579 = vmatprep.mubr.msk.f32.mxu1 %vm2010_vm4, %v3475_v39  ;;  %v3478_v26 = vld [vmem:[%s9882_s11 + $0x18] sm:$0xff] }
 0xc3e   : > { %3314 = vrot.lane.b32.xlu0 %v3306_v58, %s8180_s26 }
 0xc40   : > { %3363 = vperm.xlu1 %8104, %v3151_v9  }
 0xc42   : > { %3358 = vperm.xlu0 %8103, %v3150_v59  }
 0xc44   : > { %3353 = vperm.xlu1 %8104, %v3149_v62  }
 0xc46   : > { %3348 = vperm.xlu0 %8103, %v3148_v63  }
 0xca2   : > { %v3337_v1 = vpop.permute.xlu1 %3336 }
 0xca3   : > { %7533 = vmatprep.subr.msk.mxu0 %vm8904_vm11, %v3337_v1 }
 0xca4   : > { %v3335_v29 = vpop.permute.xlu0 %3334  ;;  %7534 = vmatpush3.msk.msra.mxu0 %vm8904_vm11, %v3337_v1 }
 0xca5   : > { %7535 = vmatprep.subr.msk.mxu0 %vm8904_vm11, %v3335_v29 }
 0xca6   : > { %v3333_v28 = vpop.permute.xlu1 %3332  ;;  %7536 = vmatpush3.msk.msra.mxu0 %vm8904_vm11, %v3335_v29 }
 0xca7   : > { %7537 = vmatprep.subr.msk.mxu0 %vm8904_vm11, %v3333_v28 }
 0xca8   : > { %v3331_v2 = vpop.permute.xlu0 %3330  ;;  %7538 = vmatpush3.msk.msra.mxu0 %vm8904_vm11, %v3333_v28 }
 0xca9   : > { %7539 = vmatprep.subr.msk.mxu0 %vm8904_vm11, %v3331_v2 }
 0xcaa   : > { %v3321_v3 = vpop.permute.xlu1 %3320  ;;  %7540 = vmatpush3.msk.msra.mxu0 %vm8904_vm11, %v3331_v2 }
 0xcab   : > { %7541 = vmatprep.subr.msk.mxu0 %vm9041_vm13, %v3321_v3 }
 0xcac   : > { %v3319_v4 = vpop.permute.xlu0 %3318  ;;  %7542 = vmatpush3.msk.msra.mxu0 %vm9041_vm13, %v3321_v3 }
 0xcad   : > { %7543 = vmatprep.subr.msk.mxu0 %vm9041_vm13, %v3319_v4 }
 0xcae   : > { %v3317_v5 = vpop.permute.xlu1 %3316  ;;  %7544 = vmatpush3.msk.msra.mxu0 %vm9041_vm13, %v3319_v4 }
 0xcaf   : > { %7545 = vmatprep.subr.msk.mxu0 %vm9041_vm13, %v3317_v5 }
 0xcb0   : > { %v3315_v21 = vpop.permute.xlu0 %3314  ;;  %7546 = vmatpush3.msk.msra.mxu0 %vm9041_vm13, %v3317_v5 }
 0xcb1   : > { %7547 = vmatprep.subr.msk.mxu0 %vm9041_vm13, %v3315_v21 }
 0xcb2   : > { %7548 = vmatpush3.msk.msra.mxu0 %vm9041_vm13, %v3315_v21 }
 0xcb3   : > { %7550 = vmatmul.mubr.msk.f32.vlgmr.msra.gmra.mxu0 %vm2010_vm4, %v3145_v6 }
 0xcb4   : > { %7552 = vmatprep.mubr.msk.f32.mxu0 %vm2010_vm4, %v3146_v10 }
 0xcb7   : > { %7553 = vmatmul.mubr.msk.f32.gmra.mxu0 %vm2010_vm4, %v3147_v12 }
 0xcbb   : > { %v3364_v14 = vpop.permute.xlu1 %3363 }
 0xcbd   : > { %v3359_v50 = vpop.permute.xlu0 %3358 }
 0xcbf   : > { %v3354_v15 = vpop.permute.xlu1 %3353 }
 0xcc1   : > { %v3349_v18 = vpop.permute.xlu0 %3348 }
 0xd73   : > { %v7551_v27 = vpop.f32.mrf.mxu0 }
 0xd74   : > { %v3450_v17 = vadd.f32 %v7551_v27, %v3354_v15 }
 0xd75   : > { %v3444_v16 = vpop.f32.mrf.mxu0 }
 0xd76   : > { %v3445_v22 = vadd.f32 %v3444_v16, %v3349_v18  ;;  %v3464_v61 = vmax.f32 %v3450_v17, 0.0 }
 0xd77   : > { %v7554_v19 = vpop.f32.mrf.mxu0 }
 0xd78   : > { %v3460_v23 = vadd.f32 %v7554_v19, %v3364_v14  ;;  %v3463_v31 = vmax.f32 %v3445_v22, 0.0  ;;  %v3468_v34 = vadd.f32 %v3464_v61, %v8999_v8  ;;  %v3482_v8 = vld [vmem:[%s9883_s0 + $0x18] sm:$0xff] }
 0xd79   : > { %v3454_v25 = vpop.f32.mrf.mxu0 }
 0xd7a   : > { %v3466_v0 = vmax.f32 %v3460_v23, 0.0  ;;  %v3455_v30 = vadd.f32 %v3454_v25, %v3359_v50  ;;  %v3467_v38 = vadd.f32 %v3463_v31, %v9006_v13  ;;  %v3481_v13 = vld [vmem:[%s9883_s0 + $0x10] sm:$0xff]  ;;  %s9887_s0 = sld [smem:[#allocation18_spill]] }
 0xd7c   : > { %v3470_v32 = vadd.f32 %v3466_v0, %v8988_v20  ;;  %v3465_v33 = vmax.f32 %v3455_v30, 0.0  ;;  %v9136_v20 = vmax.f32 %v3468_v34, 0.0 }
 0xd7e   : > { %v9125_v35 = vmax.f32 %v3470_v32, 0.0  ;;  %v3469_v37 = vadd.f32 %v3465_v33, %v8992_v24  ;;  %v9143_v24 = vmax.f32 %v3467_v38, 0.0 }
 0xd80   : > { %v9129_v11 = vmax.f32 %v3469_v37, 0.0  ;;  %3518 = vrot.lane.b32.xlu1 %v9125_v35, %s8180_s26  ;;  %7555 = vmatprep.subr.mxu1 %v9125_v35  ;;  %v3490_v21 = vld [vmem:[%s9887_s0 + $0x18] sm:$0xff]  ;;  %v3489_v6 = vld [vmem:[%s9887_s0 + $0x10] sm:$0xff]  ;;  %v3488_v10 = vld [vmem:[%s9887_s0 + $0x8] sm:$0xff] }
 0xd81   : > { %7556 = vmatpush3.msra.mxu1 %v9125_v35  ;;  %v3487_v12 = vld [vmem:[%s9887_s0] sm:$0xff]  ;;  %s9890_s0 = sld [smem:[#allocation20_spill]] }
 0xd82   : > { %3516 = vrot.lane.b32.xlu0 %v9129_v11, %s8180_s26  ;;  %7557 = vmatprep.subr.mxu1 %v9129_v11 }
 0xd83   : > { %7558 = vmatpush3.msra.mxu1 %v9129_v11 }
 0xd84   : > { %3514 = vrot.lane.b32.xlu1 %v9136_v20, %s8180_s26  ;;  %7559 = vmatprep.subr.mxu1 %v9136_v20 }
 0xd85   : > { %7560 = vmatpush3.msra.mxu1 %v9136_v20 }
 0xd86   : > { %3512 = vrot.lane.b32.xlu0 %v9143_v24, %s8180_s26  ;;  %7561 = vmatprep.subr.mxu1 %v9143_v24 }
 0xd87   : > { %7562 = vmatpush3.msra.mxu1 %v9143_v24 }
 0xd88   : > { %3501 = vrot.lane.b32.xlu1 %v9125_v35, %s9792_s1 }
 0xd8a   : > { %3499 = vrot.lane.b32.xlu0 %v9129_v11, %s9792_s1 }
 0xd8c   : > { %3497 = vrot.lane.b32.xlu1 %v9136_v20, %s9792_s1 }
 0xd8e   : > { %3495 = vrot.lane.b32.xlu0 %v9143_v24, %s9792_s1  ;;  %s9886_s1 = sld [smem:[#allocation17_spill]] }
 0xd90   : > { %3545 = vperm.xlu1 %8104, %v3482_v8  }
 0xd92   : > { %3540 = vperm.xlu0 %8103, %v3481_v13  }
 0xd94   : > { %3535 = vperm.xlu1 %8104, %v3480_v40   ;;  %v3483_v3 = vld [vmem:[%s9886_s1] sm:$0xff]  ;;  %v3484_v19 = vld [vmem:[%s9886_s1 + $0x8] sm:$0xff]  ;;  %v3485_v22 = vld [vmem:[%s9886_s1 + $0x10] sm:$0xff] }
 0xd95   : > { %7609 = vmatprep.mubr.msk.f32.mxu0 %vm2010_vm4, %v3483_v3  ;;  %v3486_v23 = vld [vmem:[%s9886_s1 + $0x18] sm:$0xff]  ;;  %s9892_s1 = sld [smem:[#allocation22_spill]] }
 0xd96   : > { %3530 = vperm.xlu0 %8103, %v3479_v41  }
 0xdf2   : > { %v3519_v42 = vpop.permute.xlu1 %3518 }
 0xdf3   : > { %7563 = vmatprep.subr.msk.mxu1 %vm9041_vm13, %v3519_v42 }
 0xdf4   : > { %v3517_v43 = vpop.permute.xlu0 %3516  ;;  %7564 = vmatpush3.msk.msra.mxu1 %vm9041_vm13, %v3519_v42 }
 0xdf5   : > { %7565 = vmatprep.subr.msk.mxu1 %vm9041_vm13, %v3517_v43 }
 0xdf6   : > { %v3515_v44 = vpop.permute.xlu1 %3514  ;;  %7566 = vmatpush3.msk.msra.mxu1 %vm9041_vm13, %v3517_v43 }
 0xdf7   : > { %7567 = vmatprep.subr.msk.mxu1 %vm9041_vm13, %v3515_v44 }
 0xdf8   : > { %v3513_v45 = vpop.permute.xlu0 %3512  ;;  %7568 = vmatpush3.msk.msra.mxu1 %vm9041_vm13, %v3515_v44 }
 0xdf9   : > { %7569 = vmatprep.subr.msk.mxu1 %vm9041_vm13, %v3513_v45 }
 0xdfa   : > { %v3502_v47 = vpop.permute.xlu1 %3501  ;;  %7570 = vmatpush3.msk.msra.mxu1 %vm9041_vm13, %v3513_v45 }
 0xdfb   : > { %7571 = vmatprep.subr.msk.mxu1 %vm9178_vm15, %v3502_v47 }
 0xdfc   : > { %v3500_v48 = vpop.permute.xlu0 %3499  ;;  %7572 = vmatpush3.msk.msra.mxu1 %vm9178_vm15, %v3502_v47 }
 0xdfd   : > { %7573 = vmatprep.subr.msk.mxu1 %vm9178_vm15, %v3500_v48 }
 0xdfe   : > { %v3498_v60 = vpop.permute.xlu1 %3497  ;;  %7574 = vmatpush3.msk.msra.mxu1 %vm9178_vm15, %v3500_v48 }
 0xdff   : > { %7575 = vmatprep.subr.msk.mxu1 %vm9178_vm15, %v3498_v60 }
 0xe00   : > { %v3496_v49 = vpop.permute.xlu0 %3495  ;;  %7576 = vmatpush3.msk.msra.mxu1 %vm9178_vm15, %v3498_v60 }
 0xe01   : > { %7577 = vmatprep.subr.msk.mxu1 %vm9178_vm15, %v3496_v49 }
 0xe02   : > { %7578 = vmatpush3.msk.msra.mxu1 %vm9178_vm15, %v3496_v49  ;;  %v3820_v49 = vld [vmem:[%s9890_s0 + $0x10] sm:$0xff] }
 0xe03   : > { %7580 = vmatmul.mubr.msk.f32.vlgmr.msra.gmra.mxu1 %vm2010_vm4, %v3476_v51  ;;  %v3819_v51 = vld [vmem:[%s9890_s0 + $0x8] sm:$0xff] }
 0xe04   : > { %7582 = vmatprep.mubr.msk.f32.mxu1 %vm2010_vm4, %v3477_v52  ;;  %v3818_v52 = vld [vmem:[%s9890_s0] sm:$0xff] }
 0xe07   : > { %7583 = vmatmul.mubr.msk.f32.gmra.mxu1 %vm2010_vm4, %v3478_v26 }
 0xe0b   : > { %v3546_v53 = vpop.permute.xlu1 %3545 }
 0xe0d   : > { %v3541_v55 = vpop.permute.xlu0 %3540 }
 0xe0f   : > { %v3536_v9 = vpop.permute.xlu1 %3535 }
 0xe11   : > { %v3531_v29 = vpop.permute.xlu0 %3530 }
 0xec3   : > { %v7581_v54 = vpop.f32.mrf.mxu1 }
 0xec4   : > { %v3632_v62 = vadd.f32 %v7581_v54, %v3536_v9 }
 0xec5   : > { %v3626_v56 = vpop.f32.mrf.mxu1 }
 0xec6   : > { %v3627_v28 = vadd.f32 %v3626_v56, %v3531_v29  ;;  %v3646_v4 = vmax.f32 %v3632_v62, 0.0  ;;  %v8182_v56 = vmov 0.0  }
 0xec7   : > { %v7584_v57 = vpop.f32.mrf.mxu1 }
 0xec8   : > { %v3642_v58 = vadd.f32 %v7584_v57, %v3546_v53  ;;  %v3645_v5 = vmax.f32 %v3627_v28, 0.0 }
 0xec9   : > { %v3636_v59 = vpop.f32.mrf.mxu1 }
 0xeca   : > { %v3648_v63 = vmax.f32 %v3642_v58, 0.0  ;;  %v3637_v1 = vadd.f32 %v3636_v59, %v3541_v55 }
 0xecc   : > { %v3647_v2 = vmax.f32 %v3637_v1, 0.0  ;;  %3675 = vrot.lane.b32.xlu1 %v3648_v63, %s8180_s26  ;;  %7585 = vmatprep.subr.mxu0 %v3648_v63 }
 0xecd   : > { %7586 = vmatpush3.msra.mxu0 %v3648_v63 }
 0xece   : > { %3673 = vrot.lane.b32.xlu0 %v3647_v2, %s8180_s26  ;;  %7587 = vmatprep.subr.mxu0 %v3647_v2 }
 0xecf   : > { %7588 = vmatpush3.msra.mxu0 %v3647_v2 }
 0xed0   : > { %3671 = vrot.lane.b32.xlu1 %v3646_v4, %s8180_s26  ;;  %7589 = vmatprep.subr.mxu0 %v3646_v4 }
 0xed1   : > { %7590 = vmatpush3.msra.mxu0 %v3646_v4 }
 0xed2   : > { %3669 = vrot.lane.b32.xlu0 %v3645_v5, %s8180_s26  ;;  %7591 = vmatprep.subr.mxu0 %v3645_v5  ;;  %s9889_s26 = sld [smem:[#allocation19_spill]] }
 0xed3   : > { %7592 = vmatpush3.msra.mxu0 %v3645_v5 }
 0xed4   : > { %3659 = vrot.lane.b32.xlu1 %v3648_v63, %s9888_s2 }
 0xed6   : > { %3657 = vrot.lane.b32.xlu0 %v3647_v2, %s9888_s2 }
 0xed8   : > { %3655 = vrot.lane.b32.xlu1 %v3646_v4, %s9888_s2  ;;  %v3815_v57 = vld [vmem:[%s9889_s26 + $0x8] sm:$0xff]  ;;  %v3816_v58 = vld [vmem:[%s9889_s26 + $0x10] sm:$0xff]  ;;  %v3817_v9 = vld [vmem:[%s9889_s26 + $0x18] sm:$0xff] }
 0xeda   : > { %3653 = vrot.lane.b32.xlu0 %v3645_v5, %s9888_s2 }
 0xedc   : > { %3702 = vperm.xlu1 %8104, %v3490_v21  }
 0xede   : > { %3697 = vperm.xlu0 %8103, %v3489_v6  }
 0xee0   : > { %3692 = vperm.xlu1 %8104, %v3488_v10  }
 0xee2   : > { %3687 = vperm.xlu0 %8103, %v3487_v12  }
 0xf3e   : > { %v3676_v14 = vpop.permute.xlu1 %3675 }
 0xf3f   : > { %7593 = vmatprep.subr.msk.mxu0 %vm9041_vm13, %v3676_v14 }
 0xf40   : > { %v3674_v50 = vpop.permute.xlu0 %3673  ;;  %7594 = vmatpush3.msk.msra.mxu0 %vm9041_vm13, %v3676_v14 }
 0xf41   : > { %7595 = vmatprep.subr.msk.mxu0 %vm9041_vm13, %v3674_v50 }
 0xf42   : > { %v3672_v27 = vpop.permute.xlu1 %3671  ;;  %7596 = vmatpush3.msk.msra.mxu0 %vm9041_vm13, %v3674_v50 }
 0xf43   : > { %7597 = vmatprep.subr.msk.mxu0 %vm9041_vm13, %v3672_v27 }
 0xf44   : > { %v3670_v15 = vpop.permute.xlu0 %3669  ;;  %7598 = vmatpush3.msk.msra.mxu0 %vm9041_vm13, %v3672_v27 }
 0xf45   : > { %7599 = vmatprep.subr.msk.mxu0 %vm9041_vm13, %v3670_v15 }
 0xf46   : > { %v3660_v16 = vpop.permute.xlu1 %3659  ;;  %7600 = vmatpush3.msk.msra.mxu0 %vm9041_vm13, %v3670_v15  ;;  %v3829_v15 = vld [vmem:[%s9892_s1 + $0x18] sm:$0xff] }
 0xf47   : > { %7601 = vmatprep.subr.msk.mxu0 %vm9178_vm15, %v3660_v16 }
 0xf48   : > { %v3658_v17 = vpop.permute.xlu0 %3657  ;;  %7602 = vmatpush3.msk.msra.mxu0 %vm9178_vm15, %v3660_v16  ;;  %v3828_v16 = vld [vmem:[%s9892_s1 + $0x10] sm:$0xff] }
 0xf49   : > { %7603 = vmatprep.subr.msk.mxu0 %vm9178_vm15, %v3658_v17 }
 0xf4a   : > { %v3656_v18 = vpop.permute.xlu1 %3655  ;;  %7604 = vmatpush3.msk.msra.mxu0 %vm9178_vm15, %v3658_v17  ;;  %v3827_v17 = vld [vmem:[%s9892_s1 + $0x8] sm:$0xff] }
 0xf4b   : > { %7605 = vmatprep.subr.msk.mxu0 %vm9178_vm15, %v3656_v18 }
 0xf4c   : > { %v3654_v36 = vpop.permute.xlu0 %3653  ;;  %7606 = vmatpush3.msk.msra.mxu0 %vm9178_vm15, %v3656_v18  ;;  %v3826_v18 = vld [vmem:[%s9892_s1] sm:$0xff]  ;;  %s9897_s1 = sld [smem:[#allocation27_spill]] }
 0xf4d   : > { %7607 = vmatprep.subr.msk.mxu0 %vm9178_vm15, %v3654_v36 }
 0xf4e   : > { %7608 = vmatpush3.msk.msra.mxu0 %vm9178_vm15, %v3654_v36  ;;  %v4127_v36 = vld [vmem:[%s9893_s3 + $0x18] sm:$0xff] }
 0xf4f   : > { %7610 = vmatmul.mubr.msk.f32.vlgmr.msra.gmra.mxu0 %vm2010_vm4, %v3484_v19  ;;  %v4126_v19 = vld [vmem:[%s9893_s3 + $0x10] sm:$0xff] }
 0xf50   : > { %7612 = vmatprep.mubr.msk.f32.mxu0 %vm2010_vm4, %v3485_v22  ;;  %v4125_v22 = vld [vmem:[%s9893_s3 + $0x8] sm:$0xff] }
 0xf53   : > { %7613 = vmatmul.mubr.msk.f32.gmra.mxu0 %vm2010_vm4, %v3486_v23  ;;  %v4124_v23 = vld [vmem:[%s9893_s3] sm:$0xff]  ;;  %s9899_s3 = smov 1  }
 0xf57   : > { %v3703_v25 = vpop.permute.xlu1 %3702 }
 0xf59   : > { %v3698_v61 = vpop.permute.xlu0 %3697 }
 0xf5b   : > { %v3693_v30 = vpop.permute.xlu1 %3692 }
 0xf5d   : > { %v3688_v33 = vpop.permute.xlu0 %3687 }
0x100f   : > { %v7611_v0 = vpop.f32.mrf.mxu0 }
0x1010   : > { %v3789_v32 = vadd.f32 %v7611_v0, %v3693_v30  ;;  %v4133_v0 = vld [vmem:[%s9894_s5 + $0x8] sm:$0xff]  ;;  %v4132_v30 = vld [vmem:[%s9894_s5] sm:$0xff] }
0x1011   : > { %v3783_v31 = vpop.f32.mrf.mxu0 }
0x1012   : > { %v3784_v37 = vadd.f32 %v3783_v31, %v3688_v33  ;;  %v3803_v8 = vmax.f32 %v3789_v32, 0.0 }
0x1013   : > { %v7614_v34 = vpop.f32.mrf.mxu0 }
0x1014   : > { %v3799_v38 = vadd.f32 %v7614_v34, %v3703_v25  ;;  %v3802_v41 = vmax.f32 %v3784_v37, 0.0  ;;  %v3807_v44 = vadd.f32 %v3803_v8, %v9136_v20  ;;  %v4135_v25 = vld [vmem:[%s9894_s5 + $0x18] sm:$0xff] }
0x1015   : > { %v3793_v39 = vpop.f32.mrf.mxu0 }
0x1016   : > { %v3805_v13 = vmax.f32 %v3799_v38, 0.0  ;;  %v3794_v40 = vadd.f32 %v3793_v39, %v3698_v61  ;;  %v3806_v48 = vadd.f32 %v3802_v41, %v9143_v24  ;;  %v9273_v20 = vmax.f32 %v3807_v44, 0.0  ;;  %v3821_v24 = vld [vmem:[%s9890_s0 + $0x18] sm:$0xff]  ;;  %s9891_s0 = sld [smem:[#allocation21_spill]]  ;;  %v4134_v61 = vld [vmem:[%s9894_s5 + $0x10] sm:$0xff]  ;;  %s8186_s5 = smov 123  }
0x1018   : > { %v3809_v42 = vadd.f32 %v3805_v13, %v9125_v35  ;;  %v3804_v43 = vmax.f32 %v3794_v40, 0.0  ;;  %v3814_v35 = vld [vmem:[%s9889_s26] sm:$0xff] }
0x1019   : > { %7639 = vmatprep.mubr.msk.f32.mxu1 %vm2010_vm4, %v3814_v35 }
0x101a   : > { %v9262_v45 = vmax.f32 %v3809_v42, 0.0  ;;  %v3808_v47 = vadd.f32 %v3804_v43, %v9129_v11  ;;  %v9280_v11 = vmax.f32 %v3806_v48, 0.0 }
0x101c   : > { %v9266_v60 = vmax.f32 %v3808_v47, 0.0  ;;  %3840 = vrot.lane.b32.xlu1 %v9262_v45, %s9888_s2  ;;  %7615 = vmatprep.subr.mxu1 %v9262_v45  ;;  %v3822_v14 = vld [vmem:[%s9891_s0] sm:$0xff]  ;;  %v3823_v37 = vld [vmem:[%s9891_s0 + $0x8] sm:$0xff]  ;;  %v3824_v38 = vld [vmem:[%s9891_s0 + $0x10] sm:$0xff] }
0x101d   : > { %7616 = vmatpush3.msra.mxu1 %v9262_v45  ;;  %7669 = vmatprep.mubr.msk.f32.mxu0 %vm2010_vm4, %v3822_v14  ;;  %v3825_v46 = vld [vmem:[%s9891_s0 + $0x18] sm:$0xff]  ;;  %s9896_s0 = sld [smem:[#allocation25_spill]] }
0x101e   : > { %3838 = vrot.lane.b32.xlu0 %v9266_v60, %s9888_s2  ;;  %7617 = vmatprep.subr.mxu1 %v9266_v60 }
0x101f   : > { %7618 = vmatpush3.msra.mxu1 %v9266_v60 }
0x1020   : > { %3836 = vrot.lane.b32.xlu1 %v9273_v20, %s9888_s2  ;;  %7619 = vmatprep.subr.mxu1 %v9273_v20 }
0x1021   : > { %7620 = vmatpush3.msra.mxu1 %v9273_v20 }
0x1022   : > { %3834 = vrot.lane.b32.xlu0 %v9280_v11, %s9888_s2  ;;  %7621 = vmatprep.subr.mxu1 %v9280_v11 }
0x1023   : > { %7622 = vmatpush3.msra.mxu1 %v9280_v11 }
0x1024   : > { %3867 = vperm.xlu1 %8104, %v3821_v24  }
0x1026   : > { %3862 = vperm.xlu0 %8103, %v3820_v49  }
0x1028   : > { %3857 = vperm.xlu1 %8104, %v3819_v51  }
0x102a   : > { %3852 = vperm.xlu0 %8103, %v3818_v52  }
0x108e   : > { %v3841_v26 = vpop.permute.xlu1 %3840 }
0x108f   : > { %7623 = vmatprep.subr.msk.mxu1 %vm9178_vm15, %v3841_v26 }
0x1090   : > { %v3839_v53 = vpop.permute.xlu0 %3838  ;;  %7624 = vmatpush3.msk.msra.mxu1 %vm9178_vm15, %v3841_v26 }
0x1091   : > { %7625 = vmatprep.subr.msk.mxu1 %vm9178_vm15, %v3839_v53 }
0x1092   : > { %v3837_v54 = vpop.permute.xlu1 %3836  ;;  %7626 = vmatpush3.msk.msra.mxu1 %vm9178_vm15, %v3839_v53 }
0x1093   : > { %7627 = vmatprep.subr.msk.mxu1 %vm9178_vm15, %v3837_v54 }
0x1094   : > { %v3835_v55 = vpop.permute.xlu0 %3834  ;;  %7628 = vmatpush3.msk.msra.mxu1 %vm9178_vm15, %v3837_v54 }
0x1095   : > { %7629 = vmatprep.subr.msk.mxu1 %vm9178_vm15, %v3835_v55 }
0x1096   : > { %7630 = vmatpush3.msk.msra.mxu1 %vm9178_vm15, %v3835_v55 }
0x1097   : > { %7631 = vmatprep.subr.mxu1 %v8182_v56 }
0x1098   : > { %7632 = vmatpush3.msra.mxu1 %v8182_v56 }
0x1099   : > { %7633 = vmatprep.subr.mxu1 %v8182_v56 }
0x109a   : > { %7634 = vmatpush3.msra.mxu1 %v8182_v56 }
0x109b   : > { %7635 = vmatprep.subr.mxu1 %v8182_v56 }
0x109c   : > { %7636 = vmatpush3.msra.mxu1 %v8182_v56 }
0x109d   : > { %7637 = vmatprep.subr.mxu1 %v8182_v56 }
0x109e   : > { %7638 = vmatpush3.msra.mxu1 %v8182_v56 }
0x109f   : > { %7640 = vmatmul.mubr.msk.f32.vlgmr.msra.gmra.mxu1 %vm2010_vm4, %v3815_v57  ;;  %v3868_v59 = vpop.permute.xlu1 %3867 }
0x10a0   : > { %7642 = vmatprep.mubr.msk.f32.mxu1 %vm2010_vm4, %v3816_v58 }
0x10a1   : > { %v3863_v63 = vpop.permute.xlu0 %3862 }
0x10a3   : > { %7643 = vmatmul.mubr.msk.f32.gmra.mxu1 %vm2010_vm4, %v3817_v9  ;;  %v3858_v2 = vpop.permute.xlu1 %3857 }
0x10a5   : > { %v3853_v6 = vpop.permute.xlu0 %3852 }
0x115f   : > { %v7641_v62 = vpop.f32.mrf.mxu1 }
0x1160   : > { %v3954_v4 = vadd.f32 %v7641_v62, %v3858_v2 }
0x1161   : > { %v3948_v1 = vpop.f32.mrf.mxu1 }
0x1162   : > { %v3949_v10 = vadd.f32 %v3948_v1, %v3853_v6  ;;  %v3968_v50 = vmax.f32 %v3954_v4, 0.0 }
0x1163   : > { %v7644_v29 = vpop.f32.mrf.mxu1 }
0x1164   : > { %v3964_v28 = vadd.f32 %v7644_v29, %v3868_v59  ;;  %v3967_v27 = vmax.f32 %v3949_v10, 0.0 }
0x1165   : > { %v3958_v3 = vpop.f32.mrf.mxu1 }
0x1166   : > { %v3970_v5 = vmax.f32 %v3964_v28, 0.0  ;;  %v3959_v21 = vadd.f32 %v3958_v3, %v3863_v63  ;;  %v4128_v63 = vld [vmem:[%s9896_s0] sm:$0xff] }
0x1168   : > { %v3969_v12 = vmax.f32 %v3959_v21, 0.0  ;;  %3981 = vrot.lane.b32.xlu1 %v3970_v5, %s9888_s2  ;;  %7645 = vmatprep.subr.mxu0 %v3970_v5 }
0x1169   : > { %7646 = vmatpush3.msra.mxu0 %v3970_v5 }
0x116a   : > { %3979 = vrot.lane.b32.xlu0 %v3969_v12, %s9888_s2  ;;  %7647 = vmatprep.subr.mxu0 %v3969_v12 }
0x116b   : > { %7648 = vmatpush3.msra.mxu0 %v3969_v12 }
0x116c   : > { %3977 = vrot.lane.b32.xlu1 %v3968_v50, %s9888_s2  ;;  %7649 = vmatprep.subr.mxu0 %v3968_v50 }
0x116d   : > { %7650 = vmatpush3.msra.mxu0 %v3968_v50 }
0x116e   : > { %3975 = vrot.lane.b32.xlu0 %v3967_v27, %s9888_s2  ;;  %7651 = vmatprep.subr.mxu0 %v3967_v27  ;;  %s9895_s2 = sld [smem:[#allocation23_spill]] }
0x116f   : > { %7652 = vmatpush3.msra.mxu0 %v3967_v27 }
0x1170   : > { %4008 = vperm.xlu1 %8104, %v3829_v15  }
0x1172   : > { %4003 = vperm.xlu0 %8103, %v3828_v16  }
0x1174   : > { %3998 = vperm.xlu1 %8104, %v3827_v17   ;;  %v4120_v39 = vld [vmem:[%s9895_s2] sm:$0xff]  ;;  %v4129_v17 = vld [vmem:[%s9896_s0 + $0x8] sm:$0xff] }
0x1175   : > { %7699 = vmatprep.mubr.msk.f32.mxu1 %vm2010_vm4, %v4120_v39 }
0x1176   : > { %3993 = vperm.xlu0 %8103, %v3826_v18   ;;  %v4130_v18 = vld [vmem:[%s9896_s0 + $0x10] sm:$0xff] }
0x1178   : > { %4153 = vperm.xlu1 %8104, %v4127_v36   ;;  %v4131_v36 = vld [vmem:[%s9896_s0 + $0x18] sm:$0xff]  ;;  %s9898_s0 = sld [smem:[#allocation28_spill]] }
0x117a   : > { %4148 = vperm.xlu0 %8103, %v4126_v19  }
0x117c   : > { %4143 = vperm.xlu1 %8104, %v4125_v22  }
0x117e   : > { %4138 = vperm.xlu0 %8103, %v4124_v23  }
0x1180   : > { %4274 = vperm.xlu1 %8104, %v4135_v25  }
0x1182   : > { %4269 = vperm.xlu0 %8103, %v4134_v61  }
0x1184   : > { %4264 = vperm.xlu1 %8104, %v4133_v0  }
0x1186   : > { %4259 = vperm.xlu0 %8103, %v4132_v30  }
0x11da   : > { %v3982_v31 = vpop.permute.xlu1 %3981 }
0x11db   : > { %7653 = vmatprep.subr.msk.mxu0 %vm9178_vm15, %v3982_v31 }
0x11dc   : > { %v3980_v32 = vpop.permute.xlu0 %3979  ;;  %7654 = vmatpush3.msk.msra.mxu0 %vm9178_vm15, %v3982_v31 }
0x11dd   : > { %7655 = vmatprep.subr.msk.mxu0 %vm9178_vm15, %v3980_v32 }
0x11de   : > { %v3978_v33 = vpop.permute.xlu1 %3977  ;;  %7656 = vmatpush3.msk.msra.mxu0 %vm9178_vm15, %v3980_v32 }
0x11df   : > { %7657 = vmatprep.subr.msk.mxu0 %vm9178_vm15, %v3978_v33 }
0x11e0   : > { %v3976_v34 = vpop.permute.xlu0 %3975  ;;  %7658 = vmatpush3.msk.msra.mxu0 %vm9178_vm15, %v3978_v33 }
0x11e1   : > { %7659 = vmatprep.subr.msk.mxu0 %vm9178_vm15, %v3976_v34 }
0x11e2   : > { %7660 = vmatpush3.msk.msra.mxu0 %vm9178_vm15, %v3976_v34 }
0x11e3   : > { %7661 = vmatprep.subr.mxu0 %v8182_v56 }
0x11e4   : > { %7662 = vmatpush3.msra.mxu0 %v8182_v56 }
0x11e5   : > { %7663 = vmatprep.subr.mxu0 %v8182_v56 }
0x11e6   : > { %7664 = vmatpush3.msra.mxu0 %v8182_v56 }
0x11e7   : > { %7665 = vmatprep.subr.mxu0 %v8182_v56 }
0x11e8   : > { %7666 = vmatpush3.msra.mxu0 %v8182_v56 }
0x11e9   : > { %7667 = vmatprep.subr.mxu0 %v8182_v56 }
0x11ea   : > { %7668 = vmatpush3.msra.mxu0 %v8182_v56 }
0x11eb   : > { %7670 = vmatmul.mubr.msk.f32.vlgmr.msra.gmra.mxu0 %vm2010_vm4, %v3823_v37  ;;  %v4009_v8 = vpop.permute.xlu1 %4008 }
0x11ec   : > { %7672 = vmatprep.mubr.msk.f32.mxu0 %vm2010_vm4, %v3824_v38 }
0x11ed   : > { %v4004_v13 = vpop.permute.xlu0 %4003 }
0x11ef   : > { %7673 = vmatmul.mubr.msk.f32.gmra.mxu0 %vm2010_vm4, %v3825_v46  ;;  %v3999_v41 = vpop.permute.xlu1 %3998 }
0x11f0   : > { %7729 = vmatprep.mubr.msk.f32.mxu0 %vm2010_vm4, %v4128_v63 }
0x11f1   : > { %v3994_v44 = vpop.permute.xlu0 %3993 }
0x11f3   : > { %v4154_v1 = vpop.permute.xlu1 %4153 }
0x11f5   : > { %v4149_v28 = vpop.permute.xlu0 %4148 }
0x11f7   : > { %v4144_v5 = vpop.permute.xlu1 %4143 }
0x11f9   : > { %v4139_v14 = vpop.permute.xlu0 %4138 }
0x11fb   : > { %v4275_v19 = vpop.permute.xlu1 %4274 }
0x11fd   : > { %v4270_v22 = vpop.permute.xlu0 %4269 }
0x11ff   : > { %v4265_v25 = vpop.permute.xlu1 %4264 }
0x1201   : > { %v4260_v30 = vpop.permute.xlu0 %4259 }
0x12ab   : > { %v7671_v40 = vpop.f32.mrf.mxu0 }
0x12ac   : > { %v4095_v43 = vadd.f32 %v7671_v40, %v3999_v41 }
0x12ad   : > { %v4089_v42 = vpop.f32.mrf.mxu0 }
0x12ae   : > { %v4090_v48 = vadd.f32 %v4089_v42, %v3994_v44  ;;  %v4109_v49 = vmax.f32 %v4095_v43, 0.0 }
0x12af   : > { %v7674_v47 = vpop.f32.mrf.mxu0 }
0x12b0   : > { %v4105_v35 = vadd.f32 %v7674_v47, %v4009_v8  ;;  %v4108_v26 = vmax.f32 %v4090_v48, 0.0  ;;  %v4113_v55 = vadd.f32 %v4109_v49, %v9273_v20  ;;  %v4122_v20 = vld [vmem:[%s9895_s2 + $0x10] sm:$0xff]  ;;  %v4386_v48 = vld [vmem:[%s9897_s1] sm:$0xff] }
0x12b1   : > { %v4099_v24 = vpop.f32.mrf.mxu0  ;;  %v4392_v49 = vld [vmem:[%s9898_s0 + $0x10] sm:$0xff] }
0x12b2   : > { %v4111_v51 = vmax.f32 %v4105_v35, 0.0  ;;  %v4100_v52 = vadd.f32 %v4099_v24, %v4004_v13  ;;  %v4112_v9 = vadd.f32 %v4108_v26, %v9280_v11  ;;  %v9384_v62 = vmax.f32 %v4113_v55, 0.0  ;;  %v4123_v11 = vld [vmem:[%s9895_s2 + $0x18] sm:$0xff]  ;;  %v4390_v35 = vld [vmem:[%s9898_s0] sm:$0xff]  ;;  %v4391_v24 = vld [vmem:[%s9898_s0 + $0x8] sm:$0xff] }
0x12b4   : > { %v4115_v53 = vadd.f32 %v4111_v51, %v9262_v45  ;;  %v4110_v54 = vmax.f32 %v4100_v52, 0.0  ;;  %v9388_v45 = vmax.f32 %v4112_v9, 0.0  ;;  %v4393_v51 = vld [vmem:[%s9898_s0 + $0x18] sm:$0xff]  ;;  %s9901_s0 = smov 127  }
0x12b6   : > { %v9376_v57 = vmax.f32 %v4115_v53, 0.0  ;;  %v4114_v58 = vadd.f32 %v4110_v54, %v9266_v60  ;;  %v4121_v60 = vld [vmem:[%s9895_s2 + $0x8] sm:$0xff]  ;;  %s9805_s2 = smov 127  }
0x12b8   : > { %v9380_v59 = vmax.f32 %v4114_v58, 0.0  ;;  %7675 = vmatprep.subr.mxu1 %v9376_v57 }
0x12b9   : > { %7676 = vmatpush3.msra.mxu1 %v9376_v57 }
0x12ba   : > { %7677 = vmatprep.subr.mxu1 %v9380_v59 }
0x12bb   : > { %7678 = vmatpush3.msra.mxu1 %v9380_v59 }
0x12bc   : > { %7679 = vmatprep.subr.mxu1 %v9384_v62 }
0x12bd   : > { %7680 = vmatpush3.msra.mxu1 %v9384_v62 }
0x12be   : > { %7681 = vmatprep.subr.mxu1 %v9388_v45 }
0x12bf   : > { %7682 = vmatpush3.msra.mxu1 %v9388_v45 }
0x12c0   : > { %7683 = vmatprep.subr.mxu1 %v8182_v56 }
0x12c1   : > { %7684 = vmatpush3.msra.mxu1 %v8182_v56 }
0x12c2   : > { %7685 = vmatprep.subr.mxu1 %v8182_v56 }
0x12c3   : > { %7686 = vmatpush3.msra.mxu1 %v8182_v56 }
0x12c4   : > { %7687 = vmatprep.subr.mxu1 %v8182_v56 }
0x12c5   : > { %7688 = vmatpush3.msra.mxu1 %v8182_v56 }
0x12c6   : > { %7689 = vmatprep.subr.mxu1 %v8182_v56 }
0x12c7   : > { %7690 = vmatpush3.msra.mxu1 %v8182_v56 }
0x12c8   : > { %7691 = vmatprep.subr.mxu1 %v8182_v56 }
0x12c9   : > { %7692 = vmatpush3.msra.mxu1 %v8182_v56 }
0x12ca   : > { %7693 = vmatprep.subr.mxu1 %v8182_v56 }
0x12cb   : > { %7694 = vmatpush3.msra.mxu1 %v8182_v56 }
0x12cc   : > { %7695 = vmatprep.subr.mxu1 %v8182_v56 }
0x12cd   : > { %7696 = vmatpush3.msra.mxu1 %v8182_v56 }
0x12ce   : > { %7697 = vmatprep.subr.mxu1 %v8182_v56 }
0x12cf   : > { %7698 = vmatpush3.msra.mxu1 %v8182_v56 }
0x12d0   : > { %7700 = vmatmul.mubr.msk.f32.vlgmr.msra.gmra.mxu1 %vm2010_vm4, %v4121_v60 }
0x12d1   : > { %7702 = vmatprep.mubr.msk.f32.mxu1 %vm2010_vm4, %v4122_v20 }
0x12d4   : > { %7703 = vmatmul.mubr.msk.f32.gmra.mxu1 %vm2010_vm4, %v4123_v11 }
0x12d5   : > { %7759 = vmatprep.mubr.msk.f32.mxu1 %vm2010_vm4, %v4386_v48 }
0x1390   : > { %v7701_v29 = vpop.f32.mrf.mxu1 }
0x1391   : > { %v4240_v6 = vadd.f32 %v7701_v29, %v4144_v5 }
0x1392   : > { %v4234_v2 = vpop.f32.mrf.mxu1 }
0x1393   : > { %v4235_v50 = vadd.f32 %v4234_v2, %v4139_v14  ;;  %v4254_v15 = vmax.f32 %v4240_v6, 0.0 }
0x1394   : > { %v7704_v3 = vpop.f32.mrf.mxu1 }
0x1395   : > { %v4250_v4 = vadd.f32 %v7704_v3, %v4154_v1  ;;  %v4253_v16 = vmax.f32 %v4235_v50, 0.0 }
0x1396   : > { %v4244_v21 = vpop.f32.mrf.mxu1 }
0x1397   : > { %v4256_v10 = vmax.f32 %v4250_v4, 0.0  ;;  %v4245_v12 = vadd.f32 %v4244_v21, %v4149_v28 }
0x1399   : > { %v4255_v27 = vmax.f32 %v4245_v12, 0.0  ;;  %7705 = vmatprep.subr.mxu0 %v4256_v10 }
0x139a   : > { %7706 = vmatpush3.msra.mxu0 %v4256_v10 }
0x139b   : > { %7707 = vmatprep.subr.mxu0 %v4255_v27 }
0x139c   : > { %7708 = vmatpush3.msra.mxu0 %v4255_v27 }
0x139d   : > { %7709 = vmatprep.subr.mxu0 %v4254_v15 }
0x139e   : > { %7710 = vmatpush3.msra.mxu0 %v4254_v15 }
0x139f   : > { %7711 = vmatprep.subr.mxu0 %v4253_v16 }
0x13a0   : > { %7712 = vmatpush3.msra.mxu0 %v4253_v16 }
0x13a1   : > { %7713 = vmatprep.subr.mxu0 %v8182_v56 }
0x13a2   : > { %7714 = vmatpush3.msra.mxu0 %v8182_v56 }
0x13a3   : > { %7715 = vmatprep.subr.mxu0 %v8182_v56 }
0x13a4   : > { %7716 = vmatpush3.msra.mxu0 %v8182_v56 }
0x13a5   : > { %7717 = vmatprep.subr.mxu0 %v8182_v56 }
0x13a6   : > { %7718 = vmatpush3.msra.mxu0 %v8182_v56 }
0x13a7   : > { %7719 = vmatprep.subr.mxu0 %v8182_v56 }
0x13a8   : > { %7720 = vmatpush3.msra.mxu0 %v8182_v56 }
0x13a9   : > { %7721 = vmatprep.subr.mxu0 %v8182_v56 }
0x13aa   : > { %7722 = vmatpush3.msra.mxu0 %v8182_v56 }
0x13ab   : > { %7723 = vmatprep.subr.mxu0 %v8182_v56 }
0x13ac   : > { %7724 = vmatpush3.msra.mxu0 %v8182_v56 }
0x13ad   : > { %7725 = vmatprep.subr.mxu0 %v8182_v56 }
0x13ae   : > { %7726 = vmatpush3.msra.mxu0 %v8182_v56 }
0x13af   : > { %7727 = vmatprep.subr.mxu0 %v8182_v56 }
0x13b0   : > { %7728 = vmatpush3.msra.mxu0 %v8182_v56 }
0x13b1   : > { %7730 = vmatmul.mubr.msk.f32.vlgmr.msra.gmra.mxu0 %vm2010_vm4, %v4129_v17 }
0x13b2   : > { %7732 = vmatprep.mubr.msk.f32.mxu0 %vm2010_vm4, %v4130_v18 }
0x13b5   : > { %7733 = vmatmul.mubr.msk.f32.gmra.mxu0 %vm2010_vm4, %v4131_v36 }
0x1471   : > { %v7731_v23 = vpop.f32.mrf.mxu0 }
0x1472   : > { %v4361_v0 = vadd.f32 %v7731_v23, %v4265_v25 }
0x1473   : > { %v4355_v61 = vpop.f32.mrf.mxu0 }
0x1474   : > { %v4356_v32 = vadd.f32 %v4355_v61, %v4260_v30  ;;  %v4375_v37 = vmax.f32 %v4361_v0, 0.0 }
0x1475   : > { %v7734_v31 = vpop.f32.mrf.mxu0 }
0x1476   : > { %v4371_v33 = vadd.f32 %v7734_v31, %v4275_v19  ;;  %v4374_v46 = vmax.f32 %v4356_v32, 0.0  ;;  %v4379_v13 = vadd.f32 %v4375_v37, %v9384_v62  ;;  %v4388_v62 = vld [vmem:[%s9897_s1 + $0x10] sm:$0xff] }
0x1477   : > { %v4365_v34 = vpop.f32.mrf.mxu0 }
0x1478   : > { %v4377_v56 = vmax.f32 %v4371_v33, 0.0  ;;  %v4366_v38 = vadd.f32 %v4365_v34, %v4270_v22  ;;  %v4378_v42 = vadd.f32 %v4374_v46, %v9388_v45  ;;  %v4383_v44 = vmax.f32 %v4379_v13, 0.0  ;;  %v4389_v45 = vld [vmem:[%s9897_s1 + $0x18] sm:$0xff] }
0x147a   : > { %v4381_v39 = vadd.f32 %v4377_v56, %v9376_v57  ;;  %v4376_v8 = vmax.f32 %v4366_v38, 0.0  ;;  %v4382_v47 = vmax.f32 %v4378_v42, 0.0 }
0x147c   : > { %v4385_v40 = vmax.f32 %v4381_v39, 0.0  ;;  %v4380_v41 = vadd.f32 %v4376_v8, %v9380_v59  ;;  %v4387_v59 = vld [vmem:[%s9897_s1 + $0x8] sm:$0xff]  ;;  %s9902_s1 = sld [smem:[#allocation30_spill]] }
0x147e   : > { %v4384_v43 = vmax.f32 %v4380_v41, 0.0  ;;  %4436 = vrot.lane.b32.xlu1 %v4385_v40, %s9805_s2 }
0x1480   : > { %4434 = vrot.lane.b32.xlu0 %v4384_v43, %s9805_s2 }
0x1482   : > { %4432 = vrot.lane.b32.xlu1 %v4383_v44, %s9805_s2 }
0x1484   : > { %4430 = vrot.lane.b32.xlu0 %v4382_v47, %s9805_s2  ;;  %s9900_s2 = sld [smem:[#allocation29_spill]] }
0x1486   : > { %4420 = vrot.lane.b32.xlu1 %v4385_v40, %s9899_s3 }
0x1488   : > { %4418 = vrot.lane.b32.xlu0 %v4384_v43, %s9899_s3 }
0x148a   : > { %4416 = vrot.lane.b32.xlu1 %v4383_v44, %s9899_s3  ;;  %v4409_v60 = vld [vmem:[%s9900_s2 + $0x78] sm:$0xff]  ;;  %v4408_v20 = vld [vmem:[%s9900_s2 + $0x70] sm:$0xff]  ;;  %v4407_v11 = vld [vmem:[%s9900_s2 + $0x68] sm:$0xff] }
0x148b   : > { %7765 = vmatprep.subr.mxu0 %v4409_v60  ;;  %v4406_v63 = vld [vmem:[%s9900_s2 + $0x60] sm:$0xff]  ;;  %v4405_v1 = vld [vmem:[%s9900_s2 + $0x58] sm:$0xff]  ;;  %v4404_v29 = vld [vmem:[%s9900_s2 + $0x50] sm:$0xff] }
0x148c   : > { %4414 = vrot.lane.b32.xlu0 %v4382_v47, %s9899_s3  ;;  %7766 = vmatpush3.msra.mxu0 %v4409_v60  ;;  %v4403_v28 = vld [vmem:[%s9900_s2 + $0x48] sm:$0xff]  ;;  %v4402_v2 = vld [vmem:[%s9900_s2 + $0x40] sm:$0xff]  ;;  %v4401_v3 = vld [vmem:[%s9900_s2 + $0x38] sm:$0xff] }
0x148d   : > { %7767 = vmatprep.subr.mxu0 %v4408_v20  ;;  %v4400_v4 = vld [vmem:[%s9900_s2 + $0x30] sm:$0xff]  ;;  %v4399_v5 = vld [vmem:[%s9900_s2 + $0x28] sm:$0xff]  ;;  %v4398_v21 = vld [vmem:[%s9900_s2 + $0x20] sm:$0xff] }
0x148e   : > { %4449 = vperm.xlu1 %8104, %v4390_v35   ;;  %7768 = vmatpush3.msra.mxu0 %v4408_v20  ;;  %v4397_v6 = vld [vmem:[%s9900_s2 + $0x18] sm:$0xff]  ;;  %v4396_v10 = vld [vmem:[%s9900_s2 + $0x10] sm:$0xff]  ;;  %v4395_v14 = vld [vmem:[%s9900_s2 + $0x8] sm:$0xff] }
0x148f   : > { %7769 = vmatprep.subr.mxu0 %v4407_v11  ;;  %v4394_v15 = vld [vmem:[%s9900_s2] sm:$0xff]  ;;  %s9903_s2 = sld [smem:[#allocation31_spill]] }
0x1490   : > { %4454 = vperm.xlu0 %8103, %v4391_v24   ;;  %7770 = vmatpush3.msra.mxu0 %v4407_v11 }
0x1491   : > { %7771 = vmatprep.subr.mxu0 %v4406_v63 }
0x1492   : > { %4459 = vperm.xlu1 %8104, %v4392_v49   ;;  %7772 = vmatpush3.msra.mxu0 %v4406_v63 }
0x1493   : > { %7773 = vmatprep.subr.mxu0 %v4405_v1 }
0x1494   : > { %4464 = vperm.xlu0 %8103, %v4393_v51   ;;  %7774 = vmatpush3.msra.mxu0 %v4405_v1 }
0x1495   : > { %7775 = vmatprep.subr.mxu0 %v4404_v29 }
0x1496   : > { %7776 = vmatpush3.msra.mxu0 %v4404_v29 }
0x1497   : > { %7777 = vmatprep.subr.mxu0 %v4403_v28 }
0x1498   : > { %7778 = vmatpush3.msra.mxu0 %v4403_v28  ;;  %v4686_v28 = vld [vmem:[%s9902_s1 + $0x8] sm:$0xff] }
0x1499   : > { %7779 = vmatprep.subr.mxu0 %v4402_v2 }
0x149a   : > { %7780 = vmatpush3.msra.mxu0 %v4402_v2  ;;  %v4687_v2 = vld [vmem:[%s9902_s1 + $0x10] sm:$0xff] }
0x149b   : > { %7781 = vmatprep.subr.mxu0 %v4401_v3 }
0x149c   : > { %7782 = vmatpush3.msra.mxu0 %v4401_v3  ;;  %v4688_v3 = vld [vmem:[%s9902_s1 + $0x18] sm:$0xff] }
0x149d   : > { %7783 = vmatprep.subr.mxu0 %v4400_v4 }
0x149e   : > { %7784 = vmatpush3.msra.mxu0 %v4400_v4 }
0x149f   : > { %7785 = vmatprep.subr.mxu0 %v4399_v5 }
0x14a0   : > { %7786 = vmatpush3.msra.mxu0 %v4399_v5 }
0x14a1   : > { %7787 = vmatprep.subr.mxu0 %v4398_v21 }
0x14a2   : > { %7788 = vmatpush3.msra.mxu0 %v4398_v21 }
0x14a3   : > { %7789 = vmatprep.subr.mxu0 %v4397_v6 }
0x14a4   : > { %7790 = vmatpush3.msra.mxu0 %v4397_v6 }
0x14a5   : > { %7791 = vmatprep.subr.mxu0 %v4396_v10 }
0x14a6   : > { %7792 = vmatpush3.msra.mxu0 %v4396_v10 }
0x14a7   : > { %7793 = vmatprep.subr.mxu0 %v4395_v14 }
0x14a8   : > { %7794 = vmatpush3.msra.mxu0 %v4395_v14 }
0x14a9   : > { %7795 = vmatprep.subr.mxu0 %v4394_v15 }
0x14aa   : > { %7796 = vmatpush3.msra.mxu0 %v4394_v15 }
0x14f0   : > { %v4437_v52 = vpop.permute.xlu1 %4436 }
0x14f1   : > { %7735 = vmatprep.subr.msk.mxu1 %vm4442_vm0, %v4437_v52 }
0x14f2   : > { %7736 = vmatpush3.msk.msra.mxu1 %vm4442_vm0, %v4437_v52  ;;  %v4435_v26 = vpop.permute.xlu0 %4434 }
0x14f3   : > { %7737 = vmatprep.subr.msk.mxu1 %vm4442_vm0, %v4435_v26 }
0x14f4   : > { %v4433_v53 = vpop.permute.xlu1 %4432  ;;  %7738 = vmatpush3.msk.msra.mxu1 %vm4442_vm0, %v4435_v26 }
0x14f5   : > { %7739 = vmatprep.subr.msk.mxu1 %vm4442_vm0, %v4433_v53 }
0x14f6   : > { %7740 = vmatpush3.msk.msra.mxu1 %vm4442_vm0, %v4433_v53  ;;  %v4431_v54 = vpop.permute.xlu0 %4430 }
0x14f7   : > { %7741 = vmatprep.subr.msk.mxu1 %vm4442_vm0, %v4431_v54 }
0x14f8   : > { %7742 = vmatpush3.msk.msra.mxu1 %vm4442_vm0, %v4431_v54  ;;  %v4421_v55 = vpop.permute.xlu1 %4420 }
0x14f9   : > { %7743 = vmatprep.subr.mxu1 %v4385_v40 }
0x14fa   : > { %7744 = vmatpush3.msra.mxu1 %v4385_v40  ;;  %v4419_v57 = vpop.permute.xlu0 %4418 }
0x14fb   : > { %7745 = vmatprep.subr.mxu1 %v4384_v43 }
0x14fc   : > { %7746 = vmatpush3.msra.mxu1 %v4384_v43  ;;  %v4417_v58 = vpop.permute.xlu1 %4416 }
0x14fd   : > { %7747 = vmatprep.subr.mxu1 %v4383_v44 }
0x14fe   : > { %7748 = vmatpush3.msra.mxu1 %v4383_v44  ;;  %v4415_v9 = vpop.permute.xlu0 %4414 }
0x14ff   : > { %7749 = vmatprep.subr.mxu1 %v4382_v47 }
0x1500   : > { %7750 = vmatpush3.msra.mxu1 %v4382_v47 }
0x1501   : > { %7751 = vmatprep.subr.msk.mxu1 %vm8529_vm5, %v4421_v55 }
0x1502   : > { %7752 = vmatpush3.msk.msra.mxu1 %vm8529_vm5, %v4421_v55  ;;  %v4685_v55 = vld [vmem:[%s9902_s1] sm:$0xff]  ;;  %s9905_s1 = sld [smem:[#allocation33_spill]] }
0x1503   : > { %7753 = vmatprep.subr.msk.mxu1 %vm8529_vm5, %v4419_v57 }
0x1504   : > { %7754 = vmatpush3.msk.msra.mxu1 %vm8529_vm5, %v4419_v57  ;;  %v4689_v57 = vld [vmem:[%s9903_s2] sm:$0xff] }
0x1505   : > { %7755 = vmatprep.subr.msk.mxu1 %vm8529_vm5, %v4417_v58 }
0x1506   : > { %7756 = vmatpush3.msk.msra.mxu1 %vm8529_vm5, %v4417_v58  ;;  %v4690_v58 = vld [vmem:[%s9903_s2 + $0x8] sm:$0xff] }
0x1507   : > { %7757 = vmatprep.subr.msk.mxu1 %vm8529_vm5, %v4415_v9 }
0x1508   : > { %7758 = vmatpush3.msk.msra.mxu1 %vm8529_vm5, %v4415_v9  ;;  %v4691_v9 = vld [vmem:[%s9903_s2 + $0x10] sm:$0xff] }
0x1509   : > { %7760 = vmatmul.mubr.msk.f32.vlgmr.msra.gmra.mxu1 %vm2010_vm4, %v4387_v59  ;;  %v4450_v50 = vpop.permute.xlu1 %4449  ;;  %v4692_v59 = vld [vmem:[%s9903_s2 + $0x18] sm:$0xff]  ;;  %s9904_s2 = sld [smem:[#allocation32_spill]] }
0x150a   : > { %7762 = vmatprep.mubr.msk.f32.mxu1 %vm2010_vm4, %v4388_v62 }
0x150b   : > { %v4455_v12 = vpop.permute.xlu0 %4454 }
0x150d   : > { %7763 = vmatmul.mubr.msk.f32.gmra.mxu1 %vm2010_vm4, %v4389_v45  ;;  %v4460_v61 = vpop.permute.xlu1 %4459 }
0x150e   : > { %7827 = vmatprep.mubr.msk.f32.mxu1 %vm2010_vm4, %v4685_v55 }
0x150f   : > { %v4465_v19 = vpop.permute.xlu0 %4464  ;;  %v4700_v4 = vld [vmem:[%s9904_s2 + $0x38] sm:$0xff]  ;;  %v4699_v5 = vld [vmem:[%s9904_s2 + $0x30] sm:$0xff]  ;;  %v4698_v21 = vld [vmem:[%s9904_s2 + $0x28] sm:$0xff] }
0x1510   : > { %v4697_v6 = vld [vmem:[%s9904_s2 + $0x20] sm:$0xff]  ;;  %v4696_v10 = vld [vmem:[%s9904_s2 + $0x18] sm:$0xff]  ;;  %v4694_v14 = vld [vmem:[%s9904_s2 + $0x8] sm:$0xff] }
0x15c9   : > { %v7761_v27 = vpop.f32.mrf.mxu1 }
0x15ca   : > { %v4551_v16 = vadd.f32 %v7761_v27, %v4455_v12  ;;  %v4695_v12 = vld [vmem:[%s9904_s2 + $0x10] sm:$0xff] }
0x15cb   : > { %v4545_v17 = vpop.f32.mrf.mxu1 }
0x15cc   : > { %v4569_v18 = vmul.f32 0.01, %v4551_v16  ;;  %v4546_v36 = vadd.f32 %v4545_v17, %v4450_v50  ;;  %vm4565_vm1 = vcmp.ge.f32.partialorder %v4551_v16, 0.0  ;;  %v4693_v50 = vld [vmem:[%s9904_s2] sm:$0xff]  ;;  %s9906_s2 = sld [smem:[#allocation34_spill]] }
0x15cd   : > { %v7764_v22 = vpop.f32.mrf.mxu1 }
0x15ce   : > { %vm4564_vm3 = vcmp.ge.f32.partialorder %v4546_v36, 0.0  ;;  %v4568_v23 = vmul.f32 0.01, %v4546_v36  ;;  %v4561_v25 = vadd.f32 %v7764_v22, %v4465_v19  ;;  %v4573_v30 = vsel %vm4565_vm1, %v4551_v16, %v4569_v18 }
0x15cf   : > { %v4555_v0 = vpop.f32.mrf.mxu1 }
0x15d0   : > { %v4572_v31 = vsel %vm4564_vm3, %v4546_v36, %v4568_v23  ;;  %v4571_v32 = vmul.f32 0.01, %v4561_v25  ;;  %v4556_v33 = vadd.f32 %v4555_v0, %v4460_v61  ;;  %vm4567_vm6 = vcmp.ge.f32.partialorder %v4561_v25, 0.0 }
0x15d1   : > { %v8105_v34 = vpack.i.bf16 %v4573_v30, %v4572_v31 }
0x15d2   : > { %vm4566_vm7 = vcmp.ge.f32.partialorder %v4556_v33, 0.0  ;;  %v4570_v37 = vmul.f32 0.01, %v4556_v33  ;;  %v4575_v56 = vsel %vm4567_vm6, %v4561_v25, %v4571_v32  ;;  %v4994_v55 = vld [vmem:[%s9906_s2 + $0x10] sm:$0xff] }
0x15d3   : > { %8106 = vrot.lane.b32.xlu1 %v8105_v34, %s9901_s0 }
0x15d4   : > { %v4574_v38 = vsel %vm4566_vm7, %v4556_v33, %v4570_v37  ;;  %vm5329_vm7 = vcmask 121856  }
0x15d5   : > { %v8110_v46 = vpack.i.bf16 %v4575_v56, %v4574_v38 }
0x15d7   : > { %8111 = vrot.lane.b32.xlu0 %v8110_v46, %s9901_s0 }
0x1645   : > { %v8107_v39 = vpop.permute.xlu1 %8106 }
0x1646   : > { %v8109_v8 = vunpack.i.h.bf16 %v8107_v39  ;;  %v8108_v13 = vunpack.i.l.bf16 %v8107_v39 }
0x1648   : > { %v4593_v40 = vsel %vm4442_vm0, %v8109_v8, 0.0  ;;  %v4592_v41 = vsel %vm4442_vm0, %v8108_v13, 0.0 }
0x1649   : > { %v4597_v42 = vmax.f32 %v4573_v30, %v4593_v40  ;;  %v8112_v43 = vpop.permute.xlu0 %8111  ;;  %v4596_v44 = vmax.f32 %v4572_v31, %v4592_v41 }
0x164a   : > { %v8114_v47 = vunpack.i.h.bf16 %v8112_v43  ;;  %v8113_v48 = vunpack.i.l.bf16 %v8112_v43 }
0x164b   : > { %7797 = vmatprep.mubr.f32.mxu0 %v4596_v44 }
0x164c   : > { %v4595_v35 = vsel %vm4442_vm0, %v8114_v47, 0.0  ;;  %v4594_v24 = vsel %vm4442_vm0, %v8113_v48, 0.0  ;;  %7798 = vmatmul.mubr.f32.vlgmr.msra.gmra.mxu0 %v4597_v42 }
0x164d   : > { %v4598_v49 = vmax.f32 %v4574_v38, %v4594_v24  ;;  %v4599_v51 = vmax.f32 %v4575_v56, %v4595_v35 }
0x164f   : > { %7800 = vmatprep.mubr.f32.mxu0 %v4598_v49 }
0x1650   : > { %7801 = vmatmul.mubr.f32.gmra.mxu0 %v4599_v51 }
0x170c   : > { %v7799_v52 = vpop.f32.mrf.mxu0 }
0x170e   : > { %v4666_v26 = vpop.f32.mrf.mxu0 }
0x1710   : > { %v7802_v53 = vpop.f32.mrf.mxu0 }
0x1711   : > { %4727 = vrot.lane.b32.xlu1 %v7802_v53, %s9901_s0 }
0x1712   : > { %v4676_v54 = vpop.f32.mrf.mxu0 }
0x1713   : > { %4725 = vrot.lane.b32.xlu0 %v4676_v54, %s9901_s0 }
0x1715   : > { %4723 = vrot.lane.b32.xlu1 %v7799_v52, %s9901_s0 }
0x1717   : > { %4721 = vrot.lane.b32.xlu0 %v4666_v26, %s9901_s0 }
0x1719   : > { %4711 = vrot.lane.b32.xlu1 %v7802_v53, %s9899_s3 }
0x171b   : > { %4709 = vrot.lane.b32.xlu0 %v4676_v54, %s9899_s3 }
0x171d   : > { %4707 = vrot.lane.b32.xlu1 %v7799_v52, %s9899_s3 }
0x171f   : > { %4705 = vrot.lane.b32.xlu0 %v4666_v26, %s9899_s3 }
0x1721   : > { %4740 = vperm.xlu1 %8104, %v4689_v57   ;;  %v4995_v57 = vld [vmem:[%s9906_s2 + $0x18] sm:$0xff] }
0x1723   : > { %4745 = vperm.xlu0 %8103, %v4690_v58  }
0x1725   : > { %4750 = vperm.xlu1 %8104, %v4691_v9  }
0x1727   : > { %4755 = vperm.xlu0 %8103, %v4692_v59  }
0x1783   : > { %v4728_v62 = vpop.permute.xlu1 %4727 }
0x1784   : > { %7803 = vmatprep.subr.msk.mxu1 %vm4733_vm8, %v4728_v62 }
0x1785   : > { %7804 = vmatpush3.msk.msra.mxu1 %vm4733_vm8, %v4728_v62  ;;  %v4726_v45 = vpop.permute.xlu0 %4725 }
0x1786   : > { %7805 = vmatprep.subr.msk.mxu1 %vm4733_vm8, %v4726_v45 }
0x1787   : > { %v4724_v60 = vpop.permute.xlu1 %4723  ;;  %7806 = vmatpush3.msk.msra.mxu1 %vm4733_vm8, %v4726_v45 }
0x1788   : > { %7807 = vmatprep.subr.msk.mxu1 %vm4733_vm8, %v4724_v60 }
0x1789   : > { %7808 = vmatpush3.msk.msra.mxu1 %vm4733_vm8, %v4724_v60  ;;  %v4722_v20 = vpop.permute.xlu0 %4721 }
0x178a   : > { %7809 = vmatprep.subr.msk.mxu1 %vm4733_vm8, %v4722_v20 }
0x178b   : > { %7810 = vmatpush3.msk.msra.mxu1 %vm4733_vm8, %v4722_v20  ;;  %v4712_v11 = vpop.permute.xlu1 %4711 }
0x178c   : > { %7811 = vmatprep.subr.mxu1 %v7802_v53 }
0x178d   : > { %7812 = vmatpush3.msra.mxu1 %v7802_v53  ;;  %v4710_v63 = vpop.permute.xlu0 %4709  ;;  %v4992_v53 = vld [vmem:[%s9906_s2] sm:$0xff] }
0x178e   : > { %7813 = vmatprep.subr.mxu1 %v4676_v54 }
0x178f   : > { %7814 = vmatpush3.msra.mxu1 %v4676_v54  ;;  %v4708_v1 = vpop.permute.xlu1 %4707  ;;  %v4993_v54 = vld [vmem:[%s9906_s2 + $0x8] sm:$0xff]  ;;  %s9907_s2 = sld [smem:[#allocation35_spill]] }
0x1790   : > { %7815 = vmatprep.subr.mxu1 %v7799_v52 }
0x1791   : > { %7816 = vmatpush3.msra.mxu1 %v7799_v52  ;;  %v4706_v29 = vpop.permute.xlu0 %4705 }
0x1792   : > { %7817 = vmatprep.subr.mxu1 %v4666_v26 }
0x1793   : > { %7818 = vmatpush3.msra.mxu1 %v4666_v26  ;;  %v4988_v26 = vld [vmem:[%s9905_s1] sm:$0xff] }
0x1794   : > { %7819 = vmatprep.subr.msk.mxu1 %vm8529_vm5, %v4712_v11  ;;  %7879 = vmatprep.mubr.msk.f32.mxu0 %vm2010_vm4, %v4988_v26 }
0x1795   : > { %7820 = vmatpush3.msk.msra.mxu1 %vm8529_vm5, %v4712_v11 }
0x1796   : > { %7821 = vmatprep.subr.msk.mxu1 %vm8529_vm5, %v4710_v63 }
0x1797   : > { %7822 = vmatpush3.msk.msra.mxu1 %vm8529_vm5, %v4710_v63  ;;  %v4989_v63 = vld [vmem:[%s9905_s1 + $0x8] sm:$0xff] }
0x1798   : > { %7823 = vmatprep.subr.msk.mxu1 %vm8529_vm5, %v4708_v1 }
0x1799   : > { %7824 = vmatpush3.msk.msra.mxu1 %vm8529_vm5, %v4708_v1  ;;  %v4990_v1 = vld [vmem:[%s9905_s1 + $0x10] sm:$0xff] }
0x179a   : > { %7825 = vmatprep.subr.msk.mxu1 %vm8529_vm5, %v4706_v29 }
0x179b   : > { %7826 = vmatpush3.msk.msra.mxu1 %vm8529_vm5, %v4706_v29  ;;  %v4991_v29 = vld [vmem:[%s9905_s1 + $0x18] sm:$0xff]  ;;  %s9908_s1 = sld [smem:[#allocation36_spill]] }
0x179c   : > { %7828 = vmatmul.mubr.msk.f32.vlgmr.msra.gmra.mxu1 %vm2010_vm4, %v4686_v28  ;;  %7833 = vmatprep.subr.mxu1 %v4700_v4  ;;  %v4741_v15 = vpop.permute.xlu1 %4740  ;;  %v4999_v28 = vld [vmem:[%s9907_s2 + $0x18] sm:$0xff] }
0x179d   : > { %7830 = vmatprep.mubr.msk.f32.mxu1 %vm2010_vm4, %v4687_v2  ;;  %7834 = vmatpush3.msra.mxu1 %v4700_v4  ;;  %v4998_v2 = vld [vmem:[%s9907_s2 + $0x10] sm:$0xff]  ;;  %v4996_v4 = vld [vmem:[%s9907_s2] sm:$0xff] }
0x179e   : > { %7835 = vmatprep.subr.mxu1 %v4699_v5  ;;  %v4746_v27 = vpop.permute.xlu0 %4745 }
0x179f   : > { %7836 = vmatpush3.msra.mxu1 %v4699_v5 }
0x17a0   : > { %7831 = vmatmul.mubr.msk.f32.gmra.mxu1 %vm2010_vm4, %v4688_v3  ;;  %7837 = vmatprep.subr.mxu1 %v4698_v21  ;;  %v4751_v30 = vpop.permute.xlu1 %4750  ;;  %v4997_v3 = vld [vmem:[%s9907_s2 + $0x8] sm:$0xff]  ;;  %s9909_s2 = sld [smem:[#allocation37_spill]] }
0x17a1   : > { %7838 = vmatpush3.msra.mxu1 %v4698_v21 }
0x17a2   : > { %7839 = vmatprep.subr.mxu1 %v4697_v6  ;;  %v4756_v22 = vpop.permute.xlu0 %4755 }
0x17a3   : > { %7840 = vmatpush3.msra.mxu1 %v4697_v6 }
0x17a4   : > { %7841 = vmatprep.subr.mxu1 %v4696_v10 }
0x17a5   : > { %7842 = vmatpush3.msra.mxu1 %v4696_v10 }
0x17a6   : > { %7843 = vmatprep.subr.mxu1 %v4695_v12 }
0x17a7   : > { %7844 = vmatpush3.msra.mxu1 %v4695_v12 }
0x17a8   : > { %7845 = vmatprep.subr.mxu1 %v4694_v14 }
0x17a9   : > { %7846 = vmatpush3.msra.mxu1 %v4694_v14 }
0x17aa   : > { %7847 = vmatprep.subr.mxu1 %v4693_v50 }
0x17ab   : > { %7848 = vmatpush3.msra.mxu1 %v4693_v50 }
0x17ac   : > { %7885 = vmatprep.subr.mxu1 %v4999_v28 }
0x185c   : > { %v7829_v16 = vpop.f32.mrf.mxu1 }
0x185d   : > { %v4842_v17 = vadd.f32 %v7829_v16, %v4746_v27 }
0x185e   : > { %v4836_v18 = vpop.f32.mrf.mxu1 }
0x185f   : > { %vm4856_vm9 = vcmp.ge.f32.partialorder %v4842_v17, 0.0  ;;  %v4860_v36 = vmul.f32 0.01, %v4842_v17  ;;  %v4837_v19 = vadd.f32 %v4836_v18, %v4741_v15 }
0x1860   : > { %v7832_v23 = vpop.f32.mrf.mxu1 }
0x1861   : > { %vm4855_vm11 = vcmp.ge.f32.partialorder %v4837_v19, 0.0  ;;  %v4859_v25 = vmul.f32 0.01, %v4837_v19  ;;  %v4852_v61 = vadd.f32 %v7832_v23, %v4756_v22  ;;  %v4864_v0 = vsel %vm4856_vm9, %v4842_v17, %v4860_v36 }
0x1862   : > { %v4846_v31 = vpop.f32.mrf.mxu1  ;;  %4873 = vrot.lane.b32.xlu0 %v4864_v0, %s9901_s0 }
0x1863   : > { %vm4858_vm13 = vcmp.ge.f32.partialorder %v4852_v61, 0.0  ;;  %v4862_v32 = vmul.f32 0.01, %v4852_v61  ;;  %v4847_v33 = vadd.f32 %v4846_v31, %v4751_v30  ;;  %v4863_v34 = vsel %vm4855_vm11, %v4837_v19, %v4859_v25 }
0x1864   : > { %4871 = vrot.lane.b32.xlu1 %v4863_v34, %s9901_s0 }
0x1865   : > { %vm4857_vm15 = vcmp.ge.f32.partialorder %v4847_v33, 0.0  ;;  %v4861_v37 = vmul.f32 0.01, %v4847_v33  ;;  %v4866_v56 = vsel %vm4858_vm13, %v4852_v61, %v4862_v32 }
0x1866   : > { %4877 = vrot.lane.b32.xlu0 %v4866_v56, %s9901_s0 }
0x1867   : > { %v4865_v38 = vsel %vm4857_vm15, %v4847_v33, %v4861_v37 }
0x1868   : > { %4875 = vrot.lane.b32.xlu1 %v4865_v38, %s9901_s0 }
0x18d4   : > { %v4874_v46 = vpop.permute.xlu0 %4873 }
0x18d5   : > { %v4884_v39 = vsel %vm4733_vm8, %v4874_v46, 0.0 }
0x18d6   : > { %v4872_v8 = vpop.permute.xlu1 %4871  ;;  %v4888_v42 = vmax.f32 %v4864_v0, %v4884_v39 }
0x18d7   : > { %v4883_v13 = vsel %vm4733_vm8, %v4872_v8, 0.0 }
0x18d8   : > { %v4887_v40 = vmax.f32 %v4863_v34, %v4883_v13  ;;  %v4878_v41 = vpop.permute.xlu0 %4877 }
0x18d9   : > { %v4886_v43 = vsel %vm4733_vm8, %v4878_v41, 0.0 }
0x18da   : > { %7849 = vmatprep.mubr.msk.f32.mxu1 %vm3507_vm14, %v4887_v40  ;;  %v4876_v44 = vpop.permute.xlu1 %4875  ;;  %v4890_v35 = vmax.f32 %v4866_v56, %v4886_v43 }
0x18db   : > { %v4885_v47 = vsel %vm4733_vm8, %v4876_v44, 0.0  ;;  %7850 = vmatmul.mubr.msk.f32.vlgmr.msra.gmra.mxu1 %vm3507_vm14, %v4888_v42 }
0x18dc   : > { %v4889_v48 = vmax.f32 %v4865_v38, %v4885_v47  ;;  %7886 = vmatpush3.msra.mxu1 %v4999_v28  ;;  %v5287_v47 = vld [vmem:[%s9908_s1] sm:$0xff] }
0x18dd   : > { %7887 = vmatprep.subr.mxu1 %v4998_v2 }
0x18de   : > { %7852 = vmatprep.mubr.msk.f32.mxu1 %vm3507_vm14, %v4889_v48  ;;  %7888 = vmatpush3.msra.mxu1 %v4998_v2  ;;  %v5291_v48 = vld [vmem:[%s9909_s2] sm:$0xff] }
0x18df   : > { %7853 = vmatmul.mubr.msk.f32.gmra.mxu1 %vm3507_vm14, %v4890_v35  ;;  %vm5032_vm14 = vcmask 252928   ;;  %7889 = vmatprep.subr.mxu1 %v4997_v3  ;;  %v5292_v35 = vld [vmem:[%s9909_s2 + $0x8] sm:$0xff] }
0x18e0   : > { %7890 = vmatpush3.msra.mxu1 %v4997_v3 }
0x18e1   : > { %7891 = vmatprep.subr.mxu1 %v4996_v4 }
0x18e2   : > { %7892 = vmatpush3.msra.mxu1 %v4996_v4 }
0x199b   : > { %v7851_v24 = vpop.f32.mrf.mxu1 }
0x199d   : > { %v4969_v49 = vpop.f32.mrf.mxu1 }
0x199f   : > { %v7854_v51 = vpop.f32.mrf.mxu1 }
0x19a0   : > { %5026 = vrot.lane.b32.xlu1 %v7854_v51, %s9901_s0 }
0x19a1   : > { %v4979_v52 = vpop.f32.mrf.mxu1 }
0x19a2   : > { %5024 = vrot.lane.b32.xlu0 %v4979_v52, %s9901_s0 }
0x19a4   : > { %5022 = vrot.lane.b32.xlu1 %v7851_v24, %s9901_s0 }
0x19a6   : > { %5020 = vrot.lane.b32.xlu0 %v4969_v49, %s9901_s0 }
0x19a8   : > { %5010 = vrot.lane.b32.xlu1 %v7854_v51, %s9899_s3 }
0x19aa   : > { %5008 = vrot.lane.b32.xlu0 %v4979_v52, %s9899_s3 }
0x19ac   : > { %5006 = vrot.lane.b32.xlu1 %v7851_v24, %s9899_s3 }
0x19ae   : > { %5004 = vrot.lane.b32.xlu0 %v4969_v49, %s9899_s3 }
0x19b0   : > { %5039 = vperm.xlu1 %8104, %v4992_v53  }
0x19b2   : > { %5044 = vperm.xlu0 %8103, %v4993_v54  }
0x19b4   : > { %5049 = vperm.xlu1 %8104, %v4994_v55  }
0x19b6   : > { %5054 = vperm.xlu0 %8103, %v4995_v57  }
0x1a12   : > { %v5027_v58 = vpop.permute.xlu1 %5026 }
0x1a13   : > { %7855 = vmatprep.subr.msk.mxu0 %vm5032_vm14, %v5027_v58 }
0x1a14   : > { %7856 = vmatpush3.msk.msra.mxu0 %vm5032_vm14, %v5027_v58  ;;  %v5025_v9 = vpop.permute.xlu0 %5024 }
0x1a15   : > { %7857 = vmatprep.subr.msk.mxu0 %vm5032_vm14, %v5025_v9 }
0x1a16   : > { %v5023_v59 = vpop.permute.xlu1 %5022  ;;  %7858 = vmatpush3.msk.msra.mxu0 %vm5032_vm14, %v5025_v9  ;;  %v5288_v9 = vld [vmem:[%s9908_s1 + $0x8] sm:$0xff] }
0x1a17   : > { %7859 = vmatprep.subr.msk.mxu0 %vm5032_vm14, %v5023_v59 }
0x1a18   : > { %7860 = vmatpush3.msk.msra.mxu0 %vm5032_vm14, %v5023_v59  ;;  %v5021_v62 = vpop.permute.xlu0 %5020  ;;  %v5289_v59 = vld [vmem:[%s9908_s1 + $0x10] sm:$0xff] }
0x1a19   : > { %7861 = vmatprep.subr.msk.mxu0 %vm5032_vm14, %v5021_v62 }
0x1a1a   : > { %7862 = vmatpush3.msk.msra.mxu0 %vm5032_vm14, %v5021_v62  ;;  %v5011_v45 = vpop.permute.xlu1 %5010  ;;  %v5290_v62 = vld [vmem:[%s9908_s1 + $0x18] sm:$0xff]  ;;  %s9910_s1 = smov 124  }
0x1a1b   : > { %7863 = vmatprep.subr.mxu0 %v7854_v51 }
0x1a1c   : > { %7864 = vmatpush3.msra.mxu0 %v7854_v51  ;;  %v5009_v60 = vpop.permute.xlu0 %5008 }
0x1a1d   : > { %7865 = vmatprep.subr.mxu0 %v4979_v52 }
0x1a1e   : > { %7866 = vmatpush3.msra.mxu0 %v4979_v52  ;;  %v5007_v20 = vpop.permute.xlu1 %5006 }
0x1a1f   : > { %7867 = vmatprep.subr.mxu0 %v7851_v24 }
0x1a20   : > { %7868 = vmatpush3.msra.mxu0 %v7851_v24  ;;  %v5005_v11 = vpop.permute.xlu0 %5004  ;;  %v5293_v24 = vld [vmem:[%s9909_s2 + $0x10] sm:$0xff] }
0x1a21   : > { %7869 = vmatprep.subr.mxu0 %v4969_v49 }
0x1a22   : > { %7870 = vmatpush3.msra.mxu0 %v4969_v49  ;;  %v5294_v49 = vld [vmem:[%s9909_s2 + $0x18] sm:$0xff]  ;;  %s8185_s2 = smov 125  }
0x1a23   : > { %7871 = vmatprep.subr.msk.mxu0 %vm8529_vm5, %v5011_v45 }
0x1a24   : > { %7872 = vmatpush3.msk.msra.mxu0 %vm8529_vm5, %v5011_v45  ;;  %v5296_v45 = vld [vmem:[%s8427_s12 + $0x8] sm:$0xff] }
0x1a25   : > { %7873 = vmatprep.subr.msk.mxu0 %vm8529_vm5, %v5009_v60 }
0x1a26   : > { %7874 = vmatpush3.msk.msra.mxu0 %vm8529_vm5, %v5009_v60  ;;  %v5295_v60 = vld [vmem:[%s8427_s12] sm:$0xff] }
0x1a27   : > { %7875 = vmatprep.subr.msk.mxu0 %vm8529_vm5, %v5007_v20 }
0x1a28   : > { %7876 = vmatpush3.msk.msra.mxu0 %vm8529_vm5, %v5007_v20 }
0x1a29   : > { %7877 = vmatprep.subr.msk.mxu0 %vm8529_vm5, %v5005_v11 }
0x1a2a   : > { %7878 = vmatpush3.msk.msra.mxu0 %vm8529_vm5, %v5005_v11 }
0x1a2b   : > { %7880 = vmatmul.mubr.msk.f32.vlgmr.msra.gmra.mxu0 %vm2010_vm4, %v4989_v63  ;;  %v5040_v21 = vpop.permute.xlu1 %5039  ;;  %7929 = vmatprep.subr.mxu0 %v5296_v45 }
0x1a2c   : > { %7882 = vmatprep.mubr.msk.f32.mxu0 %vm2010_vm4, %v4990_v1  ;;  %7930 = vmatpush3.msra.mxu0 %v5296_v45  ;;  %v5590_v45 = vld [vmem:[%s8432_s20 + $0x30] sm:$0xff] }
0x1a2d   : > { %v5045_v5 = vpop.permute.xlu0 %5044  ;;  %7931 = vmatprep.subr.mxu0 %v5295_v60 }
0x1a2e   : > { %7932 = vmatpush3.msra.mxu0 %v5295_v60  ;;  %v5591_v60 = vld [vmem:[%s8432_s20 + $0x38] sm:$0xff] }
0x1a2f   : > { %7883 = vmatmul.mubr.msk.f32.gmra.mxu0 %vm2010_vm4, %v4991_v29  ;;  %v5050_v36 = vpop.permute.xlu1 %5049 }
0x1a31   : > { %v5055_v27 = vpop.permute.xlu0 %5054 }
0x1aeb   : > { %v7881_v6 = vpop.f32.mrf.mxu0 }
0x1aec   : > { %v5141_v10 = vadd.f32 %v7881_v6, %v5045_v5 }
0x1aed   : > { %v5135_v12 = vpop.f32.mrf.mxu0 }
0x1aee   : > { %vm5155_vm0 = vcmp.ge.f32.partialorder %v5141_v10, 0.0  ;;  %v5159_v14 = vmul.f32 0.01, %v5141_v10  ;;  %v5136_v50 = vadd.f32 %v5135_v12, %v5040_v21 }
0x1aef   : > { %v7884_v15 = vpop.f32.mrf.mxu0 }
0x1af0   : > { %vm5154_vm1 = vcmp.ge.f32.partialorder %v5136_v50, 0.0  ;;  %v5158_v16 = vmul.f32 0.01, %v5136_v50  ;;  %v5151_v17 = vadd.f32 %v7884_v15, %v5055_v27  ;;  %v5163_v18 = vsel %vm5155_vm0, %v5141_v10, %v5159_v14 }
0x1af1   : > { %v5145_v19 = vpop.f32.mrf.mxu0  ;;  %5172 = vrot.lane.b32.xlu0 %v5163_v18, %s9901_s0 }
0x1af2   : > { %vm5157_vm3 = vcmp.ge.f32.partialorder %v5151_v17, 0.0  ;;  %v5161_v22 = vmul.f32 0.01, %v5151_v17  ;;  %v5146_v23 = vadd.f32 %v5145_v19, %v5050_v36  ;;  %v5162_v25 = vsel %vm5154_vm1, %v5136_v50, %v5158_v16 }
0x1af3   : > { %5170 = vrot.lane.b32.xlu1 %v5162_v25, %s9901_s0 }
0x1af4   : > { %vm5156_vm6 = vcmp.ge.f32.partialorder %v5146_v23, 0.0  ;;  %v5160_v61 = vmul.f32 0.01, %v5146_v23  ;;  %v5165_v0 = vsel %vm5157_vm3, %v5151_v17, %v5161_v22 }
0x1af5   : > { %5176 = vrot.lane.b32.xlu0 %v5165_v0, %s9901_s0 }
0x1af6   : > { %v5164_v30 = vsel %vm5156_vm6, %v5146_v23, %v5160_v61 }
0x1af7   : > { %5174 = vrot.lane.b32.xlu1 %v5164_v30, %s9901_s0 }
0x1b63   : > { %v5173_v31 = vpop.permute.xlu0 %5172 }
0x1b64   : > { %v5183_v32 = vsel %vm5032_vm14, %v5173_v31, 0.0 }
0x1b65   : > { %v5171_v33 = vpop.permute.xlu1 %5170  ;;  %v5187_v38 = vmax.f32 %v5163_v18, %v5183_v32 }
0x1b66   : > { %v5182_v34 = vsel %vm5032_vm14, %v5171_v33, 0.0 }
0x1b67   : > { %v5186_v37 = vmax.f32 %v5162_v25, %v5182_v34  ;;  %v5177_v56 = vpop.permute.xlu0 %5176  ;;  %v5584_v34 = vld [vmem:[%s8432_s20] sm:$0xff] }
0x1b68   : > { %v5185_v46 = vsel %vm5032_vm14, %v5177_v56, 0.0 }
0x1b69   : > { %7893 = vmatprep.mubr.msk.f32.mxu1 %vm3168_vm12, %v5186_v37  ;;  %v5175_v39 = vpop.permute.xlu1 %5174  ;;  %v5189_v40 = vmax.f32 %v5165_v0, %v5185_v46  ;;  %v5585_v46 = vld [vmem:[%s8432_s20 + $0x8] sm:$0xff] }
0x1b6a   : > { %v5184_v8 = vsel %vm5032_vm14, %v5175_v39, 0.0  ;;  %7894 = vmatmul.mubr.msk.f32.vlgmr.msra.gmra.mxu1 %vm3168_vm12, %v5187_v38  ;;  %v5586_v39 = vld [vmem:[%s8432_s20 + $0x10] sm:$0xff] }
0x1b6b   : > { %v5188_v13 = vmax.f32 %v5164_v30, %v5184_v8  ;;  %v5588_v8 = vld [vmem:[%s8432_s20 + $0x20] sm:$0xff] }
0x1b6d   : > { %7896 = vmatprep.mubr.msk.f32.mxu1 %vm3168_vm12, %v5188_v13 }
0x1b6e   : > { %7897 = vmatmul.mubr.msk.f32.gmra.mxu1 %vm3168_vm12, %v5189_v40 }
0x1b6f   : > { %7923 = vmatprep.mubr.msk.f32.mxu1 %vm2010_vm4, %v5287_v47 }
0x1c2a   : > { %v7895_v41 = vpop.f32.mrf.mxu1 }
0x1c2c   : > { %v5268_v42 = vpop.f32.mrf.mxu1 }
0x1c2e   : > { %v7898_v43 = vpop.f32.mrf.mxu1 }
0x1c2f   : > { %5323 = vrot.lane.b32.xlu1 %v7898_v43, %s9901_s0 }
0x1c30   : > { %v5278_v44 = vpop.f32.mrf.mxu1 }
0x1c31   : > { %5321 = vrot.lane.b32.xlu0 %v5278_v44, %s9901_s0 }
0x1c33   : > { %5319 = vrot.lane.b32.xlu1 %v7895_v41, %s9901_s0 }
0x1c35   : > { %5317 = vrot.lane.b32.xlu0 %v5268_v42, %s9901_s0 }
0x1c37   : > { %5307 = vrot.lane.b32.xlu1 %v7898_v43, %s9899_s3 }
0x1c39   : > { %5305 = vrot.lane.b32.xlu0 %v5278_v44, %s9899_s3 }
0x1c3b   : > { %5303 = vrot.lane.b32.xlu1 %v7895_v41, %s9899_s3 }
0x1c3d   : > { %5301 = vrot.lane.b32.xlu0 %v5268_v42, %s9899_s3  ;;  %s8184_s3 = smov 126  }
0x1c3f   : > { %5336 = vperm.xlu1 %8104, %v5291_v48  }
0x1c41   : > { %5341 = vperm.xlu0 %8103, %v5292_v35  }
0x1c43   : > { %5346 = vperm.xlu1 %8104, %v5293_v24  }
0x1c45   : > { %5351 = vperm.xlu0 %8103, %v5294_v49  }
0x1ca1   : > { %v5324_v51 = vpop.permute.xlu1 %5323 }
0x1ca2   : > { %7899 = vmatprep.subr.msk.mxu1 %vm5329_vm7, %v5324_v51 }
0x1ca3   : > { %7900 = vmatpush3.msk.msra.mxu1 %vm5329_vm7, %v5324_v51  ;;  %v5322_v52 = vpop.permute.xlu0 %5321 }
0x1ca4   : > { %7901 = vmatprep.subr.msk.mxu1 %vm5329_vm7, %v5322_v52 }
0x1ca5   : > { %v5320_v26 = vpop.permute.xlu1 %5319  ;;  %7902 = vmatpush3.msk.msra.mxu1 %vm5329_vm7, %v5322_v52 }
0x1ca6   : > { %7903 = vmatprep.subr.msk.mxu1 %vm5329_vm7, %v5320_v26 }
0x1ca7   : > { %7904 = vmatpush3.msk.msra.mxu1 %vm5329_vm7, %v5320_v26  ;;  %v5318_v53 = vpop.permute.xlu0 %5317 }
0x1ca8   : > { %7905 = vmatprep.subr.msk.mxu1 %vm5329_vm7, %v5318_v53 }
0x1ca9   : > { %7906 = vmatpush3.msk.msra.mxu1 %vm5329_vm7, %v5318_v53  ;;  %v5308_v54 = vpop.permute.xlu1 %5307 }
0x1caa   : > { %7907 = vmatprep.subr.mxu1 %v7898_v43 }
0x1cab   : > { %7908 = vmatpush3.msra.mxu1 %v7898_v43  ;;  %v5306_v55 = vpop.permute.xlu0 %5305 }
0x1cac   : > { %7909 = vmatprep.subr.mxu1 %v5278_v44 }
0x1cad   : > { %7910 = vmatpush3.msra.mxu1 %v5278_v44  ;;  %v5304_v57 = vpop.permute.xlu1 %5303 }
0x1cae   : > { %7911 = vmatprep.subr.mxu1 %v7895_v41 }
0x1caf   : > { %7912 = vmatpush3.msra.mxu1 %v7895_v41  ;;  %v5302_v58 = vpop.permute.xlu0 %5301 }
0x1cb0   : > { %7913 = vmatprep.subr.mxu1 %v5268_v42 }
0x1cb1   : > { %7914 = vmatpush3.msra.mxu1 %v5268_v42 }
0x1cb2   : > { %7915 = vmatprep.subr.msk.mxu1 %vm8529_vm5, %v5308_v54 }
0x1cb3   : > { %7916 = vmatpush3.msk.msra.mxu1 %vm8529_vm5, %v5308_v54 }
0x1cb4   : > { %7917 = vmatprep.subr.msk.mxu1 %vm8529_vm5, %v5306_v55 }
0x1cb5   : > { %7918 = vmatpush3.msk.msra.mxu1 %vm8529_vm5, %v5306_v55  ;;  %v5587_v55 = vld [vmem:[%s8432_s20 + $0x18] sm:$0xff] }
0x1cb6   : > { %7919 = vmatprep.subr.msk.mxu1 %vm8529_vm5, %v5304_v57 }
0x1cb7   : > { %7920 = vmatpush3.msk.msra.mxu1 %vm8529_vm5, %v5304_v57 }
0x1cb8   : > { %7921 = vmatprep.subr.msk.mxu1 %vm8529_vm5, %v5302_v58 }
0x1cb9   : > { %7922 = vmatpush3.msk.msra.mxu1 %vm8529_vm5, %v5302_v58 }
0x1cba   : > { %7924 = vmatmul.mubr.msk.f32.vlgmr.msra.gmra.mxu1 %vm2010_vm4, %v5288_v9  ;;  %v5337_v11 = vpop.permute.xlu1 %5336  ;;  %v5589_v9 = vld [vmem:[%s8432_s20 + $0x28] sm:$0xff] }
0x1cbb   : > { %7926 = vmatprep.mubr.msk.f32.mxu1 %vm2010_vm4, %v5289_v59 }
0x1cbc   : > { %v5342_v20 = vpop.permute.xlu0 %5341 }
0x1cbe   : > { %7927 = vmatmul.mubr.msk.f32.gmra.mxu1 %vm2010_vm4, %v5290_v62  ;;  %v5347_v6 = vpop.permute.xlu1 %5346 }
0x1cbf   : > { %7969 = vmatprep.mubr.msk.f32.mxu1 %vm3168_vm12, %v5588_v8 }
0x1cc0   : > { %v5352_v2 = vpop.permute.xlu0 %5351 }
0x1d7a   : > { %v7925_v63 = vpop.f32.mrf.mxu1 }
0x1d7b   : > { %v5438_v1 = vadd.f32 %v7925_v63, %v5342_v20  ;;  %v5592_v63 = vld [vmem:[%s8432_s20 + $0x40] sm:$0xff] }
0x1d7c   : > { %v5432_v29 = vpop.f32.mrf.mxu1 }
0x1d7d   : > { %vm5452_vm8 = vcmp.ge.f32.partialorder %v5438_v1, 0.0  ;;  %v5456_v7 = vmul.f32 0.01, %v5438_v1  ;;  %v5433_v28 = vadd.f32 %v5432_v29, %v5337_v11 }
0x1d7e   : > { %v7928_v3 = vpop.f32.mrf.mxu1 }
0x1d7f   : > { %vm5451_vm5 = vcmp.ge.f32.partialorder %v5433_v28, 0.0  ;;  %v5455_v4 = vmul.f32 0.01, %v5433_v28  ;;  %v5448_v5 = vadd.f32 %v7928_v3, %v5352_v2  ;;  %v5460_v21 = vsel %vm5452_vm8, %v5438_v1, %v5456_v7  ;;  %v5593_v1 = vld [vmem:[%s8432_s20 + $0x48] sm:$0xff]  ;;  %v5595_v2 = vld [vmem:[%s8432_s20 + $0x58] sm:$0xff] }
0x1d80   : > { %v5442_v10 = vpop.f32.mrf.mxu1  ;;  %5469 = vrot.lane.b32.xlu0 %v5460_v21, %s9901_s0 }
0x1d81   : > { %vm5454_vm4 = vcmp.ge.f32.partialorder %v5448_v5, 0.0  ;;  %v5458_v12 = vmul.f32 0.01, %v5448_v5  ;;  %v5443_v14 = vadd.f32 %v5442_v10, %v5347_v6  ;;  %v5459_v50 = vsel %vm5451_vm5, %v5433_v28, %v5455_v4  ;;  %v5594_v28 = vld [vmem:[%s8432_s20 + $0x50] sm:$0xff] }
0x1d82   : > { %5467 = vrot.lane.b32.xlu1 %v5459_v50, %s9901_s0  ;;  %v5598_v10 = vld [vmem:[%s8432_s20 + $0x70] sm:$0xff] }
0x1d83   : > { %vm5453_vm9 = vcmp.ge.f32.partialorder %v5443_v14, 0.0  ;;  %v5457_v27 = vmul.f32 0.01, %v5443_v14  ;;  %v5462_v15 = vsel %vm5454_vm4, %v5448_v5, %v5458_v12  ;;  %v5596_v5 = vld [vmem:[%s8432_s20 + $0x60] sm:$0xff] }
0x1d84   : > { %5473 = vrot.lane.b32.xlu0 %v5462_v15, %s9901_s0 }
0x1d85   : > { %v5461_v16 = vsel %vm5453_vm9, %v5443_v14, %v5457_v27  ;;  %v5599_v14 = vld [vmem:[%s8432_s20 + $0x78] sm:$0xff] }
0x1d86   : > { %5471 = vrot.lane.b32.xlu1 %v5461_v16, %s9901_s0 }
0x1df2   : > { %v5470_v17 = vpop.permute.xlu0 %5469 }
0x1df3   : > { %v5480_v18 = vsel %vm5329_vm7, %v5470_v17, 0.0  ;;  %v5601_v17 = vld [vmem:[%s8437_s27 + $0x8] sm:$0xff] }
0x1df4   : > { %v5468_v36 = vpop.permute.xlu1 %5467  ;;  %v5484_v25 = vmax.f32 %v5460_v21, %v5480_v18  ;;  %v5597_v21 = vld [vmem:[%s8432_s20 + $0x68] sm:$0xff] }
0x1df5   : > { %v5479_v19 = vsel %vm5329_vm7, %v5468_v36, 0.0  ;;  %v5600_v36 = vld [vmem:[%s8437_s27] sm:$0xff] }
0x1df6   : > { %v5483_v22 = vmax.f32 %v5459_v50, %v5479_v19  ;;  %v5474_v23 = vpop.permute.xlu0 %5473 }
0x1df7   : > { %v5482_v61 = vsel %vm5329_vm7, %v5474_v23, 0.0 }
0x1df8   : > { %7933 = vmatprep.mubr.msk.f32.mxu0 %vm2829_vm10, %v5483_v22  ;;  %v5472_v0 = vpop.permute.xlu1 %5471  ;;  %v5486_v32 = vmax.f32 %v5462_v15, %v5482_v61 }
0x1df9   : > { %v5481_v30 = vsel %vm5329_vm7, %v5472_v0, 0.0  ;;  %7934 = vmatmul.mubr.msk.f32.vlgmr.msra.gmra.mxu0 %vm2829_vm10, %v5484_v25 }
0x1dfa   : > { %v5485_v31 = vmax.f32 %v5461_v16, %v5481_v30 }
0x1dfc   : > { %7936 = vmatprep.mubr.msk.f32.mxu0 %vm2829_vm10, %v5485_v31 }
0x1dfd   : > { %7937 = vmatmul.mubr.msk.f32.gmra.mxu0 %vm2829_vm10, %v5486_v32 }
0x1dfe   : > { %7947 = vmatprep.mubr.msk.f32.mxu0 %vm3168_vm12, %v5584_v34 }
0x1eb9   : > { %v7935_v33 = vpop.f32.mrf.mxu0 }
0x1eba   : > { %5786 = vrot.lane.b32.xlu0 %v7935_v33, %s8184_s3  ;;  %5691 = vrot.lane.b32.xlu1 %v7935_v33, %s9901_s0 }
0x1ebb   : > { %v5565_v37 = vpop.f32.mrf.mxu0 }
0x1ebd   : > { %v7938_v56 = vpop.f32.mrf.mxu0 }
0x1ebe   : > { %5976 = vrot.lane.b32.xlu0 %v7935_v33, %s9910_s1  ;;  %5881 = vrot.lane.b32.xlu1 %v7935_v33, %s8185_s2 }
0x1ebf   : > { %7939 = vmatprep.subr.mxu0 %v7938_v56  ;;  %v5575_v38 = vpop.f32.mrf.mxu0 }
0x1ec0   : > { %7940 = vmatpush3.msra.mxu0 %v7938_v56 }
0x1ec1   : > { %7941 = vmatprep.subr.mxu0 %v5575_v38 }
0x1ec2   : > { %7942 = vmatpush3.msra.mxu0 %v5575_v38  ;;  %6071 = vrot.lane.b32.xlu1 %v7935_v33, %s8186_s5 }
0x1ec3   : > { %5689 = vrot.lane.b32.xlu0 %v5565_v37, %s9901_s0  ;;  %7943 = vmatprep.subr.mxu0 %v7935_v33 }
0x1ec4   : > { %7944 = vmatpush3.msra.mxu0 %v7935_v33 }
0x1ec5   : > { %7945 = vmatprep.subr.mxu0 %v5565_v37 }
0x1ec6   : > { %7946 = vmatpush3.msra.mxu0 %v5565_v37  ;;  %5695 = vrot.lane.b32.xlu1 %v7938_v56, %s9901_s0 }
0x1ec7   : > { %5784 = vrot.lane.b32.xlu0 %v5565_v37, %s8184_s3  ;;  %7948 = vmatmul.mubr.msk.f32.vlgmr.msra.gmra.mxu0 %vm3168_vm12, %v5585_v46 }
0x1ec8   : > { %7958 = vmatprep.mubr.msk.f32.mxu0 %vm3168_vm12, %v5586_v39 }
0x1eca   : > { %5790 = vrot.lane.b32.xlu1 %v7938_v56, %s8184_s3 }
0x1ecb   : > { %5879 = vrot.lane.b32.xlu0 %v5565_v37, %s8185_s2 }
0x1ece   : > { %5885 = vrot.lane.b32.xlu1 %v7938_v56, %s8185_s2 }
0x1ecf   : > { %5974 = vrot.lane.b32.xlu0 %v5565_v37, %s9910_s1 }
0x1ed2   : > { %5980 = vrot.lane.b32.xlu1 %v7938_v56, %s9910_s1 }
0x1ed3   : > { %5693 = vrot.lane.b32.xlu0 %v5575_v38, %s9901_s0 }
0x1ed6   : > { %6075 = vrot.lane.b32.xlu1 %v7938_v56, %s8186_s5 }
0x1ed7   : > { %5788 = vrot.lane.b32.xlu0 %v5575_v38, %s8184_s3 }
0x1eda   : > { %5883 = vrot.lane.b32.xlu1 %v5575_v38, %s8185_s2 }
0x1edb   : > { %6069 = vrot.lane.b32.xlu0 %v5565_v37, %s8186_s5 }
0x1ede   : > { %6170 = vrot.lane.b32.xlu1 %v7938_v56, %s8187_s6 }
0x1edf   : > { %5978 = vrot.lane.b32.xlu0 %v5575_v38, %s9910_s1 }
0x1ee2   : > { %6073 = vrot.lane.b32.xlu1 %v5575_v38, %s8186_s5  ;;  %s6834_s5 = sshll.u32 %s9912_s10, 4 }
0x1ee3   : > { %6166 = vrot.lane.b32.xlu0 %v7935_v33, %s8187_s6 }
0x1ee6   : > { %6265 = vrot.lane.b32.xlu1 %v7938_v56, %s8188_s8 }
0x1ee7   : > { %6168 = vrot.lane.b32.xlu0 %v5575_v38, %s8187_s6 }
0x1eea   : > { %6263 = vrot.lane.b32.xlu1 %v5575_v38, %s8188_s8 }
0x1eeb   : > { %6164 = vrot.lane.b32.xlu0 %v5565_v37, %s8187_s6 }
0x1eee   : > { %6261 = vrot.lane.b32.xlu1 %v7935_v33, %s8188_s8 }
0x1eef   : > { %6259 = vrot.lane.b32.xlu0 %v5565_v37, %s8188_s8  ;;  %s1459_s8 = scalar_lea.vmem %s8442_s4, %s6834_s5 }
0x1f2c   : > { %v5692_v13 = vpop.permute.xlu1 %5691  ;;  %v5787_v40 = vpop.permute.xlu0 %5786 }
0x1f30   : > { %v5882_v41 = vpop.permute.xlu1 %5881  ;;  %v5977_v42 = vpop.permute.xlu0 %5976 }
0x1f34   : > { %v9716_v43 = vpop.permute.xlu1 %6071 }
0x1f35   : > { %v5690_v44 = vpop.permute.xlu0 %5689 }
0x1f38   : > { %v5696_v47 = vpop.permute.xlu1 %5695 }
0x1f39   : > { %v5785_v48 = vpop.permute.xlu0 %5784  ;;  %7950 = vmatprep.subr.mxu0 %v5696_v47 }
0x1f3a   : > { %7951 = vmatpush3.msra.mxu0 %v5696_v47 }
0x1f3c   : > { %v5791_v35 = vpop.permute.xlu1 %5790 }
0x1f3d   : > { %v5880_v24 = vpop.permute.xlu0 %5879  ;;  %7961 = vmatprep.subr.mxu1 %v5791_v35 }
0x1f3e   : > { %7962 = vmatpush3.msra.mxu1 %v5791_v35 }
0x1f40   : > { %v5886_v49 = vpop.permute.xlu1 %5885 }
0x1f41   : > { %v5975_v51 = vpop.permute.xlu0 %5974 }
0x1f44   : > { %v5981_v52 = vpop.permute.xlu1 %5980 }
0x1f45   : > { %v5694_v26 = vpop.permute.xlu0 %5693 }
0x1f46   : > { %7952 = vmatprep.subr.mxu0 %v5694_v26 }
0x1f47   : > { %7953 = vmatpush3.msra.mxu0 %v5694_v26 }
0x1f48   : > { %7954 = vmatprep.subr.mxu0 %v5692_v13  ;;  %v6076_v53 = vpop.permute.xlu1 %6075 }
0x1f49   : > { %7955 = vmatpush3.msra.mxu0 %v5692_v13  ;;  %v5789_v54 = vpop.permute.xlu0 %5788 }
0x1f4a   : > { %7956 = vmatprep.subr.mxu0 %v5690_v44  ;;  %7963 = vmatprep.subr.mxu1 %v5789_v54 }
0x1f4b   : > { %7957 = vmatpush3.msra.mxu0 %v5690_v44  ;;  %7964 = vmatpush3.msra.mxu1 %v5789_v54 }
0x1f4c   : > { %7959 = vmatmul.mubr.msk.f32.vlgmr.msra.gmra.mxu0 %vm3168_vm12, %v5587_v55  ;;  %7965 = vmatprep.subr.mxu1 %v5787_v40  ;;  %v5884_v57 = vpop.permute.xlu1 %5883 }
0x1f4d   : > { %7972 = vmatprep.subr.mxu0 %v5886_v49  ;;  %7966 = vmatpush3.msra.mxu1 %v5787_v40  ;;  %v6070_v58 = vpop.permute.xlu0 %6069 }
0x1f4e   : > { %7973 = vmatpush3.msra.mxu0 %v5886_v49  ;;  %7967 = vmatprep.subr.mxu1 %v5785_v48 }
0x1f4f   : > { %7974 = vmatprep.subr.mxu0 %v5884_v57  ;;  %7968 = vmatpush3.msra.mxu1 %v5785_v48 }
0x1f50   : > { %7975 = vmatpush3.msra.mxu0 %v5884_v57  ;;  %7970 = vmatmul.mubr.msk.f32.vlgmr.msra.gmra.mxu1 %vm3168_vm12, %v5589_v9  ;;  %v6171_v59 = vpop.permute.xlu1 %6170 }
0x1f51   : > { %7976 = vmatprep.subr.mxu0 %v5882_v41  ;;  %7983 = vmatprep.subr.mxu1 %v5981_v52  ;;  %v5979_v62 = vpop.permute.xlu0 %5978 }
0x1f52   : > { %7977 = vmatpush3.msra.mxu0 %v5882_v41  ;;  %7984 = vmatpush3.msra.mxu1 %v5981_v52 }
0x1f53   : > { %7978 = vmatprep.subr.mxu0 %v5880_v24  ;;  %7985 = vmatprep.subr.mxu1 %v5979_v62 }
0x1f54   : > { %7979 = vmatpush3.msra.mxu0 %v5880_v24  ;;  %7980 = vmatprep.mubr.msk.f32.mxu0 %vm3168_vm12, %v5590_v45  ;;  %v6074_v20 = vpop.permute.xlu1 %6073 }
0x1f55   : > { %7986 = vmatpush3.msra.mxu1 %v5979_v62  ;;  %7981 = vmatmul.mubr.msk.f32.vlgmr.msra.gmra.mxu0 %vm3168_vm12, %v5591_v60  ;;  %v6167_v11 = vpop.permute.xlu0 %6166 }
0x1f56   : > { %7987 = vmatprep.subr.mxu1 %v5977_v42  ;;  %7994 = vmatprep.subr.mxu0 %v6076_v53 }
0x1f57   : > { %7988 = vmatpush3.msra.mxu1 %v5977_v42  ;;  %7995 = vmatpush3.msra.mxu0 %v6076_v53 }
0x1f58   : > { %7989 = vmatprep.subr.mxu1 %v5975_v51  ;;  %7996 = vmatprep.subr.mxu0 %v6074_v20  ;;  %v6266_v29 = vpop.permute.xlu1 %6265 }
0x1f59   : > { %7990 = vmatpush3.msra.mxu1 %v5975_v51  ;;  %7991 = vmatprep.mubr.msk.f32.mxu1 %vm3168_vm12, %v5592_v63  ;;  %v6169_v7 = vpop.permute.xlu0 %6168 }
0x1f5a   : > { %7997 = vmatpush3.msra.mxu0 %v6074_v20  ;;  %7992 = vmatmul.mubr.msk.f32.vlgmr.msra.gmra.mxu1 %vm3168_vm12, %v5593_v1 }
0x1f5b   : > { %7998 = vmatprep.subr.mxu0 %v9716_v43  ;;  %8005 = vmatprep.subr.mxu1 %v6171_v59 }
0x1f5c   : > { %7999 = vmatpush3.msra.mxu0 %v9716_v43  ;;  %8006 = vmatpush3.msra.mxu1 %v6171_v59  ;;  %v6264_v3 = vpop.permute.xlu1 %6263 }
0x1f5d   : > { %8000 = vmatprep.subr.mxu0 %v6070_v58  ;;  %8007 = vmatprep.subr.mxu1 %v6169_v7  ;;  %v6165_v4 = vpop.permute.xlu0 %6164 }
0x1f5e   : > { %8001 = vmatpush3.msra.mxu0 %v6070_v58  ;;  %8002 = vmatprep.mubr.msk.f32.mxu0 %vm3168_vm12, %v5594_v28 }
0x1f5f   : > { %8008 = vmatpush3.msra.mxu1 %v6169_v7  ;;  %8003 = vmatmul.mubr.msk.f32.vlgmr.msra.gmra.mxu0 %vm3168_vm12, %v5595_v2 }
0x1f60   : > { %8009 = vmatprep.subr.mxu1 %v6167_v11  ;;  %8016 = vmatprep.subr.mxu0 %v6266_v29  ;;  %v6262_v6 = vpop.permute.xlu1 %6261 }
0x1f61   : > { %8010 = vmatpush3.msra.mxu1 %v6167_v11  ;;  %8017 = vmatpush3.msra.mxu0 %v6266_v29  ;;  %v6260_v12 = vpop.permute.xlu0 %6259 }
0x1f62   : > { %8011 = vmatprep.subr.mxu1 %v6165_v4  ;;  %8018 = vmatprep.subr.mxu0 %v6264_v3 }
0x1f63   : > { %8012 = vmatpush3.msra.mxu1 %v6165_v4  ;;  %8013 = vmatprep.mubr.msk.f32.mxu1 %vm3168_vm12, %v5596_v5 }
0x1f64   : > { %8019 = vmatpush3.msra.mxu0 %v6264_v3  ;;  %8014 = vmatmul.mubr.msk.f32.vlgmr.msra.gmra.mxu1 %vm3168_vm12, %v5597_v21 }
0x1f65   : > { %8020 = vmatprep.subr.mxu0 %v6262_v6  ;;  %8024 = vmatprep.mubr.msk.f32.mxu0 %vm3168_vm12, %v5598_v10 }
0x1f66   : > { %8021 = vmatpush3.msra.mxu0 %v6262_v6 }
0x1f67   : > { %8022 = vmatprep.subr.mxu0 %v6260_v12 }
0x1f68   : > { %8023 = vmatpush3.msra.mxu0 %v6260_v12 }
0x1f69   : > { %8025 = vmatmul.mubr.msk.f32.vlgmr.msra.gmra.mxu0 %vm3168_vm12, %v5599_v14 }
0x1f87   : > { %v7949_v50 = vpop.f32.mrf.mxu0 }
0x1f88   : > { %v5684_v22 = vadd.f32 %v7949_v50, %v5601_v17 }
0x1f89   : > { %v5674_v27 = vpop.f32.mrf.mxu0 }
0x1f8a   : > { %v5683_v25 = vadd.f32 %v5674_v27, %v5600_v36 }
0x200c   : > { %v7960_v15 = vpop.f32.mrf.mxu0 }
0x200d   : > { %v5783_v61 = vadd.f32 %v7960_v15, %v5684_v22 }
0x200e   : > { %v5773_v18 = vpop.f32.mrf.mxu0 }
0x200f   : > { %v5782_v31 = vadd.f32 %v5773_v18, %v5683_v25 }
0x2010   : > { %v7971_v16 = vpop.f32.mrf.mxu1 }
0x2011   : > { %v5878_v32 = vadd.f32 %v7971_v16, %v5783_v61 }
0x2012   : > { %v5868_v23 = vpop.f32.mrf.mxu1 }
0x2013   : > { %v5877_v34 = vadd.f32 %v5868_v23, %v5782_v31 }
0x2015   : > { %v7982_v19 = vpop.f32.mrf.mxu0 }
0x2016   : > { %v5973_v37 = vadd.f32 %v7982_v19, %v5878_v32 }
0x2017   : > { %v5963_v30 = vpop.f32.mrf.mxu0 }
0x2018   : > { %v5972_v38 = vadd.f32 %v5963_v30, %v5877_v34 }
0x201a   : > { %v7993_v0 = vpop.f32.mrf.mxu1 }
0x201b   : > { %v6068_v46 = vadd.f32 %v7993_v0, %v5973_v37 }
0x201c   : > { %v6058_v56 = vpop.f32.mrf.mxu1 }
0x201d   : > { %v6067_v13 = vadd.f32 %v6058_v56, %v5972_v38 }
0x201f   : > { %v8004_v33 = vpop.f32.mrf.mxu0 }
0x2020   : > { %v6163_v40 = vadd.f32 %v8004_v33, %v6068_v46 }
0x2021   : > { %v6153_v8 = vpop.f32.mrf.mxu0 }
0x2022   : > { %v6162_v42 = vadd.f32 %v6153_v8, %v6067_v13 }
0x2024   : > { %v8015_v39 = vpop.f32.mrf.mxu1 }
0x2025   : > { %v6258_v43 = vadd.f32 %v8015_v39, %v6163_v40 }
0x2026   : > { %v6248_v41 = vpop.f32.mrf.mxu1 }
0x2027   : > { %v6257_v47 = vadd.f32 %v6248_v41, %v6162_v42 }
0x2029   : > { %v8026_v44 = vpop.f32.mrf.mxu0 }
0x202a   : > { %v6353_v48 = vadd.f32 %v8026_v44, %v6258_v43 }
0x202b   : > { %v6343_v35 = vpop.f32.mrf.mxu0 }
0x202c   : > { %6355 = vst.msk [vmem:[%s1459_s8 + $0x8] sm:$0xff] %vm1615_vm2, %v6353_v48  ;;  %v6352_v24 = vadd.f32 %v6343_v35, %v6257_v47 }
0x202e   : > { %6354 = vst.msk [vmem:[%s1459_s8] sm:$0xff] %vm1615_vm2, %v6352_v24 }
0x202f PF: > { %s109_s7 = sadd.s32 1, %s8121_s7  }
0x2030   : > { %p106_p4 = scmp.ge.s32.totalorder %s109_s7, 4  }
0x2032   :  { %108 = sbr.rel (!%p106_p4) target bundleno = 102 (0x66), region = 295 }

</bundles_post_ra>
